<compile_context>
chip_gen: v7x
topology: tpu7x:2x2x1
jax: 0.10.0
libtpu: 0.0.40
codegen_flags: <defaults>
</compile_context>

<pallas_src>
import functools
import math

import jax
import jax.numpy as jnp
from jax.experimental import pallas as pl
from jax.experimental.pallas import tpu as pltpu

VOCAB = list('abcdefghijklmnopqrstuvwxyzABCDEFGHIJKLMNOPQRSTUVWXYZ0123456789!?., -_')
VOCAB_SIZE = len(VOCAB)          # 69
EMB_DIM = 256
MAX_PROMPT_LEN = 64
NHEAD = 8
HEAD_DIM = EMB_DIM // NHEAD      # 32
FF_DIM = 2048                    # nn.TransformerEncoderLayer default
NUM_LAYERS = 6
EPS = 1e-5                       # LayerNorm default eps


# ----------------------------------------------------------------------------
# Fused kernel: 6 encoder layers + mean-pool epilogue
# ----------------------------------------------------------------------------
def _fused_encoder_kernel(B, T,
                          x_ref,
                          wqkv_ref, bqkv_ref, wo_ref, bo_ref,
                          g1_ref, be1_ref,
                          w1_ref, b1_ref, w2_ref, b2_ref,
                          g2_ref, be2_ref,
                          o_ref,
                          x_scratch):
    BT = B * T
    D = EMB_DIM

    # Load initial activations into the resident VMEM accumulator at layer 0.
    @pl.when(pl.program_id(0) == 0)
    def _():
        x_scratch[...] = x_ref[...]

    x = x_scratch[...]                                  # (BT, D) f32
    xb = x.astype(jnp.bfloat16)

    # ---- fused Q/K/V projection: one (BT,D) x (D,3D) MXU matmul -----------
    qkv = jnp.dot(xb, wqkv_ref[...], preferred_element_type=jnp.float32)
    qkv = qkv + bqkv_ref[...]                           # (BT, 3D) f32
    q = qkv[:, 0 * D:1 * D].reshape(B, T, D)
    k = qkv[:, 1 * D:2 * D].reshape(B, T, D)
    v = qkv[:, 2 * D:3 * D].reshape(B, T, D)

    # ---- multi-head self-attention -----------------------------------------
    scale = 1.0 / math.sqrt(HEAD_DIM)
    attn = jnp.zeros((BT, D), jnp.float32)
    for h in range(NHEAD):                              # static unroll
        lo = h * HEAD_DIM
        qh = q[:, :, lo:lo + HEAD_DIM]                  # (B, T, Dh)
        kh = k[:, :, lo:lo + HEAD_DIM]
        vh = v[:, :, lo:lo + HEAD_DIM]
        # batched score matmul, contraction on feature dim (no transpose)
        s = jnp.einsum('bqd,bkd->bqk', qh, kh,
                       preferred_element_type=jnp.float32) * scale
        s = s - jnp.max(s, axis=-1, keepdims=True)
        p = jnp.exp(s)
        p = p * pl.reciprocal(jnp.sum(p, axis=-1, keepdims=True), approx=True)
        ho = jnp.einsum('bqk,bkd->bqd', p, vh,
                        preferred_element_type=jnp.float32)      # (B, T, Dh)
        # accumulate through the matching W_O row-slice (no lane concat)
        attn = attn + jnp.dot(ho.reshape(BT, HEAD_DIM).astype(jnp.bfloat16),
                              wo_ref[lo:lo + HEAD_DIM, :],
                              preferred_element_type=jnp.float32)
    attn = attn + bo_ref[...]

    # ---- residual + LayerNorm 1 (post-norm) ---------------------------------
    y = x + attn
    mu = jnp.mean(y, axis=-1, keepdims=True)
    var = jnp.mean((y - mu) ** 2, axis=-1, keepdims=True)
    y = (y - mu) * jax.lax.rsqrt(var + EPS) * g1_ref[...] + be1_ref[...]

    # ---- feed-forward: Linear -> ReLU -> Linear (bf16 weights, f32 accum) ---
    h1 = jnp.dot(y.astype(jnp.bfloat16), w1_ref[...],
                 preferred_element_type=jnp.float32) + b1_ref[...]
    h1 = jnp.maximum(h1, 0.0)
    ff = jnp.dot(h1.astype(jnp.bfloat16), w2_ref[...],
                 preferred_element_type=jnp.float32) + b2_ref[...]

    # ---- residual + LayerNorm 2 ---------------------------------------------
    z = y + ff
    mu2 = jnp.mean(z, axis=-1, keepdims=True)
    var2 = jnp.mean((z - mu2) ** 2, axis=-1, keepdims=True)
    z = (z - mu2) * jax.lax.rsqrt(var2 + EPS) * g2_ref[...] + be2_ref[...]

    x_scratch[...] = z

    # ---- fused mean-pool epilogue: AdaptiveAvgPool1d(1) == mean over T ------
    # (written every layer step; the last layer's value is the final result)
    o_ref[...] = jnp.mean(z.reshape(B, T, D), axis=1)


# ----------------------------------------------------------------------------
# Wrapper
# ----------------------------------------------------------------------------
def _fused_transformer(x, params, B, T):
    D, D3 = EMB_DIM, 3 * EMB_DIM
    BT = B * T

    kernel = functools.partial(_fused_encoder_kernel, B, T)

    def wspec(shape):
        # one layer's slice of a (L, *shape) stacked parameter
        return pl.BlockSpec((None,) + shape,
                            lambda l, _s=shape: (l,) + (0,) * len(_s))

    in_specs = [
        pl.BlockSpec((BT, D), lambda l: (0, 0)),   # x (constant block, resident)
        wspec((D, D3)),                            # wqkv  (bf16)
        wspec((1, D3)),                            # bqkv
        wspec((D, D)),                             # wo    (bf16)
        wspec((1, D)),                             # bo
        wspec((1, D)),                             # g1
        wspec((1, D)),                             # be1
        wspec((D, FF_DIM)),                        # w1    (bf16)
        wspec((1, FF_DIM)),                        # b1
        wspec((FF_DIM, D)),                        # w2    (bf16)
        wspec((1, D)),                             # b2
        wspec((1, D)),                             # g2
        wspec((1, D)),                             # be2
    ]

    return pl.pallas_call(
        kernel,
        out_shape=jax.ShapeDtypeStruct((B, D), jnp.float32),
        grid=(NUM_LAYERS,),
        in_specs=in_specs,
        out_specs=pl.BlockSpec((B, D), lambda l: (0, 0)),
        scratch_shapes=[pltpu.VMEM((BT, D), jnp.float32)],
        compiler_params=pltpu.CompilerParams(
            # layer axis carries VMEM state -> must be sequential
            dimension_semantics=("arbitrary",),
            # ~5.3 MB of double-buffered bf16 weights + small activations;
            # keep the request modest so it also fits v7x's 64 MiB VMEM.
            vmem_limit_bytes=32 << 20),
    )(x,
      params['wqkv'], params['bqkv'], params['wo'], params['bo'],
      params['g1'], params['be1'],
      params['w1'], params['b1'], params['w2'], params['b2'],
      params['g2'], params['be2'])


def text_encoder_forward(tokens, params):
    """tokens: (B, T) int32 ids in [0, vocab_size). Returns (B, EMB_DIM) f32."""
    B, T = tokens.shape
    # Embedding gathers stay in plain JAX (glue); all 6 layers + pool run in
    # one fused, pipelined Pallas call.
    tok_emb = params['tok_emb'][tokens]                     # (B, T, D)
    pos_emb = params['pos_emb'][:T][None, :, :]             # (1, T, D)
    x = (tok_emb + pos_emb).astype(jnp.float32).reshape(B * T, EMB_DIM)
    return _fused_transformer(x, params, B, T)


# ----------------------------------------------------------------------------
# Deterministic parameter initialization (synthetic weights, layer-stacked)
# ----------------------------------------------------------------------------
def init_params(key):
    def nrm(k, shape, scale=0.02):
        return (scale * jax.random.normal(k, shape)).astype(jnp.float32)

    keys = jax.random.split(key, 2 + NUM_LAYERS)
    wqkv, wo, w1, w2 = [], [], [], []
    for i in range(NUM_LAYERS):
        lk = jax.random.split(keys[2 + i], 4)
        wqkv.append(nrm(lk[0], (EMB_DIM, 3 * EMB_DIM)))
        wo.append(nrm(lk[1], (EMB_DIM, EMB_DIM)))
        w1.append(nrm(lk[2], (EMB_DIM, FF_DIM)))
        w2.append(nrm(lk[3], (FF_DIM, EMB_DIM)))

    L = NUM_LAYERS
    params = dict(
        tok_emb=nrm(keys[0], (VOCAB_SIZE, EMB_DIM)),
        pos_emb=nrm(keys[1], (MAX_PROMPT_LEN, EMB_DIM)),
        # big matrices streamed in bf16 (halves weight HBM traffic)
        wqkv=jnp.stack(wqkv).astype(jnp.bfloat16),          # (L, D, 3D)
        bqkv=jnp.zeros((L, 1, 3 * EMB_DIM), jnp.float32),
        wo=jnp.stack(wo).astype(jnp.bfloat16),              # (L, D, D)
        bo=jnp.zeros((L, 1, EMB_DIM), jnp.float32),
        g1=jnp.ones((L, 1, EMB_DIM), jnp.float32),
        be1=jnp.zeros((L, 1, EMB_DIM), jnp.float32),
        w1=jnp.stack(w1).astype(jnp.bfloat16),              # (L, D, FF)
        b1=jnp.zeros((L, 1, FF_DIM), jnp.float32),
        w2=jnp.stack(w2).astype(jnp.bfloat16),              # (L, FF, D)
        b2=jnp.zeros((L, 1, EMB_DIM), jnp.float32),
        g2=jnp.ones((L, 1, EMB_DIM), jnp.float32),
        be2=jnp.zeros((L, 1, EMB_DIM), jnp.float32),
    )
    return params


# ----------------------------------------------------------------------------
if __name__ == "__main__":
    key = jax.random.PRNGKey(0)
    pkey, dkey = jax.random.split(key)
    params = init_params(pkey)

    B, T = 2, 8                                   # T <= max_prompt_len (64)
    tokens = jax.random.randint(dkey, (B, T), 0, VOCAB_SIZE, dtype=jnp.int32)

    fwd = jax.jit(text_encoder_forward)
    out = fwd(tokens, params)
    out = jax.block_until_ready(out)
    assert out.shape == (B, EMB_DIM) and out.dtype == jnp.float32
    assert bool(jnp.all(jnp.isfinite(out)))
    print("KERNEL_OK")
</pallas_src>

<mosaic_0001>
module attributes {stable_mosaic.version = 11 : i64} {
  func.func @_fused_encoder_kernel(%arg0: i32, %arg1: memref<16x256xf32, #tpu.memory_space<vmem>>, %arg2: memref<1x256x768xbf16, #tpu.memory_space<vmem>>, %arg3: memref<1x1x768xf32, #tpu.memory_space<vmem>>, %arg4: memref<1x256x256xbf16, #tpu.memory_space<vmem>>, %arg5: memref<1x1x256xf32, #tpu.memory_space<vmem>>, %arg6: memref<1x1x256xf32, #tpu.memory_space<vmem>>, %arg7: memref<1x1x256xf32, #tpu.memory_space<vmem>>, %arg8: memref<1x256x2048xbf16, #tpu.memory_space<vmem>>, %arg9: memref<1x1x2048xf32, #tpu.memory_space<vmem>>, %arg10: memref<1x2048x256xbf16, #tpu.memory_space<vmem>>, %arg11: memref<1x1x256xf32, #tpu.memory_space<vmem>>, %arg12: memref<1x1x256xf32, #tpu.memory_space<vmem>>, %arg13: memref<1x1x256xf32, #tpu.memory_space<vmem>>, %arg14: memref<2x256xf32, #tpu.memory_space<vmem>>, %arg15: memref<16x256xf32, #tpu.memory_space<vmem>>) attributes {dimension_semantics = [#tpu.dimension_semantics<arbitrary>], iteration_bounds = array<i64: 6>, scalar_prefetch = 0 : i64, scratch_operands = 1 : i64, tpu.core_type = #tpu.core_type<tc>, window_params = [{pipeline_mode = #tpu.pipeline_mode<synchronous>, transform_indices = @transform_0, window_bounds = array<i64: 16, 256>}, {transform_indices = @transform_1, window_bounds = array<i64: 1, 256, 768>}, {transform_indices = @transform_2, window_bounds = array<i64: 1, 1, 768>}, {transform_indices = @transform_3, window_bounds = array<i64: 1, 256, 256>}, {transform_indices = @transform_4, window_bounds = array<i64: 1, 1, 256>}, {transform_indices = @transform_5, window_bounds = array<i64: 1, 1, 256>}, {transform_indices = @transform_6, window_bounds = array<i64: 1, 1, 256>}, {transform_indices = @transform_7, window_bounds = array<i64: 1, 256, 2048>}, {transform_indices = @transform_8, window_bounds = array<i64: 1, 1, 2048>}, {transform_indices = @transform_9, window_bounds = array<i64: 1, 2048, 256>}, {transform_indices = @transform_10, window_bounds = array<i64: 1, 1, 256>}, {transform_indices = @transform_11, window_bounds = array<i64: 1, 1, 256>}, {transform_indices = @transform_12, window_bounds = array<i64: 1, 1, 256>}, {pipeline_mode = #tpu.pipeline_mode<synchronous>, transform_indices = @transform_13, window_bounds = array<i64: 2, 256>}]} {
    %c0_i32 = arith.constant 0 : i32
    %0 = arith.cmpi eq, %arg0, %c0_i32 : i32
    %1 = arith.extui %0 : i1 to i32
    %c0_i32_0 = arith.constant 0 : i32
    %2 = arith.cmpi ne, %1, %c0_i32_0 : i32
    scf.if %2 {
      %c0_120 = arith.constant 0 : index
      %c0_121 = arith.constant 0 : index
      %285 = vector.load %arg1[%c0_120, %c0_121] : memref<16x256xf32, #tpu.memory_space<vmem>>, vector<16x256xf32>
      %c0_122 = arith.constant 0 : index
      %c0_123 = arith.constant 0 : index
      %286 = vector.load %arg15[%c0_122, %c0_123] : memref<16x256xf32, #tpu.memory_space<vmem>>, vector<16x256xf32>
      tpu.vector_store %arg15[%c0_122, %c0_123], %285 {strides = array<i32>} : memref<16x256xf32, #tpu.memory_space<vmem>>, vector<16x256xf32>,
    } else {
    }
    %c0 = arith.constant 0 : index
    %c0_1 = arith.constant 0 : index
    %3 = vector.load %arg15[%c0, %c0_1] : memref<16x256xf32, #tpu.memory_space<vmem>>, vector<16x256xf32>
    %4 = arith.truncf %3 : vector<16x256xf32> to vector<16x256xbf16>
    %c0_2 = arith.constant 0 : index
    %c0_3 = arith.constant 0 : index
    %c0_4 = arith.constant 0 : index
    %5 = vector.load %arg2[%c0_2, %c0_3, %c0_4] : memref<1x256x768xbf16, #tpu.memory_space<vmem>>, vector<1x256x768xbf16>
    %6 = vector.shape_cast %5 : vector<1x256x768xbf16> to vector<256x768xbf16>
    %cst = arith.constant dense<0.000000e+00> : vector<16x768xf32>
    %7 = tpu.matmul %4, %6, %cst {dimension_numbers = #tpu.dot_dimension_numbers<[1], [0], [0], [1], [0, 0, 1, 1], [], []>} : vector<16x256xbf16>, vector<256x768xbf16>, vector<16x768xf32> -> vector<16x768xf32>
    %c0_5 = arith.constant 0 : index
    %c0_6 = arith.constant 0 : index
    %c0_7 = arith.constant 0 : index
    %8 = vector.load %arg3[%c0_5, %c0_6, %c0_7] : memref<1x1x768xf32, #tpu.memory_space<vmem>>, vector<1x1x768xf32>
    %9 = vector.shape_cast %8 : vector<1x1x768xf32> to vector<1x768xf32>
    %10 = vector.broadcast %9 : vector<1x768xf32> to vector<16x768xf32>
    %11 = arith.addf %7, %10 : vector<16x768xf32>
    %12 = vector.extract_strided_slice %11 {offsets = [0, 0], sizes = [16, 256], strides = [1, 1]} : vector<16x768xf32> to vector<16x256xf32>
    %13 = vector.shape_cast %12 : vector<16x256xf32> to vector<2x8x256xf32>
    %14 = vector.extract_strided_slice %11 {offsets = [0, 256], sizes = [16, 256], strides = [1, 1]} : vector<16x768xf32> to vector<16x256xf32>
    %15 = vector.shape_cast %14 : vector<16x256xf32> to vector<2x8x256xf32>
    %16 = vector.extract_strided_slice %11 {offsets = [0, 512], sizes = [16, 256], strides = [1, 1]} : vector<16x768xf32> to vector<16x256xf32>
    %17 = vector.shape_cast %16 : vector<16x256xf32> to vector<2x8x256xf32>
    %cst_8 = arith.constant 0.000000e+00 : f32
    %18 = vector.broadcast %cst_8 : f32 to vector<16x256xf32>
    %19 = vector.extract_strided_slice %13 {offsets = [0, 0, 0], sizes = [2, 8, 32], strides = [1, 1, 1]} : vector<2x8x256xf32> to vector<2x8x32xf32>
    %20 = vector.extract_strided_slice %15 {offsets = [0, 0, 0], sizes = [2, 8, 32], strides = [1, 1, 1]} : vector<2x8x256xf32> to vector<2x8x32xf32>
    %21 = vector.extract_strided_slice %17 {offsets = [0, 0, 0], sizes = [2, 8, 32], strides = [1, 1, 1]} : vector<2x8x256xf32> to vector<2x8x32xf32>
    "tpu.trace_start"() <{level = 10 : i32, message = "bqd,bkd->bqk"}> : () -> ()
    %cst_9 = arith.constant dense<0.000000e+00> : vector<2x8x8xf32>
    %22 = tpu.matmul %19, %20, %cst_9 {dimension_numbers = #tpu.dot_dimension_numbers<[2], [2], [1], [1], [0, 0, 0, 1, 1, 1], [0], [0]>} : vector<2x8x32xf32>, vector<2x8x32xf32>, vector<2x8x8xf32> -> vector<2x8x8xf32>
    "tpu.trace_stop"() : () -> ()
    %cst_10 = arith.constant 0.176776692 : f32
    %23 = vector.broadcast %cst_10 : f32 to vector<2x8x8xf32>
    %24 = arith.mulf %22, %23 : vector<2x8x8xf32>
    %cst_11 = arith.constant dense<0xFF800000> : vector<2x8xf32>
    %25 = vector.multi_reduction <maximumf>, %24, %cst_11 [2] : vector<2x8x8xf32> to vector<2x8xf32>
    %26 = vector.shape_cast %25 : vector<2x8xf32> to vector<2x8x1xf32>
    %27 = vector.broadcast %26 : vector<2x8x1xf32> to vector<2x8x8xf32>
    %28 = arith.subf %24, %27 : vector<2x8x8xf32>
    %29 = math.exp %28 : vector<2x8x8xf32>
    %cst_12 = arith.constant dense<0.000000e+00> : vector<2x8xf32>
    %30 = vector.multi_reduction <add>, %29, %cst_12 [2] : vector<2x8x8xf32> to vector<2x8xf32>
    %31 = vector.shape_cast %30 : vector<2x8xf32> to vector<2x8x1xf32>
    %32 = tpu.reciprocal %31 {approx = true} : vector<2x8x1xf32> -> vector<2x8x1xf32>
    %33 = vector.broadcast %32 : vector<2x8x1xf32> to vector<2x8x8xf32>
    %34 = arith.mulf %29, %33 : vector<2x8x8xf32>
    "tpu.trace_start"() <{level = 10 : i32, message = "bqk,bkd->bqd"}> : () -> ()
    %cst_13 = arith.constant dense<0.000000e+00> : vector<2x8x32xf32>
    %35 = tpu.matmul %34, %21, %cst_13 {dimension_numbers = #tpu.dot_dimension_numbers<[2], [1], [1], [2], [0, 0, 0, 1, 1, 2], [0], [0]>} : vector<2x8x8xf32>, vector<2x8x32xf32>, vector<2x8x32xf32> -> vector<2x8x32xf32>
    "tpu.trace_stop"() : () -> ()
    %36 = vector.shape_cast %35 : vector<2x8x32xf32> to vector<16x32xf32>
    %37 = arith.truncf %36 : vector<16x32xf32> to vector<16x32xbf16>
    %c0_14 = arith.constant 0 : index
    %c0_15 = arith.constant 0 : index
    %c0_16 = arith.constant 0 : index
    %38 = vector.load %arg4[%c0_14, %c0_15, %c0_16] : memref<1x256x256xbf16, #tpu.memory_space<vmem>>, vector<1x32x256xbf16>
    %39 = vector.shape_cast %38 : vector<1x32x256xbf16> to vector<32x256xbf16>
    %cst_17 = arith.constant dense<0.000000e+00> : vector<16x256xf32>
    %40 = tpu.matmul %37, %39, %cst_17 {dimension_numbers = #tpu.dot_dimension_numbers<[1], [0], [0], [1], [0, 0, 1, 1], [], []>} : vector<16x32xbf16>, vector<32x256xbf16>, vector<16x256xf32> -> vector<16x256xf32>
    %41 = arith.addf %18, %40 : vector<16x256xf32>
    %42 = vector.extract_strided_slice %13 {offsets = [0, 0, 32], sizes = [2, 8, 32], strides = [1, 1, 1]} : vector<2x8x256xf32> to vector<2x8x32xf32>
    %43 = vector.extract_strided_slice %15 {offsets = [0, 0, 32], sizes = [2, 8, 32], strides = [1, 1, 1]} : vector<2x8x256xf32> to vector<2x8x32xf32>
    %44 = vector.extract_strided_slice %17 {offsets = [0, 0, 32], sizes = [2, 8, 32], strides = [1, 1, 1]} : vector<2x8x256xf32> to vector<2x8x32xf32>
    "tpu.trace_start"() <{level = 10 : i32, message = "bqd,bkd->bqk"}> : () -> ()
    %cst_18 = arith.constant dense<0.000000e+00> : vector<2x8x8xf32>
    %45 = tpu.matmul %42, %43, %cst_18 {dimension_numbers = #tpu.dot_dimension_numbers<[2], [2], [1], [1], [0, 0, 0, 1, 1, 1], [0], [0]>} : vector<2x8x32xf32>, vector<2x8x32xf32>, vector<2x8x8xf32> -> vector<2x8x8xf32>
    "tpu.trace_stop"() : () -> ()
    %cst_19 = arith.constant 0.176776692 : f32
    %46 = vector.broadcast %cst_19 : f32 to vector<2x8x8xf32>
    %47 = arith.mulf %45, %46 : vector<2x8x8xf32>
    %cst_20 = arith.constant dense<0xFF800000> : vector<2x8xf32>
    %48 = vector.multi_reduction <maximumf>, %47, %cst_20 [2] : vector<2x8x8xf32> to vector<2x8xf32>
    %49 = vector.shape_cast %48 : vector<2x8xf32> to vector<2x8x1xf32>
    %50 = vector.broadcast %49 : vector<2x8x1xf32> to vector<2x8x8xf32>
    %51 = arith.subf %47, %50 : vector<2x8x8xf32>
    %52 = math.exp %51 : vector<2x8x8xf32>
    %cst_21 = arith.constant dense<0.000000e+00> : vector<2x8xf32>
    %53 = vector.multi_reduction <add>, %52, %cst_21 [2] : vector<2x8x8xf32> to vector<2x8xf32>
    %54 = vector.shape_cast %53 : vector<2x8xf32> to vector<2x8x1xf32>
    %55 = tpu.reciprocal %54 {approx = true} : vector<2x8x1xf32> -> vector<2x8x1xf32>
    %56 = vector.broadcast %55 : vector<2x8x1xf32> to vector<2x8x8xf32>
    %57 = arith.mulf %52, %56 : vector<2x8x8xf32>
    "tpu.trace_start"() <{level = 10 : i32, message = "bqk,bkd->bqd"}> : () -> ()
    %cst_22 = arith.constant dense<0.000000e+00> : vector<2x8x32xf32>
    %58 = tpu.matmul %57, %44, %cst_22 {dimension_numbers = #tpu.dot_dimension_numbers<[2], [1], [1], [2], [0, 0, 0, 1, 1, 2], [0], [0]>} : vector<2x8x8xf32>, vector<2x8x32xf32>, vector<2x8x32xf32> -> vector<2x8x32xf32>
    "tpu.trace_stop"() : () -> ()
    %59 = vector.shape_cast %58 : vector<2x8x32xf32> to vector<16x32xf32>
    %60 = arith.truncf %59 : vector<16x32xf32> to vector<16x32xbf16>
    %c0_23 = arith.constant 0 : index
    %c32 = arith.constant 32 : index
    %c0_24 = arith.constant 0 : index
    %61 = vector.load %arg4[%c0_23, %c32, %c0_24] : memref<1x256x256xbf16, #tpu.memory_space<vmem>>, vector<1x32x256xbf16>
    %62 = vector.shape_cast %61 : vector<1x32x256xbf16> to vector<32x256xbf16>
    %cst_25 = arith.constant dense<0.000000e+00> : vector<16x256xf32>
    %63 = tpu.matmul %60, %62, %cst_25 {dimension_numbers = #tpu.dot_dimension_numbers<[1], [0], [0], [1], [0, 0, 1, 1], [], []>} : vector<16x32xbf16>, vector<32x256xbf16>, vector<16x256xf32> -> vector<16x256xf32>
    %64 = arith.addf %41, %63 : vector<16x256xf32>
    %65 = vector.extract_strided_slice %13 {offsets = [0, 0, 64], sizes = [2, 8, 32], strides = [1, 1, 1]} : vector<2x8x256xf32> to vector<2x8x32xf32>
    %66 = vector.extract_strided_slice %15 {offsets = [0, 0, 64], sizes = [2, 8, 32], strides = [1, 1, 1]} : vector<2x8x256xf32> to vector<2x8x32xf32>
    %67 = vector.extract_strided_slice %17 {offsets = [0, 0, 64], sizes = [2, 8, 32], strides = [1, 1, 1]} : vector<2x8x256xf32> to vector<2x8x32xf32>
    "tpu.trace_start"() <{level = 10 : i32, message = "bqd,bkd->bqk"}> : () -> ()
    %cst_26 = arith.constant dense<0.000000e+00> : vector<2x8x8xf32>
    %68 = tpu.matmul %65, %66, %cst_26 {dimension_numbers = #tpu.dot_dimension_numbers<[2], [2], [1], [1], [0, 0, 0, 1, 1, 1], [0], [0]>} : vector<2x8x32xf32>, vector<2x8x32xf32>, vector<2x8x8xf32> -> vector<2x8x8xf32>
    "tpu.trace_stop"() : () -> ()
    %cst_27 = arith.constant 0.176776692 : f32
    %69 = vector.broadcast %cst_27 : f32 to vector<2x8x8xf32>
    %70 = arith.mulf %68, %69 : vector<2x8x8xf32>
    %cst_28 = arith.constant dense<0xFF800000> : vector<2x8xf32>
    %71 = vector.multi_reduction <maximumf>, %70, %cst_28 [2] : vector<2x8x8xf32> to vector<2x8xf32>
    %72 = vector.shape_cast %71 : vector<2x8xf32> to vector<2x8x1xf32>
    %73 = vector.broadcast %72 : vector<2x8x1xf32> to vector<2x8x8xf32>
    %74 = arith.subf %70, %73 : vector<2x8x8xf32>
    %75 = math.exp %74 : vector<2x8x8xf32>
    %cst_29 = arith.constant dense<0.000000e+00> : vector<2x8xf32>
    %76 = vector.multi_reduction <add>, %75, %cst_29 [2] : vector<2x8x8xf32> to vector<2x8xf32>
    %77 = vector.shape_cast %76 : vector<2x8xf32> to vector<2x8x1xf32>
    %78 = tpu.reciprocal %77 {approx = true} : vector<2x8x1xf32> -> vector<2x8x1xf32>
    %79 = vector.broadcast %78 : vector<2x8x1xf32> to vector<2x8x8xf32>
    %80 = arith.mulf %75, %79 : vector<2x8x8xf32>
    "tpu.trace_start"() <{level = 10 : i32, message = "bqk,bkd->bqd"}> : () -> ()
    %cst_30 = arith.constant dense<0.000000e+00> : vector<2x8x32xf32>
    %81 = tpu.matmul %80, %67, %cst_30 {dimension_numbers = #tpu.dot_dimension_numbers<[2], [1], [1], [2], [0, 0, 0, 1, 1, 2], [0], [0]>} : vector<2x8x8xf32>, vector<2x8x32xf32>, vector<2x8x32xf32> -> vector<2x8x32xf32>
    "tpu.trace_stop"() : () -> ()
    %82 = vector.shape_cast %81 : vector<2x8x32xf32> to vector<16x32xf32>
    %83 = arith.truncf %82 : vector<16x32xf32> to vector<16x32xbf16>
    %c0_31 = arith.constant 0 : index
    %c64 = arith.constant 64 : index
    %c0_32 = arith.constant 0 : index
    %84 = vector.load %arg4[%c0_31, %c64, %c0_32] : memref<1x256x256xbf16, #tpu.memory_space<vmem>>, vector<1x32x256xbf16>
    %85 = vector.shape_cast %84 : vector<1x32x256xbf16> to vector<32x256xbf16>
    %cst_33 = arith.constant dense<0.000000e+00> : vector<16x256xf32>
    %86 = tpu.matmul %83, %85, %cst_33 {dimension_numbers = #tpu.dot_dimension_numbers<[1], [0], [0], [1], [0, 0, 1, 1], [], []>} : vector<16x32xbf16>, vector<32x256xbf16>, vector<16x256xf32> -> vector<16x256xf32>
    %87 = arith.addf %64, %86 : vector<16x256xf32>
    %88 = vector.extract_strided_slice %13 {offsets = [0, 0, 96], sizes = [2, 8, 32], strides = [1, 1, 1]} : vector<2x8x256xf32> to vector<2x8x32xf32>
    %89 = vector.extract_strided_slice %15 {offsets = [0, 0, 96], sizes = [2, 8, 32], strides = [1, 1, 1]} : vector<2x8x256xf32> to vector<2x8x32xf32>
    %90 = vector.extract_strided_slice %17 {offsets = [0, 0, 96], sizes = [2, 8, 32], strides = [1, 1, 1]} : vector<2x8x256xf32> to vector<2x8x32xf32>
    "tpu.trace_start"() <{level = 10 : i32, message = "bqd,bkd->bqk"}> : () -> ()
    %cst_34 = arith.constant dense<0.000000e+00> : vector<2x8x8xf32>
    %91 = tpu.matmul %88, %89, %cst_34 {dimension_numbers = #tpu.dot_dimension_numbers<[2], [2], [1], [1], [0, 0, 0, 1, 1, 1], [0], [0]>} : vector<2x8x32xf32>, vector<2x8x32xf32>, vector<2x8x8xf32> -> vector<2x8x8xf32>
    "tpu.trace_stop"() : () -> ()
    %cst_35 = arith.constant 0.176776692 : f32
    %92 = vector.broadcast %cst_35 : f32 to vector<2x8x8xf32>
    %93 = arith.mulf %91, %92 : vector<2x8x8xf32>
    %cst_36 = arith.constant dense<0xFF800000> : vector<2x8xf32>
    %94 = vector.multi_reduction <maximumf>, %93, %cst_36 [2] : vector<2x8x8xf32> to vector<2x8xf32>
    %95 = vector.shape_cast %94 : vector<2x8xf32> to vector<2x8x1xf32>
    %96 = vector.broadcast %95 : vector<2x8x1xf32> to vector<2x8x8xf32>
    %97 = arith.subf %93, %96 : vector<2x8x8xf32>
    %98 = math.exp %97 : vector<2x8x8xf32>
    %cst_37 = arith.constant dense<0.000000e+00> : vector<2x8xf32>
    %99 = vector.multi_reduction <add>, %98, %cst_37 [2] : vector<2x8x8xf32> to vector<2x8xf32>
    %100 = vector.shape_cast %99 : vector<2x8xf32> to vector<2x8x1xf32>
    %101 = tpu.reciprocal %100 {approx = true} : vector<2x8x1xf32> -> vector<2x8x1xf32>
    %102 = vector.broadcast %101 : vector<2x8x1xf32> to vector<2x8x8xf32>
    %103 = arith.mulf %98, %102 : vector<2x8x8xf32>
    "tpu.trace_start"() <{level = 10 : i32, message = "bqk,bkd->bqd"}> : () -> ()
    %cst_38 = arith.constant dense<0.000000e+00> : vector<2x8x32xf32>
    %104 = tpu.matmul %103, %90, %cst_38 {dimension_numbers = #tpu.dot_dimension_numbers<[2], [1], [1], [2], [0, 0, 0, 1, 1, 2], [0], [0]>} : vector<2x8x8xf32>, vector<2x8x32xf32>, vector<2x8x32xf32> -> vector<2x8x32xf32>
    "tpu.trace_stop"() : () -> ()
    %105 = vector.shape_cast %104 : vector<2x8x32xf32> to vector<16x32xf32>
    %106 = arith.truncf %105 : vector<16x32xf32> to vector<16x32xbf16>
    %c0_39 = arith.constant 0 : index
    %c96 = arith.constant 96 : index
    %c0_40 = arith.constant 0 : index
    %107 = vector.load %arg4[%c0_39, %c96, %c0_40] : memref<1x256x256xbf16, #tpu.memory_space<vmem>>, vector<1x32x256xbf16>
    %108 = vector.shape_cast %107 : vector<1x32x256xbf16> to vector<32x256xbf16>
    %cst_41 = arith.constant dense<0.000000e+00> : vector<16x256xf32>
    %109 = tpu.matmul %106, %108, %cst_41 {dimension_numbers = #tpu.dot_dimension_numbers<[1], [0], [0], [1], [0, 0, 1, 1], [], []>} : vector<16x32xbf16>, vector<32x256xbf16>, vector<16x256xf32> -> vector<16x256xf32>
    %110 = arith.addf %87, %109 : vector<16x256xf32>
    %111 = vector.extract_strided_slice %13 {offsets = [0, 0, 128], sizes = [2, 8, 32], strides = [1, 1, 1]} : vector<2x8x256xf32> to vector<2x8x32xf32>
    %112 = vector.extract_strided_slice %15 {offsets = [0, 0, 128], sizes = [2, 8, 32], strides = [1, 1, 1]} : vector<2x8x256xf32> to vector<2x8x32xf32>
    %113 = vector.extract_strided_slice %17 {offsets = [0, 0, 128], sizes = [2, 8, 32], strides = [1, 1, 1]} : vector<2x8x256xf32> to vector<2x8x32xf32>
    "tpu.trace_start"() <{level = 10 : i32, message = "bqd,bkd->bqk"}> : () -> ()
    %cst_42 = arith.constant dense<0.000000e+00> : vector<2x8x8xf32>
    %114 = tpu.matmul %111, %112, %cst_42 {dimension_numbers = #tpu.dot_dimension_numbers<[2], [2], [1], [1], [0, 0, 0, 1, 1, 1], [0], [0]>} : vector<2x8x32xf32>, vector<2x8x32xf32>, vector<2x8x8xf32> -> vector<2x8x8xf32>
    "tpu.trace_stop"() : () -> ()
    %cst_43 = arith.constant 0.176776692 : f32
    %115 = vector.broadcast %cst_43 : f32 to vector<2x8x8xf32>
    %116 = arith.mulf %114, %115 : vector<2x8x8xf32>
    %cst_44 = arith.constant dense<0xFF800000> : vector<2x8xf32>
    %117 = vector.multi_reduction <maximumf>, %116, %cst_44 [2] : vector<2x8x8xf32> to vector<2x8xf32>
    %118 = vector.shape_cast %117 : vector<2x8xf32> to vector<2x8x1xf32>
    %119 = vector.broadcast %118 : vector<2x8x1xf32> to vector<2x8x8xf32>
    %120 = arith.subf %116, %119 : vector<2x8x8xf32>
    %121 = math.exp %120 : vector<2x8x8xf32>
    %cst_45 = arith.constant dense<0.000000e+00> : vector<2x8xf32>
    %122 = vector.multi_reduction <add>, %121, %cst_45 [2] : vector<2x8x8xf32> to vector<2x8xf32>
    %123 = vector.shape_cast %122 : vector<2x8xf32> to vector<2x8x1xf32>
    %124 = tpu.reciprocal %123 {approx = true} : vector<2x8x1xf32> -> vector<2x8x1xf32>
    %125 = vector.broadcast %124 : vector<2x8x1xf32> to vector<2x8x8xf32>
    %126 = arith.mulf %121, %125 : vector<2x8x8xf32>
    "tpu.trace_start"() <{level = 10 : i32, message = "bqk,bkd->bqd"}> : () -> ()
    %cst_46 = arith.constant dense<0.000000e+00> : vector<2x8x32xf32>
    %127 = tpu.matmul %126, %113, %cst_46 {dimension_numbers = #tpu.dot_dimension_numbers<[2], [1], [1], [2], [0, 0, 0, 1, 1, 2], [0], [0]>} : vector<2x8x8xf32>, vector<2x8x32xf32>, vector<2x8x32xf32> -> vector<2x8x32xf32>
    "tpu.trace_stop"() : () -> ()
    %128 = vector.shape_cast %127 : vector<2x8x32xf32> to vector<16x32xf32>
    %129 = arith.truncf %128 : vector<16x32xf32> to vector<16x32xbf16>
    %c0_47 = arith.constant 0 : index
    %c128 = arith.constant 128 : index
    %c0_48 = arith.constant 0 : index
    %130 = vector.load %arg4[%c0_47, %c128, %c0_48] : memref<1x256x256xbf16, #tpu.memory_space<vmem>>, vector<1x32x256xbf16>
    %131 = vector.shape_cast %130 : vector<1x32x256xbf16> to vector<32x256xbf16>
    %cst_49 = arith.constant dense<0.000000e+00> : vector<16x256xf32>
    %132 = tpu.matmul %129, %131, %cst_49 {dimension_numbers = #tpu.dot_dimension_numbers<[1], [0], [0], [1], [0, 0, 1, 1], [], []>} : vector<16x32xbf16>, vector<32x256xbf16>, vector<16x256xf32> -> vector<16x256xf32>
    %133 = arith.addf %110, %132 : vector<16x256xf32>
    %134 = vector.extract_strided_slice %13 {offsets = [0, 0, 160], sizes = [2, 8, 32], strides = [1, 1, 1]} : vector<2x8x256xf32> to vector<2x8x32xf32>
    %135 = vector.extract_strided_slice %15 {offsets = [0, 0, 160], sizes = [2, 8, 32], strides = [1, 1, 1]} : vector<2x8x256xf32> to vector<2x8x32xf32>
    %136 = vector.extract_strided_slice %17 {offsets = [0, 0, 160], sizes = [2, 8, 32], strides = [1, 1, 1]} : vector<2x8x256xf32> to vector<2x8x32xf32>
    "tpu.trace_start"() <{level = 10 : i32, message = "bqd,bkd->bqk"}> : () -> ()
    %cst_50 = arith.constant dense<0.000000e+00> : vector<2x8x8xf32>
    %137 = tpu.matmul %134, %135, %cst_50 {dimension_numbers = #tpu.dot_dimension_numbers<[2], [2], [1], [1], [0, 0, 0, 1, 1, 1], [0], [0]>} : vector<2x8x32xf32>, vector<2x8x32xf32>, vector<2x8x8xf32> -> vector<2x8x8xf32>
    "tpu.trace_stop"() : () -> ()
    %cst_51 = arith.constant 0.176776692 : f32
    %138 = vector.broadcast %cst_51 : f32 to vector<2x8x8xf32>
    %139 = arith.mulf %137, %138 : vector<2x8x8xf32>
    %cst_52 = arith.constant dense<0xFF800000> : vector<2x8xf32>
    %140 = vector.multi_reduction <maximumf>, %139, %cst_52 [2] : vector<2x8x8xf32> to vector<2x8xf32>
    %141 = vector.shape_cast %140 : vector<2x8xf32> to vector<2x8x1xf32>
    %142 = vector.broadcast %141 : vector<2x8x1xf32> to vector<2x8x8xf32>
    %143 = arith.subf %139, %142 : vector<2x8x8xf32>
    %144 = math.exp %143 : vector<2x8x8xf32>
    %cst_53 = arith.constant dense<0.000000e+00> : vector<2x8xf32>
    %145 = vector.multi_reduction <add>, %144, %cst_53 [2] : vector<2x8x8xf32> to vector<2x8xf32>
    %146 = vector.shape_cast %145 : vector<2x8xf32> to vector<2x8x1xf32>
    %147 = tpu.reciprocal %146 {approx = true} : vector<2x8x1xf32> -> vector<2x8x1xf32>
    %148 = vector.broadcast %147 : vector<2x8x1xf32> to vector<2x8x8xf32>
    %149 = arith.mulf %144, %148 : vector<2x8x8xf32>
    "tpu.trace_start"() <{level = 10 : i32, message = "bqk,bkd->bqd"}> : () -> ()
    %cst_54 = arith.constant dense<0.000000e+00> : vector<2x8x32xf32>
    %150 = tpu.matmul %149, %136, %cst_54 {dimension_numbers = #tpu.dot_dimension_numbers<[2], [1], [1], [2], [0, 0, 0, 1, 1, 2], [0], [0]>} : vector<2x8x8xf32>, vector<2x8x32xf32>, vector<2x8x32xf32> -> vector<2x8x32xf32>
    "tpu.trace_stop"() : () -> ()
    %151 = vector.shape_cast %150 : vector<2x8x32xf32> to vector<16x32xf32>
    %152 = arith.truncf %151 : vector<16x32xf32> to vector<16x32xbf16>
    %c0_55 = arith.constant 0 : index
    %c160 = arith.constant 160 : index
    %c0_56 = arith.constant 0 : index
    %153 = vector.load %arg4[%c0_55, %c160, %c0_56] : memref<1x256x256xbf16, #tpu.memory_space<vmem>>, vector<1x32x256xbf16>
    %154 = vector.shape_cast %153 : vector<1x32x256xbf16> to vector<32x256xbf16>
    %cst_57 = arith.constant dense<0.000000e+00> : vector<16x256xf32>
    %155 = tpu.matmul %152, %154, %cst_57 {dimension_numbers = #tpu.dot_dimension_numbers<[1], [0], [0], [1], [0, 0, 1, 1], [], []>} : vector<16x32xbf16>, vector<32x256xbf16>, vector<16x256xf32> -> vector<16x256xf32>
    %156 = arith.addf %133, %155 : vector<16x256xf32>
    %157 = vector.extract_strided_slice %13 {offsets = [0, 0, 192], sizes = [2, 8, 32], strides = [1, 1, 1]} : vector<2x8x256xf32> to vector<2x8x32xf32>
    %158 = vector.extract_strided_slice %15 {offsets = [0, 0, 192], sizes = [2, 8, 32], strides = [1, 1, 1]} : vector<2x8x256xf32> to vector<2x8x32xf32>
    %159 = vector.extract_strided_slice %17 {offsets = [0, 0, 192], sizes = [2, 8, 32], strides = [1, 1, 1]} : vector<2x8x256xf32> to vector<2x8x32xf32>
    "tpu.trace_start"() <{level = 10 : i32, message = "bqd,bkd->bqk"}> : () -> ()
    %cst_58 = arith.constant dense<0.000000e+00> : vector<2x8x8xf32>
    %160 = tpu.matmul %157, %158, %cst_58 {dimension_numbers = #tpu.dot_dimension_numbers<[2], [2], [1], [1], [0, 0, 0, 1, 1, 1], [0], [0]>} : vector<2x8x32xf32>, vector<2x8x32xf32>, vector<2x8x8xf32> -> vector<2x8x8xf32>
    "tpu.trace_stop"() : () -> ()
    %cst_59 = arith.constant 0.176776692 : f32
    %161 = vector.broadcast %cst_59 : f32 to vector<2x8x8xf32>
    %162 = arith.mulf %160, %161 : vector<2x8x8xf32>
    %cst_60 = arith.constant dense<0xFF800000> : vector<2x8xf32>
    %163 = vector.multi_reduction <maximumf>, %162, %cst_60 [2] : vector<2x8x8xf32> to vector<2x8xf32>
    %164 = vector.shape_cast %163 : vector<2x8xf32> to vector<2x8x1xf32>
    %165 = vector.broadcast %164 : vector<2x8x1xf32> to vector<2x8x8xf32>
    %166 = arith.subf %162, %165 : vector<2x8x8xf32>
    %167 = math.exp %166 : vector<2x8x8xf32>
    %cst_61 = arith.constant dense<0.000000e+00> : vector<2x8xf32>
    %168 = vector.multi_reduction <add>, %167, %cst_61 [2] : vector<2x8x8xf32> to vector<2x8xf32>
    %169 = vector.shape_cast %168 : vector<2x8xf32> to vector<2x8x1xf32>
    %170 = tpu.reciprocal %169 {approx = true} : vector<2x8x1xf32> -> vector<2x8x1xf32>
    %171 = vector.broadcast %170 : vector<2x8x1xf32> to vector<2x8x8xf32>
    %172 = arith.mulf %167, %171 : vector<2x8x8xf32>
    "tpu.trace_start"() <{level = 10 : i32, message = "bqk,bkd->bqd"}> : () -> ()
    %cst_62 = arith.constant dense<0.000000e+00> : vector<2x8x32xf32>
    %173 = tpu.matmul %172, %159, %cst_62 {dimension_numbers = #tpu.dot_dimension_numbers<[2], [1], [1], [2], [0, 0, 0, 1, 1, 2], [0], [0]>} : vector<2x8x8xf32>, vector<2x8x32xf32>, vector<2x8x32xf32> -> vector<2x8x32xf32>
    "tpu.trace_stop"() : () -> ()
    %174 = vector.shape_cast %173 : vector<2x8x32xf32> to vector<16x32xf32>
    %175 = arith.truncf %174 : vector<16x32xf32> to vector<16x32xbf16>
    %c0_63 = arith.constant 0 : index
    %c192 = arith.constant 192 : index
    %c0_64 = arith.constant 0 : index
    %176 = vector.load %arg4[%c0_63, %c192, %c0_64] : memref<1x256x256xbf16, #tpu.memory_space<vmem>>, vector<1x32x256xbf16>
    %177 = vector.shape_cast %176 : vector<1x32x256xbf16> to vector<32x256xbf16>
    %cst_65 = arith.constant dense<0.000000e+00> : vector<16x256xf32>
    %178 = tpu.matmul %175, %177, %cst_65 {dimension_numbers = #tpu.dot_dimension_numbers<[1], [0], [0], [1], [0, 0, 1, 1], [], []>} : vector<16x32xbf16>, vector<32x256xbf16>, vector<16x256xf32> -> vector<16x256xf32>
    %179 = arith.addf %156, %178 : vector<16x256xf32>
    %180 = vector.extract_strided_slice %13 {offsets = [0, 0, 224], sizes = [2, 8, 32], strides = [1, 1, 1]} : vector<2x8x256xf32> to vector<2x8x32xf32>
    %181 = vector.extract_strided_slice %15 {offsets = [0, 0, 224], sizes = [2, 8, 32], strides = [1, 1, 1]} : vector<2x8x256xf32> to vector<2x8x32xf32>
    %182 = vector.extract_strided_slice %17 {offsets = [0, 0, 224], sizes = [2, 8, 32], strides = [1, 1, 1]} : vector<2x8x256xf32> to vector<2x8x32xf32>
    "tpu.trace_start"() <{level = 10 : i32, message = "bqd,bkd->bqk"}> : () -> ()
    %cst_66 = arith.constant dense<0.000000e+00> : vector<2x8x8xf32>
    %183 = tpu.matmul %180, %181, %cst_66 {dimension_numbers = #tpu.dot_dimension_numbers<[2], [2], [1], [1], [0, 0, 0, 1, 1, 1], [0], [0]>} : vector<2x8x32xf32>, vector<2x8x32xf32>, vector<2x8x8xf32> -> vector<2x8x8xf32>
    "tpu.trace_stop"() : () -> ()
    %cst_67 = arith.constant 0.176776692 : f32
    %184 = vector.broadcast %cst_67 : f32 to vector<2x8x8xf32>
    %185 = arith.mulf %183, %184 : vector<2x8x8xf32>
    %cst_68 = arith.constant dense<0xFF800000> : vector<2x8xf32>
    %186 = vector.multi_reduction <maximumf>, %185, %cst_68 [2] : vector<2x8x8xf32> to vector<2x8xf32>
    %187 = vector.shape_cast %186 : vector<2x8xf32> to vector<2x8x1xf32>
    %188 = vector.broadcast %187 : vector<2x8x1xf32> to vector<2x8x8xf32>
    %189 = arith.subf %185, %188 : vector<2x8x8xf32>
    %190 = math.exp %189 : vector<2x8x8xf32>
    %cst_69 = arith.constant dense<0.000000e+00> : vector<2x8xf32>
    %191 = vector.multi_reduction <add>, %190, %cst_69 [2] : vector<2x8x8xf32> to vector<2x8xf32>
    %192 = vector.shape_cast %191 : vector<2x8xf32> to vector<2x8x1xf32>
    %193 = tpu.reciprocal %192 {approx = true} : vector<2x8x1xf32> -> vector<2x8x1xf32>
    %194 = vector.broadcast %193 : vector<2x8x1xf32> to vector<2x8x8xf32>
    %195 = arith.mulf %190, %194 : vector<2x8x8xf32>
    "tpu.trace_start"() <{level = 10 : i32, message = "bqk,bkd->bqd"}> : () -> ()
    %cst_70 = arith.constant dense<0.000000e+00> : vector<2x8x32xf32>
    %196 = tpu.matmul %195, %182, %cst_70 {dimension_numbers = #tpu.dot_dimension_numbers<[2], [1], [1], [2], [0, 0, 0, 1, 1, 2], [0], [0]>} : vector<2x8x8xf32>, vector<2x8x32xf32>, vector<2x8x32xf32> -> vector<2x8x32xf32>
    "tpu.trace_stop"() : () -> ()
    %197 = vector.shape_cast %196 : vector<2x8x32xf32> to vector<16x32xf32>
    %198 = arith.truncf %197 : vector<16x32xf32> to vector<16x32xbf16>
    %c0_71 = arith.constant 0 : index
    %c224 = arith.constant 224 : index
    %c0_72 = arith.constant 0 : index
    %199 = vector.load %arg4[%c0_71, %c224, %c0_72] : memref<1x256x256xbf16, #tpu.memory_space<vmem>>, vector<1x32x256xbf16>
    %200 = vector.shape_cast %199 : vector<1x32x256xbf16> to vector<32x256xbf16>
    %cst_73 = arith.constant dense<0.000000e+00> : vector<16x256xf32>
    %201 = tpu.matmul %198, %200, %cst_73 {dimension_numbers = #tpu.dot_dimension_numbers<[1], [0], [0], [1], [0, 0, 1, 1], [], []>} : vector<16x32xbf16>, vector<32x256xbf16>, vector<16x256xf32> -> vector<16x256xf32>
    %202 = arith.addf %179, %201 : vector<16x256xf32>
    %c0_74 = arith.constant 0 : index
    %c0_75 = arith.constant 0 : index
    %c0_76 = arith.constant 0 : index
    %203 = vector.load %arg5[%c0_74, %c0_75, %c0_76] : memref<1x1x256xf32, #tpu.memory_space<vmem>>, vector<1x1x256xf32>
    %204 = vector.shape_cast %203 : vector<1x1x256xf32> to vector<1x256xf32>
    %205 = vector.broadcast %204 : vector<1x256xf32> to vector<16x256xf32>
    %206 = arith.addf %202, %205 : vector<16x256xf32>
    %207 = arith.addf %3, %206 : vector<16x256xf32>
    %cst_77 = arith.constant dense<0.000000e+00> : vector<16xf32>
    %208 = vector.multi_reduction <add>, %207, %cst_77 [1] : vector<16x256xf32> to vector<16xf32>
    %209 = vector.shape_cast %208 : vector<16xf32> to vector<16x1xf32>
    %cst_78 = arith.constant 2.560000e+02 : f32
    %210 = vector.broadcast %cst_78 : f32 to vector<16x1xf32>
    %211 = arith.divf %209, %210 : vector<16x1xf32>
    %212 = vector.broadcast %211 : vector<16x1xf32> to vector<16x256xf32>
    %213 = arith.subf %207, %212 : vector<16x256xf32>
    %214 = arith.mulf %213, %213 : vector<16x256xf32>
    %cst_79 = arith.constant dense<0.000000e+00> : vector<16xf32>
    %215 = vector.multi_reduction <add>, %214, %cst_79 [1] : vector<16x256xf32> to vector<16xf32>
    %216 = vector.shape_cast %215 : vector<16xf32> to vector<16x1xf32>
    %cst_80 = arith.constant 2.560000e+02 : f32
    %217 = vector.broadcast %cst_80 : f32 to vector<16x1xf32>
    %218 = arith.divf %216, %217 : vector<16x1xf32>
    %219 = vector.broadcast %211 : vector<16x1xf32> to vector<16x256xf32>
    %220 = arith.subf %207, %219 : vector<16x256xf32>
    %cst_81 = arith.constant 9.99999974E-6 : f32
    %221 = vector.broadcast %cst_81 : f32 to vector<16x1xf32>
    %222 = arith.addf %218, %221 : vector<16x1xf32>
    %223 = math.rsqrt %222 : vector<16x1xf32>
    %224 = vector.broadcast %223 : vector<16x1xf32> to vector<16x256xf32>
    %225 = arith.mulf %220, %224 : vector<16x256xf32>
    %c0_82 = arith.constant 0 : index
    %c0_83 = arith.constant 0 : index
    %c0_84 = arith.constant 0 : index
    %226 = vector.load %arg6[%c0_82, %c0_83, %c0_84] : memref<1x1x256xf32, #tpu.memory_space<vmem>>, vector<1x1x256xf32>
    %227 = vector.shape_cast %226 : vector<1x1x256xf32> to vector<1x256xf32>
    %228 = vector.broadcast %227 : vector<1x256xf32> to vector<16x256xf32>
    %229 = arith.mulf %225, %228 : vector<16x256xf32>
    %c0_85 = arith.constant 0 : index
    %c0_86 = arith.constant 0 : index
    %c0_87 = arith.constant 0 : index
    %230 = vector.load %arg7[%c0_85, %c0_86, %c0_87] : memref<1x1x256xf32, #tpu.memory_space<vmem>>, vector<1x1x256xf32>
    %231 = vector.shape_cast %230 : vector<1x1x256xf32> to vector<1x256xf32>
    %232 = vector.broadcast %231 : vector<1x256xf32> to vector<16x256xf32>
    %233 = arith.addf %229, %232 : vector<16x256xf32>
    %234 = arith.truncf %233 : vector<16x256xf32> to vector<16x256xbf16>
    %c0_88 = arith.constant 0 : index
    %c0_89 = arith.constant 0 : index
    %c0_90 = arith.constant 0 : index
    %235 = vector.load %arg8[%c0_88, %c0_89, %c0_90] : memref<1x256x2048xbf16, #tpu.memory_space<vmem>>, vector<1x256x2048xbf16>
    %236 = vector.shape_cast %235 : vector<1x256x2048xbf16> to vector<256x2048xbf16>
    %cst_91 = arith.constant dense<0.000000e+00> : vector<16x2048xf32>
    %237 = tpu.matmul %234, %236, %cst_91 {dimension_numbers = #tpu.dot_dimension_numbers<[1], [0], [0], [1], [0, 0, 1, 1], [], []>} : vector<16x256xbf16>, vector<256x2048xbf16>, vector<16x2048xf32> -> vector<16x2048xf32>
    %c0_92 = arith.constant 0 : index
    %c0_93 = arith.constant 0 : index
    %c0_94 = arith.constant 0 : index
    %238 = vector.load %arg9[%c0_92, %c0_93, %c0_94] : memref<1x1x2048xf32, #tpu.memory_space<vmem>>, vector<1x1x2048xf32>
    %239 = vector.shape_cast %238 : vector<1x1x2048xf32> to vector<1x2048xf32>
    %240 = vector.broadcast %239 : vector<1x2048xf32> to vector<16x2048xf32>
    %241 = arith.addf %237, %240 : vector<16x2048xf32>
    %cst_95 = arith.constant 0.000000e+00 : f32
    %242 = vector.broadcast %cst_95 : f32 to vector<16x2048xf32>
    %243 = arith.maximumf %241, %242 : vector<16x2048xf32>
    %244 = arith.truncf %243 : vector<16x2048xf32> to vector<16x2048xbf16>
    %c0_96 = arith.constant 0 : index
    %c0_97 = arith.constant 0 : index
    %c0_98 = arith.constant 0 : index
    %245 = vector.load %arg10[%c0_96, %c0_97, %c0_98] : memref<1x2048x256xbf16, #tpu.memory_space<vmem>>, vector<1x2048x256xbf16>
    %246 = vector.shape_cast %245 : vector<1x2048x256xbf16> to vector<2048x256xbf16>
    %cst_99 = arith.constant dense<0.000000e+00> : vector<16x256xf32>
    %247 = tpu.matmul %244, %246, %cst_99 {dimension_numbers = #tpu.dot_dimension_numbers<[1], [0], [0], [1], [0, 0, 1, 1], [], []>} : vector<16x2048xbf16>, vector<2048x256xbf16>, vector<16x256xf32> -> vector<16x256xf32>
    %c0_100 = arith.constant 0 : index
    %c0_101 = arith.constant 0 : index
    %c0_102 = arith.constant 0 : index
    %248 = vector.load %arg11[%c0_100, %c0_101, %c0_102] : memref<1x1x256xf32, #tpu.memory_space<vmem>>, vector<1x1x256xf32>
    %249 = vector.shape_cast %248 : vector<1x1x256xf32> to vector<1x256xf32>
    %250 = vector.broadcast %249 : vector<1x256xf32> to vector<16x256xf32>
    %251 = arith.addf %247, %250 : vector<16x256xf32>
    %252 = arith.addf %233, %251 : vector<16x256xf32>
    %cst_103 = arith.constant dense<0.000000e+00> : vector<16xf32>
    %253 = vector.multi_reduction <add>, %252, %cst_103 [1] : vector<16x256xf32> to vector<16xf32>
    %254 = vector.shape_cast %253 : vector<16xf32> to vector<16x1xf32>
    %cst_104 = arith.constant 2.560000e+02 : f32
    %255 = vector.broadcast %cst_104 : f32 to vector<16x1xf32>
    %256 = arith.divf %254, %255 : vector<16x1xf32>
    %257 = vector.broadcast %256 : vector<16x1xf32> to vector<16x256xf32>
    %258 = arith.subf %252, %257 : vector<16x256xf32>
    %259 = arith.mulf %258, %258 : vector<16x256xf32>
    %cst_105 = arith.constant dense<0.000000e+00> : vector<16xf32>
    %260 = vector.multi_reduction <add>, %259, %cst_105 [1] : vector<16x256xf32> to vector<16xf32>
    %261 = vector.shape_cast %260 : vector<16xf32> to vector<16x1xf32>
    %cst_106 = arith.constant 2.560000e+02 : f32
    %262 = vector.broadcast %cst_106 : f32 to vector<16x1xf32>
    %263 = arith.divf %261, %262 : vector<16x1xf32>
    %264 = vector.broadcast %256 : vector<16x1xf32> to vector<16x256xf32>
    %265 = arith.subf %252, %264 : vector<16x256xf32>
    %cst_107 = arith.constant 9.99999974E-6 : f32
    %266 = vector.broadcast %cst_107 : f32 to vector<16x1xf32>
    %267 = arith.addf %263, %266 : vector<16x1xf32>
    %268 = math.rsqrt %267 : vector<16x1xf32>
    %269 = vector.broadcast %268 : vector<16x1xf32> to vector<16x256xf32>
    %270 = arith.mulf %265, %269 : vector<16x256xf32>
    %c0_108 = arith.constant 0 : index
    %c0_109 = arith.constant 0 : index
    %c0_110 = arith.constant 0 : index
    %271 = vector.load %arg12[%c0_108, %c0_109, %c0_110] : memref<1x1x256xf32, #tpu.memory_space<vmem>>, vector<1x1x256xf32>
    %272 = vector.shape_cast %271 : vector<1x1x256xf32> to vector<1x256xf32>
    %273 = vector.broadcast %272 : vector<1x256xf32> to vector<16x256xf32>
    %274 = arith.mulf %270, %273 : vector<16x256xf32>
    %c0_111 = arith.constant 0 : index
    %c0_112 = arith.constant 0 : index
    %c0_113 = arith.constant 0 : index
    %275 = vector.load %arg13[%c0_111, %c0_112, %c0_113] : memref<1x1x256xf32, #tpu.memory_space<vmem>>, vector<1x1x256xf32>
    %276 = vector.shape_cast %275 : vector<1x1x256xf32> to vector<1x256xf32>
    %277 = vector.broadcast %276 : vector<1x256xf32> to vector<16x256xf32>
    %278 = arith.addf %274, %277 : vector<16x256xf32>
    %c0_114 = arith.constant 0 : index
    %c0_115 = arith.constant 0 : index
    %279 = vector.load %arg15[%c0_114, %c0_115] : memref<16x256xf32, #tpu.memory_space<vmem>>, vector<16x256xf32>
    tpu.vector_store %arg15[%c0_114, %c0_115], %278 {strides = array<i32>} : memref<16x256xf32, #tpu.memory_space<vmem>>, vector<16x256xf32>,
    %280 = vector.shape_cast %278 : vector<16x256xf32> to vector<2x8x256xf32>
    %cst_116 = arith.constant dense<0.000000e+00> : vector<2x256xf32>
    %281 = vector.multi_reduction <add>, %280, %cst_116 [1] : vector<2x8x256xf32> to vector<2x256xf32>
    %cst_117 = arith.constant 8.000000e+00 : f32
    %282 = vector.broadcast %cst_117 : f32 to vector<2x256xf32>
    %283 = arith.divf %281, %282 : vector<2x256xf32>
    %c0_118 = arith.constant 0 : index
    %c0_119 = arith.constant 0 : index
    %284 = vector.load %arg14[%c0_118, %c0_119] : memref<2x256xf32, #tpu.memory_space<vmem>>, vector<2x256xf32>
    tpu.vector_store %arg14[%c0_118, %c0_119], %283 {strides = array<i32>} : memref<2x256xf32, #tpu.memory_space<vmem>>, vector<2x256xf32>,
    return
  }
  func.func @transform_0(%arg0: i32) -> (i32, i32) {
    %c0_i32 = arith.constant 0 : i32
    %c0_i32_0 = arith.constant 0 : i32
    %c0_i32_1 = arith.constant 0 : i32
    return %c0_i32, %c0_i32_0 : i32, i32
  }
  func.func @transform_1(%arg0: i32) -> (i32, i32, i32) {
    %c0_i32 = arith.constant 0 : i32
    %c0_i32_0 = arith.constant 0 : i32
    %c0_i32_1 = arith.constant 0 : i32
    return %arg0, %c0_i32, %c0_i32_0 : i32, i32, i32
  }
  func.func @transform_2(%arg0: i32) -> (i32, i32, i32) {
    %c0_i32 = arith.constant 0 : i32
    %c0_i32_0 = arith.constant 0 : i32
    %c0_i32_1 = arith.constant 0 : i32
    return %arg0, %c0_i32, %c0_i32_0 : i32, i32, i32
  }
  func.func @transform_3(%arg0: i32) -> (i32, i32, i32) {
    %c0_i32 = arith.constant 0 : i32
    %c0_i32_0 = arith.constant 0 : i32
    %c0_i32_1 = arith.constant 0 : i32
    return %arg0, %c0_i32, %c0_i32_0 : i32, i32, i32
  }
  func.func @transform_4(%arg0: i32) -> (i32, i32, i32) {
    %c0_i32 = arith.constant 0 : i32
    %c0_i32_0 = arith.constant 0 : i32
    %c0_i32_1 = arith.constant 0 : i32
    return %arg0, %c0_i32, %c0_i32_0 : i32, i32, i32
  }
  func.func @transform_5(%arg0: i32) -> (i32, i32, i32) {
    %c0_i32 = arith.constant 0 : i32
    %c0_i32_0 = arith.constant 0 : i32
    %c0_i32_1 = arith.constant 0 : i32
    return %arg0, %c0_i32, %c0_i32_0 : i32, i32, i32
  }
  func.func @transform_6(%arg0: i32) -> (i32, i32, i32) {
    %c0_i32 = arith.constant 0 : i32
    %c0_i32_0 = arith.constant 0 : i32
    %c0_i32_1 = arith.constant 0 : i32
    return %arg0, %c0_i32, %c0_i32_0 : i32, i32, i32
  }
  func.func @transform_7(%arg0: i32) -> (i32, i32, i32) {
    %c0_i32 = arith.constant 0 : i32
    %c0_i32_0 = arith.constant 0 : i32
    %c0_i32_1 = arith.constant 0 : i32
    return %arg0, %c0_i32, %c0_i32_0 : i32, i32, i32
  }
  func.func @transform_8(%arg0: i32) -> (i32, i32, i32) {
    %c0_i32 = arith.constant 0 : i32
    %c0_i32_0 = arith.constant 0 : i32
    %c0_i32_1 = arith.constant 0 : i32
    return %arg0, %c0_i32, %c0_i32_0 : i32, i32, i32
  }
  func.func @transform_9(%arg0: i32) -> (i32, i32, i32) {
    %c0_i32 = arith.constant 0 : i32
    %c0_i32_0 = arith.constant 0 : i32
    %c0_i32_1 = arith.constant 0 : i32
    return %arg0, %c0_i32, %c0_i32_0 : i32, i32, i32
  }
  func.func @transform_10(%arg0: i32) -> (i32, i32, i32) {
    %c0_i32 = arith.constant 0 : i32
    %c0_i32_0 = arith.constant 0 : i32
    %c0_i32_1 = arith.constant 0 : i32
    return %arg0, %c0_i32, %c0_i32_0 : i32, i32, i32
  }
  func.func @transform_11(%arg0: i32) -> (i32, i32, i32) {
    %c0_i32 = arith.constant 0 : i32
    %c0_i32_0 = arith.constant 0 : i32
    %c0_i32_1 = arith.constant 0 : i32
    return %arg0, %c0_i32, %c0_i32_0 : i32, i32, i32
  }
  func.func @transform_12(%arg0: i32) -> (i32, i32, i32) {
    %c0_i32 = arith.constant 0 : i32
    %c0_i32_0 = arith.constant 0 : i32
    %c0_i32_1 = arith.constant 0 : i32
    return %arg0, %c0_i32, %c0_i32_0 : i32, i32, i32
  }
  func.func @transform_13(%arg0: i32) -> (i32, i32) {
    %c0_i32 = arith.constant 0 : i32
    %c0_i32_0 = arith.constant 0 : i32
    %c0_i32_1 = arith.constant 0 : i32
    return %c0_i32, %c0_i32_0 : i32, i32
  }
}

</mosaic_0001>

<bundles_post_ra>
// kernel: text_encoder_forward.1
= control target key start
LH: loop header
LB: loop body
LE: loop exit
PB: predicated region body
PF: predicated region fallthrough
CT: control target
= control target key end

     0   :  { %s13381_s0 = inlined_call_operand.vmem [shape: f32[16,256], index: 0, kind: input, shape index: {}]   ;;  %s13382_s1 = inlined_call_operand.hbm [shape: bf16[6,256,768], index: 1, kind: input, shape index: {}]   ;;  %s13383_s2 = inlined_call_operand.hbm [shape: f32[6,1,768], index: 2, kind: input, shape index: {}]   ;;  %s13384_s3 = inlined_call_operand.hbm [shape: bf16[6,256,256], index: 3, kind: input, shape index: {}]   ;;  %s13385_s4 = inlined_call_operand.hbm [shape: f32[6,1,256], index: 4, kind: input, shape index: {}]   ;;  %s13386_s5 = inlined_call_operand.hbm [shape: f32[6,1,256], index: 5, kind: input, shape index: {}]   ;;  %s13387_s6 = inlined_call_operand.hbm [shape: f32[6,1,256], index: 6, kind: input, shape index: {}]   ;;  %s13388_s7 = inlined_call_operand.hbm [shape: bf16[6,256,2048], index: 7, kind: input, shape index: {}]   ;;  %s13389_s8 = inlined_call_operand.hbm [shape: f32[6,1,2048], index: 8, kind: input, shape index: {}]   ;;  %s13390_s9 = inlined_call_operand.hbm [shape: bf16[6,2048,256], index: 9, kind: input, shape index: {}]   ;;  %s13391_s10 = inlined_call_operand.hbm [shape: f32[6,1,256], index: 10, kind: input, shape index: {}]   ;;  %s13392_s11 = inlined_call_operand.hbm [shape: f32[6,1,256], index: 11, kind: input, shape index: {}]   ;;  %s13393_s12 = inlined_call_operand.hbm [shape: f32[6,1,256], index: 12, kind: input, shape index: {}]   ;;  %s13394_s13 = inlined_call_operand.hbm [shape: f32[2,256], index: 13, kind: output, shape index: {}]  }
   0x1   :  { %13414 = sst [smem:[#allocation37_spill]] %s13381_s0 }
   0x2   :  { %13415 = sst [smem:[#allocation38_spill]] %s13382_s1 }
   0x3   :  { %13416 = sst [smem:[#allocation39_spill]] %s13383_s2 }
   0x4   :  { %13417 = sst [smem:[#allocation40_spill]] %s13384_s3 }
   0x5   :  { %13418 = sst [smem:[#allocation41_spill]] %s13385_s4 }
   0x6   :  { %13419 = sst [smem:[#allocation42_spill]] %s13387_s6 }
   0x7   :  { %13420 = sst [smem:[#allocation43_spill]] %s13394_s13 }
   0x8   :  { %18 = vsyncpa [#allocation4], 0 }
   0x9   :  { %20 = vsyncpa [#allocation4 + $0x1], 0 }
   0xa   :  { %21 = vsyncpa [#allocation7], 0 }
   0xb   :  { %23 = vsyncpa [#allocation7 + $0x1], 0 }
   0xc   :  { %24 = vsyncpa [#allocation10], 0 }
   0xd   :  { %26 = vsyncpa [#allocation10 + $0x1], 0 }
   0xe   :  { %27 = vsyncpa [#allocation13], 0 }
   0xf   :  { %29 = vsyncpa [#allocation13 + $0x1], 0 }
  0x10   :  { %30 = vsyncpa [#allocation16], 0 }
  0x11   :  { %32 = vsyncpa [#allocation16 + $0x1], 0 }
  0x12   :  { %33 = vsyncpa [#allocation19], 0 }
  0x13   :  { %35 = vsyncpa [#allocation19 + $0x1], 0 }
  0x14   :  { %36 = vsyncpa [#allocation22], 0 }
  0x15   :  { %38 = vsyncpa [#allocation22 + $0x1], 0 }
  0x16   :  { %39 = vsyncpa [#allocation5], 0  ;;  %s11628_s25 = smov 0   ;;  %s11630_s26 = smov 0  }
  0x17   :  { %s11632_s27 = smov 0   ;;  %s11634_s28 = smov 0  }
  0x18 LB: > { %13421 = sst [smem:[#allocation32_spill]] %s11526_s27  ;;  %s11647_s29 = sadd.s32 4294967295, %s11530_s28   ;;  %s11530_s28 = sphi %s11634_s28, %s13462_s28   ;;  %s11526_s27 = sphi %s11632_s27, %s13464_s27   ;;  %s11522_s26 = sphi %s11630_s26, %s13466_s26   ;;  %s11518_s25 = sphi %s11628_s25, %s13465_s25  }
  0x19   : > { %13422 = sst [smem:[#allocation33_spill]] %s11647_s29  ;;  %s11650_s30 = sadd.s32 1, %s11530_s28  }
  0x1a   : > { %13423 = sst [smem:[#allocation34_spill]] %s11650_s30  ;;  %s70_s14 = ssub.s32 %s11530_s28, %s11650_s30 }
  0x1b   : > { %s73_s15 = sadd.s32 1, %s11526_s27  ;;  %p71_p0 = scmp.eq.s32.totalorder %s70_s14, 0 }
  0x1c   : > { %p80_p1 = scmp.ne.s32.totalorder %s11526_s27, %s11522_s26  ;;  %p81_p2 = scmp.eq.s32.totalorder %s11530_s28, 0 }
  0x1d   : > { %p86_p3 = scmp.ne.s32.totalorder %s11522_s26, %s11518_s25  ;;  %p87_p5 = scmp.eq.s32.totalorder %s11647_s29, 0 }
  0x1e   : > { %s11660_s16 = scalar_select %p71_p0, %s11526_s27, %s73_s15  }
  0x1f   : > { %p82_p4 = por %p81_p2, %p80_p1  ;;  %p10380_p6 = scmp.lt.s32.totalorder %s11530_s28, 6 }
  0x20   : > { %13424 = sst [smem:[#allocation35_spill]] %s11660_s16  ;;  %p11664_p7 = por %p87_p5, %p86_p3 }
  0x21   : > { %s11669_s18 = sand.u32 1, %s11526_s27   ;;  %p11671_p8 = pnand %p10380_p6, %p82_p4 }
  0x22   : > { %s13425_s17 = scalar_select %p11664_p7, 1, 0 }
  0x23   : > { %s13427_s19 = scalar_select %p11671_p8, 1, 0 }
  0x24   : > { %13426 = sst [smem:[#allocation36_spill]] %s13425_s17  ;;  %s11676_s20 = sand.u32 1, %s11530_s28  }
  0x25   : > { %s10311_s21 = smul.u32 6, %s11669_s18  ;;  %s13428_s2 = sld [smem:[#allocation39_spill]] }
  0x26   : > { %s10312_s22 = smul.u32 96, %s11530_s28  ;;  %p11694_p12 = pneg %p11671_p8 }
  0x27   : > { %s445_s14 = scalar_lea.vmem [#allocation6], %s10311_s21 }
  0x28   : > { %s453_s15 = sshll.u32 %s445_s14, 4  ;;  %s11686_s15 = int_to_ptr.vmem [resolvable:$true] %s453_s15 }
  0x2b   : > { %s11684_s25 = scalar_lea.hbm %s13428_s2, %s10312_s22  ;;  %s11087_s21 = scalar_lea.hbm %s13428_s2, 576 }
  0x2c   : > { %s11082_s27 = scalar_lea.hbm %s11684_s25, 96  ;;  %p11088_p1 = scmp.lt.u32.totalorder %s11684_s25, %s13428_s2 }
  0x2d   : > { %p11083_p11 = scmp.ne.s32.totalorder %s11684_s25, %s11082_s27  ;;  %p11089_p2 = scmp.lt.u32.totalorder %s11087_s21, %s11082_s27 }
  0x2e   : > { %p11091_p4 = scmp.lt.u32.totalorder %s11082_s27, %s11684_s25 }
  0x2f   : > { %p11085_p13 = pnand %p11694_p12, %p11083_p11  ;;  %p11090_p3 = por %p11089_p2, %p11088_p1 }
  0x31   : > { %p11086_p0 = pneg %p11085_p13  ;;  %p11092_p5 = por %p11091_p4, %p11090_p3 }
  0x33   : > { %p11093_p6 = pnand %p11092_p5, %p11086_p0 }
  0x35   : > { %11096 = shalt.err (!%p11093_p6)
}
  0x36   : > { %s11097_s16 = scalar_lea.vmem %s11686_s15, 96  ;;  %s11532_s22 = smov [#allocation6]  }
  0x37   : > { %p11098_p11 = scmp.ne.s32.totalorder %s11686_s15, %s11097_s16  ;;  %s11102_s23 = sshll.u32 %s11532_s22, 4  ;;  %s11103_s23 = int_to_ptr.vmem [resolvable:$false] %s11102_s23 }
  0x38   : > { %s11104_s24 = scalar_lea.vmem %s11103_s23, 192  ;;  %p11105_p10 = scmp.lt.s32.totalorder %s11686_s15, %s11103_s23 }
  0x39   : > { %p11100_p13 = pnand %p11098_p11, %p11694_p12  ;;  %p11106_p7 = scmp.lt.s32.totalorder %s11104_s24, %s11097_s16 }
  0x3b   : > { %p11101_p9 = pneg %p11100_p13  ;;  %p11107_p1 = por %p11106_p7, %p11105_p10 }
  0x3d   : > { %p11108_p2 = pnand %p11107_p1, %p11101_p9 }
  0x3f   : > { %11111 = shalt.err (!%p11108_p2)
}
  0x40   : > { %s13430_s27 = scalar_lea.sflag [#allocation7], %s11676_s20  ;;  %p13431_p0 = scmp.lt.s32.totalorder %s11530_s28, 7 }
  0x41   : > { %10349 = dma.hbm_to_vmem [thread:$0]  (!%p11671_p8), %s11684_s25, 96, %s11686_s15, %s13430_s27  }
  0x42   : > { %p13432_p3 = scmp.ge.s32.totalorder %s11530_s28, 1  ;;  %s11728_s21 = sshll.u32 %s11669_s18, 1 }
  0x43   : > { %s11731_s14 = sshll.u32 %s11530_s28, 5  ;;  %s13434_s4 = sld [smem:[#allocation41_spill]] }
  0x44   : > { %p11723_p4 = pnand %p13432_p3, %p13431_p0  ;;  %s485_s25 = scalar_lea.vmem [#allocation9], %s11728_s21 }
  0x45   : > { %s493_s15 = sshll.u32 %s485_s25, 4  ;;  %s494_s15 = int_to_ptr.vmem [resolvable:$true] %s493_s15 }
  0x46   : > { %s13433_s16 = scalar_select %p11723_p4, 1, 0 }
  0x49   : > { %s11737_s24 = scalar_lea.hbm %s13434_s4, %s11731_s14  ;;  %s11117_s29 = scalar_lea.hbm %s13434_s4, 192 }
  0x4a   : > { %s11112_s2 = scalar_lea.hbm %s11737_s24, 32  ;;  %p11118_p5 = scmp.lt.u32.totalorder %s11737_s24, %s13434_s4 }
  0x4b   : > { %p11113_p7 = scmp.ne.s32.totalorder %s11737_s24, %s11112_s2  ;;  %p11119_p6 = scmp.lt.u32.totalorder %s11117_s29, %s11112_s2 }
  0x4c   : > { %p11121_p13 = scmp.lt.u32.totalorder %s11112_s2, %s11737_s24 }
  0x4d   : > { %p11115_p9 = pnand %p11113_p7, %p11694_p12  ;;  %p11120_p11 = por %p11119_p6, %p11118_p5 }
  0x4f   : > { %p11116_p10 = pneg %p11115_p9  ;;  %p11122_p1 = por %p11121_p13, %p11120_p11 }
  0x51   : > { %p11123_p2 = pnand %p11122_p1, %p11116_p10 }
  0x53   : > { %11126 = shalt.err (!%p11123_p2)
}
  0x54   : > { %s11127_s25 = scalar_lea.vmem %s494_s15, 32  ;;  %s11533_s27 = smov [#allocation9]  }
  0x55   : > { %p11128_p0 = scmp.ne.s32.totalorder %s494_s15, %s11127_s25  ;;  %s11132_s17 = sshll.u32 %s11533_s27, 4  ;;  %s11133_s17 = int_to_ptr.vmem [resolvable:$false] %s11132_s17 }
  0x56   : > { %s11134_s0 = scalar_lea.vmem %s11133_s17, 64  ;;  %p11135_p9 = scmp.lt.s32.totalorder %s494_s15, %s11133_s17 }
  0x57   : > { %p11130_p3 = pnand %p11128_p0, %p11694_p12  ;;  %p11136_p4 = scmp.lt.s32.totalorder %s11134_s0, %s11127_s25 }
  0x59   : > { %p11131_p7 = pneg %p11130_p3  ;;  %p11137_p8 = por %p11136_p4, %p11135_p9 }
  0x5b   : > { %p11138_p5 = pnand %p11137_p8, %p11131_p7 }
  0x5d   : > { %11141 = shalt.err (!%p11138_p5)
}
  0x5e   : > { %p13435_p6 = scmp.ne.s32.totalorder %s13427_s19, 0  ;;  %s13436_s2 = scalar_lea.sflag [#allocation10], %s11676_s20 }
  0x5f   : > { %s13437_s6 = sld [smem:[#allocation42_spill]]  ;;  %s523_s17 = scalar_lea.vmem [#allocation12], %s11728_s21 }
  0x60   : > { %10355 = dma.hbm_to_vmem [thread:$0]  (!%p13435_p6), %s11737_s24, 32, %s494_s15, %s13436_s2  }
  0x61   : > { %s531_s22 = sshll.u32 %s523_s17, 4  ;;  %s532_s22 = int_to_ptr.vmem [resolvable:$true] %s531_s22 }
  0x65   : > { %s11764_s27 = scalar_lea.hbm %s13437_s6, %s11731_s14  ;;  %s11147_s15 = scalar_lea.hbm %s13437_s6, 192 }
  0x66   : > { %s11142_s25 = scalar_lea.hbm %s11764_s27, 32  ;;  %p11148_p11 = scmp.lt.u32.totalorder %s11764_s27, %s13437_s6 }
  0x67   : > { %p11143_p8 = scmp.ne.s32.totalorder %s11764_s27, %s11142_s25  ;;  %p11149_p13 = scmp.lt.u32.totalorder %s11147_s15, %s11142_s25 }
  0x68   : > { %p11151_p2 = scmp.lt.u32.totalorder %s11142_s25, %s11764_s27 }
  0x69   : > { %p11145_p4 = pnand %p11143_p8, %p11694_p12  ;;  %p11150_p1 = por %p11149_p13, %p11148_p11 }
  0x6b   : > { %p11146_p10 = pneg %p11145_p4  ;;  %p11152_p0 = por %p11151_p2, %p11150_p1 }
  0x6d   : > { %p11153_p3 = pnand %p11152_p0, %p11146_p10 }
  0x6f   : > { %11156 = shalt.err (!%p11153_p3)
}
  0x70   : > { %s11157_s29 = scalar_lea.vmem %s532_s22, 32  ;;  %s11534_s17 = smov [#allocation12]  }
  0x71   : > { %p11158_p7 = scmp.ne.s32.totalorder %s532_s22, %s11157_s29  ;;  %s11162_s23 = sshll.u32 %s11534_s17, 4  ;;  %s11163_s23 = int_to_ptr.vmem [resolvable:$false] %s11162_s23 }
  0x72   : > { %s11164_s0 = scalar_lea.vmem %s11163_s23, 64  ;;  %p11165_p8 = scmp.lt.s32.totalorder %s532_s22, %s11163_s23 }
  0x73   : > { %p11160_p9 = pnand %p11158_p7, %p11694_p12  ;;  %p11166_p4 = scmp.lt.s32.totalorder %s11164_s0, %s11157_s29 }
  0x75   : > { %p11161_p5 = pneg %p11160_p9  ;;  %p11167_p6 = por %p11166_p4, %p11165_p8 }
  0x77   : > { %p11168_p11 = pnand %p11167_p6, %p11161_p5 }
  0x79   : > { %11171 = shalt.err (!%p11168_p11)
}
  0x7a   : > { %p13438_p13 = scmp.ne.s32.totalorder %s13427_s19, 0  ;;  %s13439_s25 = scalar_lea.sflag [#allocation13], %s11676_s20 }
  0x7b   : > { %s9288_s24 = sshll.u32 %s11669_s18, 4  ;;  %s10020_s15 = sshll.u32 %s11530_s28, 8 }
  0x7c   : > { %10361 = dma.hbm_to_vmem [thread:$0]  (!%p13438_p13), %s11764_s27, 32, %s532_s22, %s13439_s25  }
  0x7d   : > { %s11792_s23 = scalar_lea.hbm %s13389_s8, %s10020_s15  ;;  %s563_s29 = scalar_lea.vmem [#allocation15], %s9288_s24 }
  0x7e   : > { %s571_s17 = sshll.u32 %s563_s29, 4  ;;  %s13408_s0 = scalar_lea.sflag [#allocation16], %s11676_s20  ;;  %s572_s17 = int_to_ptr.vmem [resolvable:$true] %s571_s17 }
  0x7f   : > { %s11172_s4 = scalar_lea.hbm %s11792_s23, 256  ;;  %s11177_s25 = scalar_lea.hbm %s13389_s8, 1536 }
  0x80   : > { %p11173_p6 = scmp.ne.s32.totalorder %s11792_s23, %s11172_s4  ;;  %p11178_p2 = scmp.lt.u32.totalorder %s11792_s23, %s13389_s8 }
  0x81   : > { %p11179_p0 = scmp.lt.u32.totalorder %s11177_s25, %s11172_s4  ;;  %p11181_p7 = scmp.lt.u32.totalorder %s11172_s4, %s11792_s23 }
  0x82   : > { %p11175_p10 = pnand %p11173_p6, %p11694_p12 }
  0x83   : > { %p11180_p3 = por %p11179_p0, %p11178_p2 }
  0x84   : > { %p11176_p1 = pneg %p11175_p10 }
  0x85   : > { %p11182_p9 = por %p11181_p7, %p11180_p3 }
  0x87   : > { %p11183_p5 = pnand %p11182_p9, %p11176_p1 }
  0x89   : > { %11186 = shalt.err (!%p11183_p5)
}
  0x8a   : > { %s11187_s24 = scalar_lea.vmem %s572_s17, 256  ;;  %s11535_s13 = smov [#allocation15]  }
  0x8b   : > { %p11188_p8 = scmp.ne.s32.totalorder %s572_s17, %s11187_s24  ;;  %s11192_s29 = sshll.u32 %s11535_s13, 4  ;;  %s11193_s29 = int_to_ptr.vmem [resolvable:$false] %s11192_s29 }
  0x8c   : > { %s11194_s27 = scalar_lea.vmem %s11193_s29, 512  ;;  %p11195_p6 = scmp.lt.s32.totalorder %s572_s17, %s11193_s29 }
  0x8d   : > { %p11190_p4 = pnand %p11188_p8, %p11694_p12  ;;  %p11196_p10 = scmp.lt.s32.totalorder %s11194_s27, %s11187_s24 }
  0x8f   : > { %p11191_p11 = pneg %p11190_p4  ;;  %p11197_p13 = por %p11196_p10, %p11195_p6 }
  0x91   : > { %p11198_p0 = pnand %p11197_p13, %p11191_p11 }
  0x93   : > { %11201 = shalt.err (!%p11198_p0)
}
  0x94   : > { %p13440_p2 = scmp.ne.s32.totalorder %s13427_s19, 0  ;;  %s11818_s25 = scalar_lea.hbm %s13391_s10, %s11731_s14 }
  0x95   : > { %s603_s2 = scalar_lea.vmem [#allocation18], %s11728_s21  ;;  %s13409_s24 = scalar_lea.sflag [#allocation19], %s11676_s20 }
  0x96   : > { %10367 = dma.hbm_to_vmem [thread:$0]  (!%p13440_p2), %s11792_s23, 256, %s572_s17, %s13408_s0  }
  0x97   : > { %s611_s15 = sshll.u32 %s603_s2, 4  ;;  %s11202_s13 = scalar_lea.hbm %s11818_s25, 32  ;;  %s612_s15 = int_to_ptr.vmem [resolvable:$true] %s611_s15 }
  0x98   : > { %p11203_p13 = scmp.ne.s32.totalorder %s11818_s25, %s11202_s13  ;;  %s11207_s17 = scalar_lea.hbm %s13391_s10, 192 }
  0x99   : > { %p11208_p7 = scmp.lt.u32.totalorder %s11818_s25, %s13391_s10  ;;  %p11209_p9 = scmp.lt.u32.totalorder %s11207_s17, %s11202_s13 }
  0x9a   : > { %p11205_p1 = pnand %p11203_p13, %p11694_p12  ;;  %p11211_p8 = scmp.lt.u32.totalorder %s11202_s13, %s11818_s25 }
  0x9b   : > { %p11210_p5 = por %p11209_p9, %p11208_p7 }
  0x9c   : > { %p11206_p3 = pneg %p11205_p1 }
  0x9d   : > { %p11212_p4 = por %p11211_p8, %p11210_p5 }
  0x9f   : > { %p11213_p11 = pnand %p11212_p4, %p11206_p3 }
  0xa1   : > { %11216 = shalt.err (!%p11213_p11)
}
  0xa2   : > { %s11217_s22 = scalar_lea.vmem %s612_s15, 32  ;;  %s11536_s2 = smov [#allocation18]  }
  0xa3   : > { %p11218_p6 = scmp.ne.s32.totalorder %s612_s15, %s11217_s22  ;;  %s11222_s0 = sshll.u32 %s11536_s2, 4  ;;  %s11223_s0 = int_to_ptr.vmem [resolvable:$false] %s11222_s0 }
  0xa4   : > { %s11224_s29 = scalar_lea.vmem %s11223_s0, 64  ;;  %p11225_p13 = scmp.lt.s32.totalorder %s612_s15, %s11223_s0 }
  0xa5   : > { %p11220_p10 = pnand %p11218_p6, %p11694_p12  ;;  %p11226_p1 = scmp.lt.s32.totalorder %s11224_s29, %s11217_s22 }
  0xa7   : > { %p11221_p0 = pneg %p11220_p10  ;;  %p11227_p2 = por %p11226_p1, %p11225_p13 }
  0xa9   : > { %p11228_p7 = pnand %p11227_p2, %p11221_p0 }
  0xab   : > { %11231 = shalt.err (!%p11228_p7)
}
  0xac   : > { %p13441_p9 = scmp.ne.s32.totalorder %s13427_s19, 0  ;;  %s10309_s13 = smul.u32 768, %s11669_s18 }
  0xad   : > { %s10310_s23 = smul.u32 12288, %s11530_s28  ;;  %s9273_s17 = sshll.u32 %s11669_s18, 8 }
  0xae   : > { %10373 = dma.hbm_to_vmem [thread:$0]  (!%p13441_p9), %s11818_s25, 32, %s612_s15, %s13409_s24  }
  0xaf   : > { %s13442_s1 = sld [smem:[#allocation38_spill]]  ;;  %s424_s22 = scalar_lea.vmem [#allocation3], %s10309_s13 }
  0xb0   : > { %s431_s2 = sshll.u32 %s424_s22, 4  ;;  %s421_s29 = scalar_lea.sflag [#allocation4], %s11669_s18  ;;  %s11849_s2 = int_to_ptr.vmem [resolvable:$true] %s431_s2 }
  0xb5   : > { %s11847_s4 = scalar_lea.hbm %s13442_s1, %s10310_s23  ;;  %s11237_s27 = scalar_lea.hbm %s13442_s1, 73728 }
  0xb6   : > { %s11232_s6 = scalar_lea.hbm %s11847_s4, 12288  ;;  %p11238_p8 = scmp.lt.u32.totalorder %s11847_s4, %s13442_s1 }
  0xb7   : > { %p11233_p2 = scmp.ne.s32.totalorder %s11847_s4, %s11232_s6  ;;  %p11239_p4 = scmp.lt.u32.totalorder %s11237_s27, %s11232_s6 }
  0xb8   : > { %p11241_p6 = scmp.lt.u32.totalorder %s11232_s6, %s11847_s4 }
  0xb9   : > { %p11235_p3 = pnand %p11233_p2, %p11694_p12  ;;  %p11240_p11 = por %p11239_p4, %p11238_p8 }
  0xbb   : > { %p11236_p5 = pneg %p11235_p3  ;;  %p11242_p10 = por %p11241_p6, %p11240_p11 }
  0xbd   : > { %p11243_p0 = pnand %p11242_p10, %p11236_p5 }
  0xbf   : > { %11246 = shalt.err (!%p11243_p0)
}
  0xc0   : > { %s11247_s13 = scalar_lea.vmem %s11849_s2, 12288  ;;  %s11537_s22 = smov [#allocation3]  }
  0xc1   : > { %p11248_p13 = scmp.ne.s32.totalorder %s11849_s2, %s11247_s13  ;;  %s11252_s25 = sshll.u32 %s11537_s22, 4  ;;  %s11253_s25 = int_to_ptr.vmem [resolvable:$false] %s11252_s25 }
  0xc2   : > { %s11254_s15 = scalar_lea.vmem %s11253_s25, 24576  ;;  %p11255_p2 = scmp.lt.s32.totalorder %s11849_s2, %s11253_s25 }
  0xc3   : > { %p11250_p1 = pnand %p11248_p13, %p11694_p12  ;;  %p11256_p3 = scmp.lt.s32.totalorder %s11254_s15, %s11247_s13 }
  0xc5   : > { %p11251_p7 = pneg %p11250_p1  ;;  %p11257_p8 = por %p11256_p3, %p11255_p2 }
  0xc7   : > { %p11258_p4 = pnand %p11257_p8, %p11251_p7 }
  0xc9   : > { %11261 = shalt.err (!%p11258_p4)
}
  0xca   : > { %s11538_s6 = smov 384   ;;  %s11539_s27 = smov 24  }
  0xcb   : > { %10346 = dma.hbm_to_vmem [thread:$0]  (!%p13441_p9), %s11847_s4, 12288, %s11849_s2, %s421_s29, %s11538_s6, %s11538_s6, %s11539_s27  }
  0xcc   : > { %s10015_s23 = sshll.u32 %s11530_s28, 12  ;;  %s464_s0 = scalar_lea.vmem [#allocation8], %s9273_s17 }
  0xcd   : > { %s471_s22 = sshll.u32 %s464_s0, 4  ;;  %s13443_s3 = sld [smem:[#allocation40_spill]]  ;;  %s11883_s22 = int_to_ptr.vmem [resolvable:$true] %s471_s22 }
  0xd3   : > { %s11881_s15 = scalar_lea.hbm %s13443_s3, %s10015_s23  ;;  %s11267_s17 = scalar_lea.hbm %s13443_s3, 24576 }
  0xd4   : > { %s11262_s24 = scalar_lea.hbm %s11881_s15, 4096  ;;  %p11268_p10 = scmp.lt.u32.totalorder %s11881_s15, %s13443_s3 }
  0xd5   : > { %p11263_p5 = scmp.ne.s32.totalorder %s11881_s15, %s11262_s24  ;;  %p11269_p0 = scmp.lt.u32.totalorder %s11267_s17, %s11262_s24 }
  0xd6   : > { %p11271_p1 = scmp.lt.u32.totalorder %s11262_s24, %s11881_s15 }
  0xd7   : > { %p11265_p11 = pnand %p11263_p5, %p11694_p12  ;;  %p11270_p13 = por %p11269_p0, %p11268_p10 }
  0xd9   : > { %p11266_p6 = pneg %p11265_p11  ;;  %p11272_p7 = por %p11271_p1, %p11270_p13 }
  0xdb   : > { %p11273_p2 = pnand %p11272_p7, %p11266_p6 }
  0xdd   : > { %11276 = shalt.err (!%p11273_p2)
}
  0xde   : > { %s11277_s27 = scalar_lea.vmem %s11883_s22, 4096  ;;  %s11540_s23 = smov [#allocation8]  }
  0xdf   : > { %p11278_p3 = scmp.ne.s32.totalorder %s11883_s22, %s11277_s27  ;;  %s11282_s0 = sshll.u32 %s11540_s23, 4  ;;  %s11283_s0 = int_to_ptr.vmem [resolvable:$false] %s11282_s0 }
  0xe0   : > { %s11284_s13 = scalar_lea.vmem %s11283_s0, 8192  ;;  %p11285_p5 = scmp.lt.s32.totalorder %s11883_s22, %s11283_s0 }
  0xe1   : > { %p11280_p8 = pnand %p11278_p3, %p11694_p12  ;;  %p11286_p11 = scmp.lt.s32.totalorder %s11284_s13, %s11277_s27 }
  0xe3   : > { %p11281_p4 = pneg %p11280_p8  ;;  %p11287_p10 = por %p11286_p11, %p11285_p5 }
  0xe5   : > { %p11288_p0 = pnand %p11287_p10, %p11281_p4 }
  0xe7   : > { %11291 = shalt.err (!%p11288_p0)
}
  0xe8   : > { %s13410_s24 = smov 128   ;;  %s13412_s25 = smov 8  }
  0xe9   : > { %s13444_s4 = scalar_lea.sflag [#allocation7], %s11676_s20  ;;  %s11915_s29 = scalar_lea.hbm %s13386_s5, %s11731_s14 }
  0xea   : > { %10352 = dma.hbm_to_vmem [thread:$0]  (!%p13441_p9), %s11881_s15, 4096, %s11883_s22, %s13444_s4, %s13410_s24, %s13410_s24, %s13412_s25  }
  0xeb   : > { %s504_s6 = scalar_lea.vmem [#allocation11], %s11728_s21  ;;  %s9285_s23 = sshll.u32 %s11669_s18, 11 }
  0xec   : > { %s512_s27 = sshll.u32 %s504_s6, 4  ;;  %s11292_s0 = scalar_lea.hbm %s11915_s29, 32  ;;  %s513_s27 = int_to_ptr.vmem [resolvable:$true] %s512_s27 }
  0xed   : > { %p11293_p6 = scmp.ne.s32.totalorder %s11915_s29, %s11292_s0  ;;  %s11297_s15 = scalar_lea.hbm %s13386_s5, 192 }
  0xee   : > { %p11298_p7 = scmp.lt.u32.totalorder %s11915_s29, %s13386_s5  ;;  %p11299_p2 = scmp.lt.u32.totalorder %s11297_s15, %s11292_s0 }
  0xef   : > { %p11295_p13 = pnand %p11293_p6, %p11694_p12  ;;  %p11301_p8 = scmp.lt.u32.totalorder %s11292_s0, %s11915_s29 }
  0xf0   : > { %p11300_p3 = por %p11299_p2, %p11298_p7 }
  0xf1   : > { %p11296_p1 = pneg %p11295_p13 }
  0xf2   : > { %p11302_p4 = por %p11301_p8, %p11300_p3 }
  0xf4   : > { %p11303_p5 = pnand %p11302_p4, %p11296_p1 }
  0xf6   : > { %11306 = shalt.err (!%p11303_p5)
}
  0xf7   : > { %s11307_s17 = scalar_lea.vmem %s513_s27, 32  ;;  %s11543_s6 = smov [#allocation11]  }
  0xf8   : > { %p11308_p11 = scmp.ne.s32.totalorder %s513_s27, %s11307_s17  ;;  %s11312_s24 = sshll.u32 %s11543_s6, 4  ;;  %s11313_s24 = int_to_ptr.vmem [resolvable:$false] %s11312_s24 }
  0xf9   : > { %s11314_s13 = scalar_lea.vmem %s11313_s24, 64  ;;  %p11315_p6 = scmp.lt.s32.totalorder %s513_s27, %s11313_s24 }
  0xfa   : > { %p11310_p10 = pnand %p11308_p11, %p11694_p12  ;;  %p11316_p13 = scmp.lt.s32.totalorder %s11314_s13, %s11307_s17 }
  0xfc   : > { %p11311_p0 = pneg %p11310_p10  ;;  %p11317_p9 = por %p11316_p13, %p11315_p6 }
  0xfe   : > { %p11318_p2 = pnand %p11317_p9, %p11311_p0 }
 0x100   : > { %11321 = shalt.err (!%p11318_p2)
}
 0x101   : > { %p13445_p7 = scmp.ne.s32.totalorder %s13427_s19, 0  ;;  %s13446_s0 = scalar_lea.sflag [#allocation10], %s11676_s20 }
 0x102   : > { %s10019_s22 = sshll.u32 %s11530_s28, 15  ;;  %s542_s15 = scalar_lea.vmem [#allocation14], %s9285_s23 }
 0x103   : > { %10358 = dma.hbm_to_vmem [thread:$0]  (!%p13445_p7), %s11915_s29, 32, %s513_s27, %s13446_s0  }
 0x104   : > { %s549_s4 = sshll.u32 %s542_s15, 4  ;;  %s11946_s17 = scalar_lea.hbm %s13388_s7, %s10019_s22  ;;  %s11948_s4 = int_to_ptr.vmem [resolvable:$true] %s549_s4 }
 0x105   : > { %s11322_s6 = scalar_lea.hbm %s11946_s17, 32768  ;;  %s11327_s13 = scalar_lea.hbm %s13388_s7, 196608 }
 0x106   : > { %p11323_p9 = scmp.ne.s32.totalorder %s11946_s17, %s11322_s6  ;;  %p11328_p8 = scmp.lt.u32.totalorder %s11946_s17, %s13388_s7 }
 0x107   : > { %p11329_p4 = scmp.lt.u32.totalorder %s11327_s13, %s11322_s6  ;;  %p11331_p11 = scmp.lt.u32.totalorder %s11322_s6, %s11946_s17 }
 0x108   : > { %p11325_p1 = pnand %p11323_p9, %p11694_p12 }
 0x109   : > { %p11330_p5 = por %p11329_p4, %p11328_p8 }
 0x10a   : > { %p11326_p3 = pneg %p11325_p1 }
 0x10b   : > { %p11332_p10 = por %p11331_p11, %p11330_p5 }
 0x10d   : > { %p11333_p0 = pnand %p11332_p10, %p11326_p3 }
 0x10f   : > { %11336 = shalt.err (!%p11333_p0)
}
 0x110   : > { %s11337_s24 = scalar_lea.vmem %s11948_s4, 32768  ;;  %s11544_s2 = smov [#allocation14]  }
 0x111   : > { %p11338_p6 = scmp.ne.s32.totalorder %s11948_s4, %s11337_s24  ;;  %s11342_s29 = sshll.u32 %s11544_s2, 4  ;;  %s11343_s29 = int_to_ptr.vmem [resolvable:$false] %s11342_s29 }
 0x112   : > { %s11344_s27 = scalar_lea.vmem %s11343_s29, 65536  ;;  %p11345_p9 = scmp.lt.s32.totalorder %s11948_s4, %s11343_s29 }
 0x113   : > { %p11340_p13 = pnand %p11338_p6, %p11694_p12  ;;  %p11346_p1 = scmp.lt.s32.totalorder %s11344_s27, %s11337_s24 }
 0x115   : > { %p11341_p2 = pneg %p11340_p13  ;;  %p11347_p8 = por %p11346_p1, %p11345_p9 }
 0x117   : > { %p11348_p4 = pnand %p11347_p8, %p11341_p2 }
 0x119   : > { %11351 = shalt.err (!%p11348_p4)
}
 0x11a   : > { %s11545_s6 = smov 1024   ;;  %s11546_s13 = smov 64  }
 0x11b   : > { %s13447_s0 = scalar_lea.sflag [#allocation13], %s11676_s20  ;;  %s11978_s24 = scalar_lea.hbm %s13390_s9, %s10019_s22 }
 0x11c   : > { %10364 = dma.hbm_to_vmem [thread:$0]  (!%p13445_p7), %s11946_s17, 32768, %s11948_s4, %s13447_s0, %s11545_s6, %s11545_s6, %s11546_s13  }
 0x11d   : > { %s582_s29 = scalar_lea.vmem [#allocation17], %s9285_s23  ;;  %s11988_s3 = scalar_lea.hbm %s13392_s11, %s11731_s14 }
 0x11e   : > { %s589_s27 = sshll.u32 %s582_s29, 4  ;;  %s11352_s28 = scalar_lea.hbm %s11978_s24, 32768  ;;  %s11982_s27 = int_to_ptr.vmem [resolvable:$true] %s589_s27 }
 0x11f   : > { %p11353_p3 = scmp.ne.s32.totalorder %s11978_s24, %s11352_s28  ;;  %s11357_s17 = scalar_lea.hbm %s13390_s9, 196608 }
 0x120   : > { %p11358_p10 = scmp.lt.u32.totalorder %s11978_s24, %s13390_s9  ;;  %p11359_p0 = scmp.lt.u32.totalorder %s11357_s17, %s11352_s28 }
 0x121   : > { %p11355_p5 = pnand %p11353_p3, %p11694_p12  ;;  %p11361_p13 = scmp.lt.u32.totalorder %s11352_s28, %s11978_s24 }
 0x122   : > { %p11360_p6 = por %p11359_p0, %p11358_p10 }
 0x123   : > { %p11356_p11 = pneg %p11355_p5 }
 0x124   : > { %p11362_p2 = por %p11361_p13, %p11360_p6 }
 0x126   : > { %p11363_p9 = pnand %p11362_p2, %p11356_p11 }
 0x128   : > { %11366 = shalt.err (!%p11363_p9)
}
 0x129   : > { %s11367_s1 = scalar_lea.vmem %s11982_s27, 32768  ;;  %s11547_s25 = smov [#allocation17]  }
 0x12a   : > { %p11368_p1 = scmp.ne.s32.totalorder %s11982_s27, %s11367_s1  ;;  %s11372_s23 = sshll.u32 %s11547_s25, 4  ;;  %s11373_s23 = int_to_ptr.vmem [resolvable:$false] %s11372_s23 }
 0x12b   : > { %s11374_s0 = scalar_lea.vmem %s11373_s23, 65536  ;;  %p11375_p3 = scmp.lt.s32.totalorder %s11982_s27, %s11373_s23 }
 0x12c   : > { %p11370_p8 = pnand %p11368_p1, %p11694_p12  ;;  %p11376_p5 = scmp.lt.s32.totalorder %s11374_s0, %s11367_s1 }
 0x12e   : > { %p11371_p4 = pneg %p11370_p8  ;;  %p11377_p10 = por %p11376_p5, %p11375_p3 }
 0x130   : > { %p11378_p0 = pnand %p11377_p10, %p11371_p4 }
 0x132   : > { %11381 = shalt.err (!%p11378_p0)
}
 0x133   : > { %s13448_s15 = smov 8   ;;  %s13449_s2 = smov 128  }
 0x134   : > { %s13450_s29 = scalar_lea.sflag [#allocation16], %s11676_s20  ;;  %s622_s28 = scalar_lea.vmem [#allocation20], %s11728_s21 }
 0x135   : > { %10370 = dma.hbm_to_vmem [thread:$0]  (!%p13445_p7), %s11978_s24, 32768, %s11982_s27, %s13450_s29, %s13449_s2, %s13449_s2, %s13448_s15  }
 0x136   : > { %s630_s22 = sshll.u32 %s622_s28, 4  ;;  %s11382_s4 = scalar_lea.hbm %s11988_s3, 32  ;;  %s631_s22 = int_to_ptr.vmem [resolvable:$true] %s630_s22 }
 0x137   : > { %p11383_p11 = scmp.ne.s32.totalorder %s11988_s3, %s11382_s4  ;;  %s11387_s13 = scalar_lea.hbm %s13392_s11, 192 }
 0x138   : > { %p11388_p2 = scmp.lt.u32.totalorder %s11988_s3, %s13392_s11  ;;  %p11389_p9 = scmp.lt.u32.totalorder %s11387_s13, %s11382_s4 }
 0x139   : > { %p11385_p6 = pnand %p11383_p11, %p11694_p12  ;;  %p11391_p8 = scmp.lt.u32.totalorder %s11382_s4, %s11988_s3 }
 0x13a   : > { %p11390_p1 = por %p11389_p9, %p11388_p2 }
 0x13b   : > { %p11386_p13 = pneg %p11385_p6 }
 0x13c   : > { %p11392_p4 = por %p11391_p8, %p11390_p1 }
 0x13e   : > { %p11393_p3 = pnand %p11392_p4, %p11386_p13 }
 0x140   : > { %11396 = shalt.err (!%p11393_p3)
}
 0x141   : > { %s11397_s24 = scalar_lea.vmem %s631_s22, 32  ;;  %s11548_s27 = smov [#allocation20]  }
 0x142   : > { %p11398_p5 = scmp.ne.s32.totalorder %s631_s22, %s11397_s24  ;;  %s11402_s23 = sshll.u32 %s11548_s27, 4  ;;  %s11403_s23 = int_to_ptr.vmem [resolvable:$false] %s11402_s23 }
 0x143   : > { %s11404_s0 = scalar_lea.vmem %s11403_s23, 64  ;;  %p11405_p11 = scmp.lt.s32.totalorder %s631_s22, %s11403_s23 }
 0x144   : > { %p11400_p10 = pnand %p11398_p5, %p11694_p12  ;;  %p11406_p6 = scmp.lt.s32.totalorder %s11404_s0, %s11397_s24 }
 0x146   : > { %p11401_p0 = pneg %p11400_p10  ;;  %p11407_p7 = por %p11406_p6, %p11405_p11 }
 0x148   : > { %p11408_p2 = pnand %p11407_p7, %p11401_p0 }
 0x14a   : > { %11411 = shalt.err (!%p11408_p2)
}
 0x14b   : > { %p13451_p9 = scmp.ne.s32.totalorder %s13427_s19, 0  ;;  %s13452_s15 = scalar_lea.sflag [#allocation19], %s11676_s20 }
 0x14c   : > { %s12040_s28 = scalar_lea.hbm %s13393_s12, %s11731_s14  ;;  %s641_s4 = scalar_lea.vmem [#allocation21], %s11728_s21 }
 0x14d   : > { %10376 = dma.hbm_to_vmem [thread:$0]  (!%p13451_p9), %s11988_s3, 32, %s631_s22, %s13452_s15  }
 0x14e   : > { %s649_s17 = sshll.u32 %s641_s4, 4  ;;  %s638_s6 = scalar_lea.sflag [#allocation22], %s11669_s18  ;;  %s650_s17 = int_to_ptr.vmem [resolvable:$true] %s649_s17 }
 0x14f   : > { %s11412_s20 = scalar_lea.hbm %s12040_s28, 32  ;;  %s11417_s22 = scalar_lea.hbm %s13393_s12, 192 }
 0x150   : > { %p11413_p7 = scmp.ne.s32.totalorder %s12040_s28, %s11412_s20  ;;  %p11418_p8 = scmp.lt.u32.totalorder %s12040_s28, %s13393_s12 }
 0x151   : > { %p11419_p4 = scmp.lt.u32.totalorder %s11417_s22, %s11412_s20  ;;  %p11421_p5 = scmp.lt.u32.totalorder %s11412_s20, %s12040_s28 }
 0x152   : > { %p11415_p13 = pnand %p11413_p7, %p11694_p12 }
 0x153   : > { %p11420_p3 = por %p11419_p4, %p11418_p8 }
 0x154   : > { %p11416_p1 = pneg %p11415_p13 }
 0x155   : > { %p11422_p10 = por %p11421_p5, %p11420_p3 }
 0x157   : > { %p11423_p0 = pnand %p11422_p10, %p11416_p1 }
 0x159   : > { %11426 = shalt.err (!%p11423_p0)
}
 0x15a   : > { %s11427_s18 = scalar_lea.vmem %s650_s17, 32  ;;  %s11549_s21 = smov [#allocation21]  }
 0x15b   : > { %p11428_p11 = scmp.ne.s32.totalorder %s650_s17, %s11427_s18  ;;  %s11432_s25 = sshll.u32 %s11549_s21, 4  ;;  %s11433_s25 = int_to_ptr.vmem [resolvable:$false] %s11432_s25 }
 0x15c   : > { %s11434_s24 = scalar_lea.vmem %s11433_s25, 64  ;;  %p11435_p7 = scmp.lt.s32.totalorder %s650_s17, %s11433_s25 }
 0x15d   : > { %p11430_p6 = pnand %p11428_p11, %p11694_p12  ;;  %p11436_p13 = scmp.lt.s32.totalorder %s11434_s24, %s11427_s18 }
 0x15f   : > { %p11431_p2 = pneg %p11430_p6  ;;  %p11437_p9 = por %p11436_p13, %p11435_p7 }
 0x161   : > { %p11438_p4 = pnand %p11437_p9, %p11431_p2 }
 0x163   : > { %11441 = shalt.err (!%p11438_p4)
}
 0x164   : > { %p13453_p8 = scmp.ne.s32.totalorder %s13427_s19, 0  ;;  %p13454_p1 = scmp.ne.s32.totalorder %s13433_s16, 0 }
 0x165   : > { %s13455_s30 = sld [smem:[#allocation36_spill]] (!%p13454_p1)  ;;  %s12064_s27 = sand.u32 (!%p13454_p1), 1, %s11522_s26  }
 0x166   : > { %10379 = dma.hbm_to_vmem [thread:$0]  (!%p13453_p8), %s12040_s28, 32, %s650_s17, %s638_s6  }
 0x167   : > { %658 = sbr.rel (%p13454_p1) target bundleno = 7269 (0x1c65), region = 72  ;;  %s661_s0 = scalar_lea.sflag (!%p13454_p1), [#allocation4], %s12064_s27 }
 0x168   : > { %s10313_s23 = smul.u32 (!%p13454_p1), 768, %s12064_s27 }
 0x16a   : > { %s12068_s15 = scalar_lea.vmem (!%p13454_p1), [#allocation3], %s10313_s23 }
 0x16b   : > { %p13456_p12 = scmp.ne.s32.totalorder (!%p13454_p1), %s13455_s30, 0 }
 0x16e   : > { %11485 = dma.done.wait (%p13456_p12), %s661_s0, 12288  }
 0x16f   : > { %11487 = vsyncadd (%p13456_p12), %s661_s0, 4294955008  ;;  %s13457_s19 = sld [smem:[#allocation33_spill]]  ;;  %s10314_s2 = smul.u32 6, %s12064_s27 }
 0x171   : > { %s12079_s28 = scalar_lea.vmem [#allocation6], %s10314_s2 }
 0x175   : > { %s12075_s16 = sand.u32 1, %s13457_s19  }
 0x176   : > { %s670_s29 = scalar_lea.sflag [#allocation7], %s12075_s16 }
 0x177   : > { %11489 = dma.done.wait (%p13456_p12), %s670_s29, 4192  }
 0x178   : > { %11491 = vsyncadd (%p13456_p12), %s670_s29, 4294963104  ;;  %s9304_s4 = sshll.u32 %s12064_s27, 8  ;;  %s12087_s17 = sshll.u32 %s12064_s27, 1 }
 0x179   : > { %s12089_s6 = scalar_lea.vmem [#allocation8], %s9304_s4  ;;  %s688_s20 = scalar_lea.sflag [#allocation10], %s12075_s16 }
 0x17a   : > { %s691_s13 = scalar_lea.vmem [#allocation9], %s12087_s17 }
 0x17b   : > { %11493 = dma.done.wait (%p13456_p12), %s688_s20, 64  }
 0x17c   : > { %11495 = vsyncadd (%p13456_p12), %s688_s20, 4294967232  ;;  %s700_s3 = scalar_lea.vmem [#allocation11], %s12087_s17  ;;  %s706_s22 = scalar_lea.sflag [#allocation13], %s12075_s16 }
 0x17d   : > { %s709_s1 = scalar_lea.vmem [#allocation12], %s12087_s17 }
 0x17e   : > { %11497 = dma.done.wait (%p13456_p12), %s706_s22, 32800  }
 0x17f   : > { %11499 = vsyncadd (%p13456_p12), %s706_s22, 4294934496  ;;  %s9308_s14 = sshll.u32 %s12064_s27, 11  ;;  %s9309_s18 = sshll.u32 %s12064_s27, 4 }
 0x180   : > { %s12106_s21 = scalar_lea.vmem [#allocation14], %s9308_s14  ;;  %s724_s25 = scalar_lea.sflag [#allocation16], %s12075_s16 }
 0x181   : > { %s12109_s24 = scalar_lea.vmem [#allocation15], %s9309_s18 }
 0x182   : > { %11501 = dma.done.wait (%p13456_p12), %s724_s25, 33024  }
 0x183   : > { %11503 = vsyncadd (%p13456_p12), %s724_s25, 4294934272  ;;  %s12115_s23 = scalar_lea.vmem [#allocation17], %s9308_s14  ;;  %s742_s0 = scalar_lea.sflag [#allocation19], %s12075_s16 }
 0x184   : > { %s745_s2 = scalar_lea.vmem [#allocation18], %s12087_s17 }
 0x185   : > { %11505 = dma.done.wait (%p13456_p12), %s742_s0, 64  }
 0x186   : > { %11507 = vsyncadd (%p13456_p12), %s742_s0, 4294967232  ;;  %s760_s4 = scalar_lea.sflag [#allocation22], %s12064_s27  ;;  %s763_s20 = scalar_lea.vmem [#allocation21], %s12087_s17 }
 0x187   : > { %11509 = dma.done.wait (%p13456_p12), %s760_s4, 32  }
 0x188   : > { %11511 = vsyncadd (%p13456_p12), %s760_s4, 4294967264  ;;  %p9314_p9 = scmp.ne.s32.totalorder %s13457_s19, 0 }
 0x189   : > { %s13458_s14 = sld [smem:[#allocation37_spill]] (!%p9314_p9) }
 0x18a   : > { %860 = sbr.rel (%p9314_p9) target bundleno = 402 (0x192), region = 124 }
 0x18f   : > { %v861_v0 = vld [vmem:[%s13458_s14] sm:$0xff] (!%p9314_p9)  ;;  %v862_v1 = vld [vmem:[%s13458_s14 + $0x8] sm:$0xff] (!%p9314_p9)  ;;  %v863_v2 = vld [vmem:[%s13458_s14 + $0x10] sm:$0xff] (!%p9314_p9) }
 0x190   : > { %865 = vst [vmem:[#allocation2] sm:$0xff] (!%p9314_p9), %v861_v0  ;;  %866 = vst [vmem:[#allocation2 + $0x8] sm:$0xff] (!%p9314_p9), %v862_v1  ;;  %v864_v3 = vld [vmem:[%s13458_s14 + $0x18] sm:$0xff] (!%p9314_p9) }
 0x191   : > { %867 = vst [vmem:[#allocation2 + $0x10] sm:$0xff] %v863_v2  ;;  %868 = vst [vmem:[#allocation2 + $0x18] sm:$0xff] %v864_v3 }
 0x192 PF: > { %v10429_v4 = vld [vmem:[%s12068_s15 + $0x4] ss:$24 sps:$4 sm:$0xff]   ;;  %v10431_v5 = vld [vmem:[%s12068_s15] ss:$24 sps:$4 sm:$0xff]   ;;  %v10432_v6 = vld [vmem:[%s12068_s15 + $0x34] ss:$24 sps:$4 sm:$0xff]  }
 0x193   : > { %1483 = vmatprep.subr.bf16.mxu1 %v10429_v4  ;;  %v10434_v7 = vld [vmem:[%s12068_s15 + $0x30] ss:$24 sps:$4 sm:$0xff]   ;;  %v10435_v8 = vld [vmem:[%s12068_s15 + $0x64] ss:$24 sps:$4 sm:$0xff]   ;;  %v10437_v9 = vld [vmem:[%s12068_s15 + $0x60] ss:$24 sps:$4 sm:$0xff]  }
 0x194   : > { %1484 = vmatpush1.bf16.msra.mxu1 %v10431_v5  ;;  %v10438_v10 = vld [vmem:[%s12068_s15 + $0x94] ss:$24 sps:$4 sm:$0xff]   ;;  %v10440_v11 = vld [vmem:[%s12068_s15 + $0x90] ss:$24 sps:$4 sm:$0xff]   ;;  %v10441_v12 = vld [vmem:[%s12068_s15 + $0xc4] ss:$24 sps:$4 sm:$0xff]  }
 0x195   : > { %1485 = vmatprep.subr.bf16.mxu1 %v10432_v6  ;;  %v10443_v13 = vld [vmem:[%s12068_s15 + $0xc0] ss:$24 sps:$4 sm:$0xff]   ;;  %v10444_v14 = vld [vmem:[%s12068_s15 + $0xf4] ss:$24 sps:$4 sm:$0xff]   ;;  %v10446_v15 = vld [vmem:[%s12068_s15 + $0xf0] ss:$24 sps:$4 sm:$0xff]  }
 0x196   : > { %v10447_v16 = vld [vmem:[%s12068_s15 + $0x124] ss:$24 sps:$4 sm:$0xff]   ;;  %v10449_v20 = vld [vmem:[%s12068_s15 + $0x120] ss:$24 sps:$4 sm:$0xff]   ;;  %v10450_v21 = vld [vmem:[%s12068_s15 + $0x154] ss:$24 sps:$4 sm:$0xff]  }
 0x197   : > { %v10452_v22 = vld [vmem:[%s12068_s15 + $0x150] ss:$24 sps:$4 sm:$0xff]   ;;  %v10453_v23 = vld [vmem:[%s12068_s15 + $0x184] ss:$24 sps:$4 sm:$0xff]   ;;  %v10455_v24 = vld [vmem:[%s12068_s15 + $0x180] ss:$24 sps:$4 sm:$0xff]  }
 0x198   : > { %1486 = vmatpush1.bf16.msra.mxu1 %v10434_v7  ;;  %v870_v17 = vld [vmem:[#allocation2 + $0x8] sm:$0xff]  ;;  %v872_v18 = vld [vmem:[#allocation2 + $0x18] sm:$0xff]  ;;  %v869_v39 = vld [vmem:[#allocation2] sm:$0xff]  ;;  %vm11551_vm0 = vmmov 0   ;;  %vm1612_vm1 = vcmask 261120   ;;  %vm1767_vm2 = vcmask 64512  }
 0x199   : > { %1487 = vmatprep.subr.bf16.mxu1 %v10435_v8  ;;  %v12156_v19 = vpack.c.bf16 %v872_v18, %v870_v17  ;;  %v10456_v25 = vld [vmem:[%s12068_s15 + $0x1b4] ss:$24 sps:$4 sm:$0xff]   ;;  %v10458_v26 = vld [vmem:[%s12068_s15 + $0x1b0] ss:$24 sps:$4 sm:$0xff]   ;;  %v10459_v27 = vld [vmem:[%s12068_s15 + $0x1e4] ss:$24 sps:$4 sm:$0xff]  }
 0x19a   : > { %v10461_v28 = vld [vmem:[%s12068_s15 + $0x1e0] ss:$24 sps:$4 sm:$0xff]   ;;  %v10462_v29 = vld [vmem:[%s12068_s15 + $0x214] ss:$24 sps:$4 sm:$0xff]   ;;  %v10464_v30 = vld [vmem:[%s12068_s15 + $0x210] ss:$24 sps:$4 sm:$0xff]  }
 0x19b   : > { %1515 = vmatprep.mubr.bf16.mxu1 %v12156_v19  ;;  %v10465_v31 = vld [vmem:[%s12068_s15 + $0x244] ss:$24 sps:$4 sm:$0xff]   ;;  %v10467_v32 = vld [vmem:[%s12068_s15 + $0x240] ss:$24 sps:$4 sm:$0xff]   ;;  %v10468_v33 = vld [vmem:[%s12068_s15 + $0x274] ss:$24 sps:$4 sm:$0xff]  }
 0x19c   : > { %1488 = vmatpush1.bf16.msra.mxu1 %v10437_v9  ;;  %v10470_v34 = vld [vmem:[%s12068_s15 + $0x270] ss:$24 sps:$4 sm:$0xff]   ;;  %v10471_v35 = vld [vmem:[%s12068_s15 + $0x2a4] ss:$24 sps:$4 sm:$0xff]   ;;  %v10473_v36 = vld [vmem:[%s12068_s15 + $0x2a0] ss:$24 sps:$4 sm:$0xff]  }
 0x19d   : > { %1489 = vmatprep.subr.bf16.mxu1 %v10438_v10  ;;  %v10474_v37 = vld [vmem:[%s12068_s15 + $0x2d4] ss:$24 sps:$4 sm:$0xff]   ;;  %v10476_v38 = vld [vmem:[%s12068_s15 + $0x2d0] ss:$24 sps:$4 sm:$0xff]   ;;  %v10536_v17 = vld [vmem:[%s12068_s15 + $0xa4] ss:$24 sps:$4 sm:$0xff]  }
 0x19e   : > { %v871_v40 = vld [vmem:[#allocation2 + $0x10] sm:$0xff]  ;;  %v10479_v41 = vld [vmem:[%s12068_s15 + $0xc] ss:$24 sps:$4 sm:$0xff]   ;;  %v10477_v42 = vld [vmem:[%s12068_s15 + $0x8] ss:$24 sps:$4 sm:$0xff]   ;;  %s11553_s19 = smov 64  }
 0x19f   : > { %v12180_v43 = vpack.c.bf16 %v871_v40, %v869_v39  ;;  %v10482_v44 = vld [vmem:[%s12068_s15 + $0x3c] ss:$24 sps:$4 sm:$0xff]   ;;  %v10480_v45 = vld [vmem:[%s12068_s15 + $0x38] ss:$24 sps:$4 sm:$0xff]   ;;  %v10485_v46 = vld [vmem:[%s12068_s15 + $0x6c] ss:$24 sps:$4 sm:$0xff]  }
 0x1a0   : > { %1490 = vmatpush1.bf16.msra.mxu1 %v10440_v11  ;;  %v10483_v47 = vld [vmem:[%s12068_s15 + $0x68] ss:$24 sps:$4 sm:$0xff]   ;;  %v10488_v48 = vld [vmem:[%s12068_s15 + $0x9c] ss:$24 sps:$4 sm:$0xff]   ;;  %v10486_v49 = vld [vmem:[%s12068_s15 + $0x98] ss:$24 sps:$4 sm:$0xff]  }
 0x1a1   : > { %1491 = vmatprep.subr.bf16.mxu1 %v10441_v12  ;;  %v10491_v50 = vld [vmem:[%s12068_s15 + $0xcc] ss:$24 sps:$4 sm:$0xff]   ;;  %v10489_v51 = vld [vmem:[%s12068_s15 + $0xc8] ss:$24 sps:$4 sm:$0xff]   ;;  %v10494_v52 = vld [vmem:[%s12068_s15 + $0xfc] ss:$24 sps:$4 sm:$0xff]  }
 0x1a2   : > { %v10492_v53 = vld [vmem:[%s12068_s15 + $0xf8] ss:$24 sps:$4 sm:$0xff]   ;;  %v10497_v54 = vld [vmem:[%s12068_s15 + $0x12c] ss:$24 sps:$4 sm:$0xff]   ;;  %v10495_v55 = vld [vmem:[%s12068_s15 + $0x128] ss:$24 sps:$4 sm:$0xff]  }
 0x1a3   : > { %v10500_v56 = vld [vmem:[%s12068_s15 + $0x15c] ss:$24 sps:$4 sm:$0xff]   ;;  %v10498_v57 = vld [vmem:[%s12068_s15 + $0x158] ss:$24 sps:$4 sm:$0xff]   ;;  %v10503_v58 = vld [vmem:[%s12068_s15 + $0x18c] ss:$24 sps:$4 sm:$0xff]  }
 0x1a4   : > { %1492 = vmatpush1.bf16.msra.mxu1 %v10443_v13  ;;  %v10501_v59 = vld [vmem:[%s12068_s15 + $0x188] ss:$24 sps:$4 sm:$0xff]   ;;  %v10506_v60 = vld [vmem:[%s12068_s15 + $0x1bc] ss:$24 sps:$4 sm:$0xff]   ;;  %v10504_v61 = vld [vmem:[%s12068_s15 + $0x1b8] ss:$24 sps:$4 sm:$0xff]  }
 0x1a5   : > { %1493 = vmatprep.subr.bf16.mxu1 %v10444_v14  ;;  %v10509_v62 = vld [vmem:[%s12068_s15 + $0x1ec] ss:$24 sps:$4 sm:$0xff]   ;;  %v10507_v63 = vld [vmem:[%s12068_s15 + $0x1e8] ss:$24 sps:$4 sm:$0xff]   ;;  %v10512_v0 = vld [vmem:[%s12068_s15 + $0x21c] ss:$24 sps:$4 sm:$0xff]  }
 0x1a6   : > { %v10510_v1 = vld [vmem:[%s12068_s15 + $0x218] ss:$24 sps:$4 sm:$0xff]   ;;  %v10515_v2 = vld [vmem:[%s12068_s15 + $0x24c] ss:$24 sps:$4 sm:$0xff]   ;;  %v10513_v3 = vld [vmem:[%s12068_s15 + $0x248] ss:$24 sps:$4 sm:$0xff]  }
 0x1a7   : > { %v10518_v4 = vld [vmem:[%s12068_s15 + $0x27c] ss:$24 sps:$4 sm:$0xff]   ;;  %v10516_v5 = vld [vmem:[%s12068_s15 + $0x278] ss:$24 sps:$4 sm:$0xff]   ;;  %v10521_v6 = vld [vmem:[%s12068_s15 + $0x2ac] ss:$24 sps:$4 sm:$0xff]  }
 0x1a8   : > { %1494 = vmatpush1.bf16.msra.mxu1 %v10446_v15  ;;  %v10519_v7 = vld [vmem:[%s12068_s15 + $0x2a8] ss:$24 sps:$4 sm:$0xff]   ;;  %v10524_v8 = vld [vmem:[%s12068_s15 + $0x2dc] ss:$24 sps:$4 sm:$0xff]   ;;  %v10522_v9 = vld [vmem:[%s12068_s15 + $0x2d8] ss:$24 sps:$4 sm:$0xff]  }
 0x1a9   : > { %1495 = vmatprep.subr.bf16.mxu1 %v10447_v16  ;;  %v10527_v10 = vld [vmem:[%s12068_s15 + $0x14] ss:$24 sps:$4 sm:$0xff]   ;;  %v10525_v11 = vld [vmem:[%s12068_s15 + $0x10] ss:$24 sps:$4 sm:$0xff]   ;;  %v10530_v12 = vld [vmem:[%s12068_s15 + $0x44] ss:$24 sps:$4 sm:$0xff]  }
 0x1aa   : > { %v10528_v13 = vld [vmem:[%s12068_s15 + $0x40] ss:$24 sps:$4 sm:$0xff]   ;;  %v10533_v14 = vld [vmem:[%s12068_s15 + $0x74] ss:$24 sps:$4 sm:$0xff]   ;;  %v10531_v15 = vld [vmem:[%s12068_s15 + $0x70] ss:$24 sps:$4 sm:$0xff]  }
 0x1ab   : > { %v10534_v16 = vld [vmem:[%s12068_s15 + $0xa0] ss:$24 sps:$4 sm:$0xff]   ;;  %v10539_v18 = vld [vmem:[%s12068_s15 + $0xd4] ss:$24 sps:$4 sm:$0xff]   ;;  %v10567_v39 = vld [vmem:[%s12068_s15 + $0x2b0] ss:$24 sps:$4 sm:$0xff]  }
 0x1ac   : > { %1496 = vmatpush1.bf16.msra.mxu1 %v10449_v20  ;;  %v10537_v20 = vld [vmem:[%s12068_s15 + $0xd0] ss:$24 sps:$4 sm:$0xff]   ;;  %v10572_v40 = vld [vmem:[%s12068_s15 + $0x2e4] ss:$24 sps:$4 sm:$0xff]   ;;  %vm8963_vm3 = vcmask 1041409   ;;  %vm8965_vm4 = vcmask 1043459  }
 0x1ad   : > { %1497 = vmatprep.subr.bf16.mxu1 %v10450_v21  ;;  %v10540_v21 = vld [vmem:[%s12068_s15 + $0x100] ss:$24 sps:$4 sm:$0xff]   ;;  %vm8967_vm5 = vcmask 1045509   ;;  %vm8969_vm6 = vcmask 1047559  }
 0x1b0   : > { %1498 = vmatpush1.bf16.msra.mxu1 %v10452_v22  ;;  %v10545_v22 = vld [vmem:[%s12068_s15 + $0x134] ss:$24 sps:$4 sm:$0xff]  }
 0x1b1   : > { %1499 = vmatprep.subr.bf16.mxu1 %v10453_v23  ;;  %v10543_v23 = vld [vmem:[%s12068_s15 + $0x130] ss:$24 sps:$4 sm:$0xff]  }
 0x1b4   : > { %1500 = vmatpush1.bf16.msra.mxu1 %v10455_v24  ;;  %v10548_v24 = vld [vmem:[%s12068_s15 + $0x164] ss:$24 sps:$4 sm:$0xff]  }
 0x1b5   : > { %1501 = vmatprep.subr.bf16.mxu1 %v10456_v25  ;;  %v10546_v25 = vld [vmem:[%s12068_s15 + $0x160] ss:$24 sps:$4 sm:$0xff]  }
 0x1b8   : > { %1502 = vmatpush1.bf16.msra.mxu1 %v10458_v26  ;;  %v10551_v26 = vld [vmem:[%s12068_s15 + $0x194] ss:$24 sps:$4 sm:$0xff]  }
 0x1b9   : > { %1503 = vmatprep.subr.bf16.mxu1 %v10459_v27  ;;  %v10549_v27 = vld [vmem:[%s12068_s15 + $0x190] ss:$24 sps:$4 sm:$0xff]  }
 0x1bc   : > { %1504 = vmatpush1.bf16.msra.mxu1 %v10461_v28  ;;  %v10554_v28 = vld [vmem:[%s12068_s15 + $0x1c4] ss:$24 sps:$4 sm:$0xff]  }
 0x1bd   : > { %1505 = vmatprep.subr.bf16.mxu1 %v10462_v29  ;;  %v10552_v29 = vld [vmem:[%s12068_s15 + $0x1c0] ss:$24 sps:$4 sm:$0xff]  }
 0x1c0   : > { %1506 = vmatpush1.bf16.msra.mxu1 %v10464_v30  ;;  %v10557_v30 = vld [vmem:[%s12068_s15 + $0x1f4] ss:$24 sps:$4 sm:$0xff]  }
 0x1c1   : > { %1507 = vmatprep.subr.bf16.mxu1 %v10465_v31  ;;  %v10555_v31 = vld [vmem:[%s12068_s15 + $0x1f0] ss:$24 sps:$4 sm:$0xff]  }
 0x1c4   : > { %1508 = vmatpush1.bf16.msra.mxu1 %v10467_v32  ;;  %v10560_v32 = vld [vmem:[%s12068_s15 + $0x224] ss:$24 sps:$4 sm:$0xff]  }
 0x1c5   : > { %1509 = vmatprep.subr.bf16.mxu1 %v10468_v33  ;;  %v10558_v33 = vld [vmem:[%s12068_s15 + $0x220] ss:$24 sps:$4 sm:$0xff]  }
 0x1c8   : > { %1510 = vmatpush1.bf16.msra.mxu1 %v10470_v34  ;;  %v10563_v34 = vld [vmem:[%s12068_s15 + $0x254] ss:$24 sps:$4 sm:$0xff]  }
 0x1c9   : > { %1511 = vmatprep.subr.bf16.mxu1 %v10471_v35  ;;  %v10561_v35 = vld [vmem:[%s12068_s15 + $0x250] ss:$24 sps:$4 sm:$0xff]  }
 0x1cc   : > { %1512 = vmatpush1.bf16.msra.mxu1 %v10473_v36  ;;  %v10566_v36 = vld [vmem:[%s12068_s15 + $0x284] ss:$24 sps:$4 sm:$0xff]  }
 0x1cd   : > { %1513 = vmatprep.subr.bf16.mxu1 %v10474_v37  ;;  %v10564_v37 = vld [vmem:[%s12068_s15 + $0x280] ss:$24 sps:$4 sm:$0xff]  }
 0x1d0   : > { %1514 = vmatpush1.bf16.msra.mxu1 %v10476_v38  ;;  %v10569_v38 = vld [vmem:[%s12068_s15 + $0x2b4] ss:$24 sps:$4 sm:$0xff]  }
 0x1d1   : > { %1526 = vmatprep.subr.bf16.mxu1 %v10479_v41  ;;  %v10570_v41 = vld [vmem:[%s12068_s15 + $0x2e0] ss:$24 sps:$4 sm:$0xff]  }
 0x1d3   : > { %1516 = vmatmul.mubr.bf16.vlgmr.msra.gmra.mrb[0].mxu1 %v12180_v43 }
 0x1d4   : > { %1527 = vmatpush1.bf16.msra.mxu1 %v10477_v42  ;;  %1558 = vmatprep.mubr.bf16.mxu1 %v12156_v19  ;;  %v11550_v42 = vmov 0.0  }
 0x1d5   : > { %1528 = vmatprep.subr.bf16.mxu1 %v10482_v44  ;;  %10099 = vmatprep.subr.mxu0 %v11550_v42 }
 0x1d6   : > { %10101 = vmatprep.mubr.msk.f32.mxu0 %vm11551_vm0, %v11550_v42 }
 0x1d8   : > { %1529 = vmatpush1.bf16.msra.mxu1 %v10480_v45 }
 0x1d9   : > { %1530 = vmatprep.subr.bf16.mxu1 %v10485_v46 }
 0x1dc   : > { %1531 = vmatpush1.bf16.msra.mxu1 %v10483_v47 }
 0x1dd   : > { %1532 = vmatprep.subr.bf16.mxu1 %v10488_v48  ;;  %v973_v48 = vlaneseq }
 0x1e0   : > { %1533 = vmatpush1.bf16.msra.mxu1 %v10486_v49 }
 0x1e1   : > { %1534 = vmatprep.subr.bf16.mxu1 %v10491_v50  ;;  %v12265_v50 = vld [vmem:[%s12079_s28] sm:$0x3f]  ;;  %s11555_s28 = smov 32  }
 0x1e4   : > { %1535 = vmatpush1.bf16.msra.mxu1 %v10489_v51 }
 0x1e5   : > { %1536 = vmatprep.subr.bf16.mxu1 %v10494_v52 }
 0x1e8   : > { %1537 = vmatpush1.bf16.msra.mxu1 %v10492_v53 }
 0x1e9   : > { %1538 = vmatprep.subr.bf16.mxu1 %v10497_v54 }
 0x1ec   : > { %1539 = vmatpush1.bf16.msra.mxu1 %v10495_v55 }
 0x1ed   : > { %1540 = vmatprep.subr.bf16.mxu1 %v10500_v56 }
 0x1f0   : > { %1541 = vmatpush1.bf16.msra.mxu1 %v10498_v57 }
 0x1f1   : > { %1542 = vmatprep.subr.bf16.mxu1 %v10503_v58 }
 0x1f4   : > { %1543 = vmatpush1.bf16.msra.mxu1 %v10501_v59 }
 0x1f5   : > { %1544 = vmatprep.subr.bf16.mxu1 %v10506_v60 }
 0x1f8   : > { %1545 = vmatpush1.bf16.msra.mxu1 %v10504_v61 }
 0x1f9   : > { %1546 = vmatprep.subr.bf16.mxu1 %v10509_v62 }
 0x1fc   : > { %1547 = vmatpush1.bf16.msra.mxu1 %v10507_v63 }
 0x1fd   : > { %1548 = vmatprep.subr.bf16.mxu1 %v10512_v0 }
 0x200   : > { %1549 = vmatpush1.bf16.msra.mxu1 %v10510_v1 }
 0x201   : > { %1550 = vmatprep.subr.bf16.mxu1 %v10515_v2 }
 0x204   : > { %1551 = vmatpush1.bf16.msra.mxu1 %v10513_v3 }
 0x205   : > { %1552 = vmatprep.subr.bf16.mxu1 %v10518_v4 }
 0x208   : > { %1553 = vmatpush1.bf16.msra.mxu1 %v10516_v5 }
 0x209   : > { %1554 = vmatprep.subr.bf16.mxu1 %v10521_v6 }
 0x20c   : > { %1555 = vmatpush1.bf16.msra.mxu1 %v10519_v7 }
 0x20d   : > { %1556 = vmatprep.subr.bf16.mxu1 %v10524_v8 }
 0x210   : > { %1557 = vmatpush1.bf16.msra.mxu1 %v10522_v9 }
 0x211   : > { %1569 = vmatprep.subr.bf16.mxu1 %v10527_v10 }
 0x213   : > { %1559 = vmatmul.mubr.bf16.vlgmr.msra.gmra.mrb[4].mxu1 %v12180_v43 }
 0x214   : > { %1570 = vmatpush1.bf16.msra.mxu1 %v10525_v11  ;;  %1601 = vmatprep.mubr.bf16.mxu1 %v12156_v19  ;;  %v10542_v19 = vld [vmem:[%s12068_s15 + $0x104] ss:$24 sps:$4 sm:$0xff]   ;;  %s11552_s15 = smov 96  }
 0x215   : > { %1571 = vmatprep.subr.bf16.mxu1 %v10530_v12 }
 0x218   : > { %1572 = vmatpush1.bf16.msra.mxu1 %v10528_v13 }
 0x219   : > { %1573 = vmatprep.subr.bf16.mxu1 %v10533_v14 }
 0x21c   : > { %1574 = vmatpush1.bf16.msra.mxu1 %v10531_v15 }
 0x21d   : > { %1575 = vmatprep.subr.bf16.mxu1 %v10536_v17 }
 0x220   : > { %1576 = vmatpush1.bf16.msra.mxu1 %v10534_v16 }
 0x221   : > { %1577 = vmatprep.subr.bf16.mxu1 %v10539_v18 }
 0x224   : > { %1578 = vmatpush1.bf16.msra.mxu1 %v10537_v20 }
 0x225   : > { %1579 = vmatprep.subr.bf16.mxu1 %v10542_v19 }
 0x228   : > { %1580 = vmatpush1.bf16.msra.mxu1 %v10540_v21 }
 0x229   : > { %1581 = vmatprep.subr.bf16.mxu1 %v10545_v22 }
 0x22c   : > { %1582 = vmatpush1.bf16.msra.mxu1 %v10543_v23 }
 0x22d   : > { %1583 = vmatprep.subr.bf16.mxu1 %v10548_v24 }
 0x230   : > { %1584 = vmatpush1.bf16.msra.mxu1 %v10546_v25 }
 0x231   : > { %1585 = vmatprep.subr.bf16.mxu1 %v10551_v26 }
 0x234   : > { %1586 = vmatpush1.bf16.msra.mxu1 %v10549_v27 }
 0x235   : > { %1587 = vmatprep.subr.bf16.mxu1 %v10554_v28 }
 0x238   : > { %1588 = vmatpush1.bf16.msra.mxu1 %v10552_v29 }
 0x239   : > { %1589 = vmatprep.subr.bf16.mxu1 %v10557_v30 }
 0x23c   : > { %1590 = vmatpush1.bf16.msra.mxu1 %v10555_v31 }
 0x23d   : > { %1591 = vmatprep.subr.bf16.mxu1 %v10560_v32 }
 0x240   : > { %1592 = vmatpush1.bf16.msra.mxu1 %v10558_v33 }
 0x241   : > { %1593 = vmatprep.subr.bf16.mxu1 %v10563_v34 }
 0x244   : > { %1594 = vmatpush1.bf16.msra.mxu1 %v10561_v35 }
 0x245   : > { %1595 = vmatprep.subr.bf16.mxu1 %v10566_v36 }
 0x248   : > { %1596 = vmatpush1.bf16.msra.mxu1 %v10564_v37 }
 0x249   : > { %1597 = vmatprep.subr.bf16.mxu1 %v10569_v38 }
 0x24c   : > { %1598 = vmatpush1.bf16.msra.mxu1 %v10567_v39 }
 0x24d   : > { %1599 = vmatprep.subr.bf16.mxu1 %v10572_v40 }
 0x250   : > { %1600 = vmatpush1.bf16.msra.mxu1 %v10570_v41 }
 0x251   : > { %10089 = vmatprep.subr.mxu1 %v11550_v42 }
 0x253   : > { %1602 = vmatmul.mubr.bf16.vlgmr.msra.gmra.mrb[8].mxu1 %v12180_v43  ;;  %v12259_v43 = vshrl.u32 %v973_v48, 7 }
 0x254   : > { %10091 = vmatprep.mubr.msk.f32.mxu1 %vm11551_vm0, %v11550_v42 }
 0x255   : > { %v12262_v49 = vsub.s32 2, %v12259_v43  ;;  %v12268_v51 = vsub.s32 0, %v12259_v43  ;;  %v12307_v62 = vsub.s32 4, %v12259_v43  ;;  %v12310_v63 = vsub.s32 5, %v12259_v43 }
 0x257   : > { %v984_v52 = vrot.slane %v12265_v50, %v12262_v49  ;;  %v976_v53 = vrot.slane %v12265_v50, %v12268_v51  ;;  %v992_v0 = vrot.slane %v12265_v50, %v12307_v62  ;;  %v12316_v2 = vrot.slane %v12265_v50, %v12310_v63 }
 0x2a6   : > { %v1517_v44 = vpop.f32.mrb[0].mxu1 }
 0x2a7   : > { %v12255_v45 = vpop.f32.mrb[1].mxu1  ;;  %v12284_v59 = vadd.f32 %v1517_v44, %v976_v53 }
 0x2a8   : > { %v1521_v46 = vpop.f32.mrb[2].mxu1 }
 0x2a9   : > { %v12257_v47 = vpop.f32.mrb[3].mxu1  ;;  %v12295_v61 = vadd.f32 %v1521_v46, %v976_v53 }
 0x2e6   : > { %v1560_v54 = vpop.f32.mrb[4].mxu1 }
 0x2e7   : > { %v12274_v55 = vadd.f32 %v1560_v54, %v984_v52  ;;  %v12276_v56 = vpop.f32.mrb[5].mxu1 }
 0x2e8   : > { %v1564_v57 = vpop.f32.mrb[6].mxu1 }
 0x2e9   : > { %v12278_v58 = vpop.f32.mrb[7].mxu1  ;;  %1943 = vrot.lane.b32.xlu1 %v12274_v55, %s11552_s15  ;;  %10090 = vmatpush3.xpose.msk.msra.mxu1 %vm1612_vm1, %v12274_v55  ;;  %v12287_v60 = vadd.f32 %v1564_v57, %v984_v52 }
 0x2ea   : > { %10094 = vmatprep.subr.mxu1 %v11550_v42 }
 0x2ec   : > { %10092 = vmatmul.mubr.msk.f32.vlgmr.msra.gmra.mrb[12].mxu1 %vm1612_vm1, %v12284_v59 }
 0x2ed   : > { %1941 = vrot.lane.b32.xlu1 %v12284_v59, %s11552_s15  ;;  %10095 = vmatpush3.xpose.msk.msra.mxu1 %vm1612_vm1, %v12287_v60 }
 0x2ee   : > { %10096 = vmatprep.mubr.msk.f32.mxu1 %vm11551_vm0, %v11550_v42  ;;  %10104 = vmatprep.subr.mxu1 %v11550_v42 }
 0x2f0   : > { %10097 = vmatmul.mubr.msk.f32.vlgmr.msra.gmra.mrb[14].mxu1 %vm1612_vm1, %v12295_v61 }
 0x2f1   : > { %2019 = vrot.lane.b32.xlu1 %v12295_v61, %s11552_s15  ;;  %10106 = vmatprep.mubr.msk.f32.mxu1 %vm11551_vm0, %v11550_v42 }
 0x326   : > { %v1603_v1 = vpop.f32.mrb[8].mxu1 }
 0x327   : > { %v12318_v3 = vadd.f32 %v1603_v1, %v992_v0  ;;  %v12320_v4 = vpop.f32.mrb[9].mxu1 }
 0x328   : > { %v1607_v5 = vpop.f32.mrb[10].mxu1 }
 0x329   : > { %v12322_v6 = vadd.f32 %v1607_v5, %v992_v0  ;;  %v1609_v7 = vpop.f32.mrb[11].mxu1  ;;  %10100 = vmatpush3.msra.mxu0 %v12318_v3 }
 0x32a   : > { %v12326_v8 = vadd.f32 %v1609_v7, %v12316_v2  ;;  %10144 = vmatprep.subr.mxu0 %v11550_v42 }
 0x32b   : > { %10105 = vmatpush3.msra.mxu1 %v12322_v6 }
 0x32c   : > { %10109 = vmatprep.subr.mxu1 %v11550_v42 }
 0x35b   : > { %v1944_v21 = vpop.permute.xlu1 %1943 }
 0x35f   : > { %v1942_v24 = vpop.permute.xlu1 %1941 }
 0x363   : > { %v2020_v26 = vpop.permute.xlu1 %2019 }
 0x3bf   : > { %v1685_v9 = vpop.f32.mrb[12].mxu1 }
 0x3c0   : > { %v10093_v10 = vpop.f32.mrb[13].mxu1  ;;  %v1765_v32 = vmul.f32 0.17677669, %v1685_v9 }
 0x3c2   : > { %v1768_v37 = vsel %vm1767_vm2, %v1765_v32, -inf }
 0x3c3   : > { %v1761_v11 = vpop.f32.mrb[14].mxu1 }
 0x3c4   : > { %v1766_v12 = vmul.f32 0.17677669, %v1761_v11  ;;  %v10098_v13 = vpop.f32.mrb[15].mxu1 }
 0x3c6   : > { %v1771_v14 = vsel %vm1767_vm2, %v1766_v12, -inf }
 0x3c7   : > { %1772 = vmax.xlane.f32.xlu0 %v1771_v14 }
 0x454   : > { %v1773_v15 = vpop.xlane.xlu0 %1772 }
 0x455   : > { %v1775_v16 = vsub.f32 %v1766_v12, %v1773_v15 }
 0x457   : > { %v1778_v17 = vmul.f32 1.442695, %v1775_v16 }
 0x459   : > { %11005 = vpow2.f32 %v1778_v17 }
 0x463   : > { %v11006_v18 = vpop.eup %11005 }
 0x464   : > { %v1783_v20 = vsel %vm1767_vm2, %v11006_v18, 0.0 }
 0x465   : > { %1784 = vadd.xlane.f32.xlu0 %v1783_v20 }
 0x47b   : > { %2021 = vrot.lane.b32.xlu0 %v12287_v60, %s11552_s15 }
 0x4f2   : > { %v1785_v19 = vpop.xlane.xlu0 %1784 }
 0x4f3   : > { %11007 = vrcp.f32 %v1785_v19 }
 0x4f6   : > { %v2022_v25 = vpop.permute.xlu0 %2021 }
 0x4fd   : > { %v11008_v22 = vpop.eup %11007 }
 0x4fe   : > { %v1789_v23 = vmul.f32 %v11008_v22, %v11006_v18  ;;  %v10575_v22 = vld [vmem:[%s12089_s6 + $0x24] ss:$8 sps:$4 sm:$0xff]  }
 0x500   : > { %10107 = vmatmul.mubr.msk.f32.vlgmr.msra.gmra.mrb[16].mxu1 %vm1767_vm2, %v1789_v23  ;;  %v10576_v23 = vld [vmem:[%s12089_s6 + $0x30] ss:$8 sps:$4 sm:$0xff]  }
 0x501   : > { %10110 = vmatpush3.xpose.msk.msra.mxu1 %vm1612_vm1, %v1944_v21  ;;  %10111 = vmatprep.mubr.msk.f32.mxu1 %vm11551_vm0, %v11550_v42  ;;  %v10573_v21 = vld [vmem:[%s12089_s6 + $0x20] ss:$8 sps:$4 sm:$0xff]  }
 0x502   : > { %10114 = vmatprep.subr.mxu1 %v11550_v42 }
 0x504   : > { %10112 = vmatmul.mubr.msk.f32.vlgmr.msra.gmra.mrb[18].mxu1 %vm1612_vm1, %v1942_v24  ;;  %v10578_v24 = vld [vmem:[%s12089_s6 + $0x34] ss:$8 sps:$4 sm:$0xff]  }
 0x505   : > { %10115 = vmatpush3.xpose.msk.msra.mxu1 %vm1612_vm1, %v2022_v25  ;;  %10116 = vmatprep.mubr.msk.f32.mxu1 %vm11551_vm0, %v11550_v42  ;;  %v10581_v25 = vld [vmem:[%s12089_s6 + $0x4] ss:$8 sps:$4 sm:$0xff]  }
 0x506   : > { %10119 = vmatprep.subr.mxu1 %v11550_v42 }
 0x508   : > { %10117 = vmatmul.mubr.msk.f32.vlgmr.msra.gmra.mrb[20].mxu1 %vm1612_vm1, %v2020_v26  ;;  %v11554_v26 = vmov 0  }
 0x509   : > { %10121 = vmatprep.mubr.msk.f32.mxu1 %vm11551_vm0, %v11550_v42 }
 0x5d3   : > { %v12348_v27 = vpop.f32.mrb[16].mxu1 }
 0x5d4   : > { %v10108_v28 = vpop.f32.mrb[17].mxu1 }
 0x5d7   : > { %v2015_v29 = vpop.f32.mrb[18].mxu1 }
 0x5d8   : > { %v2097_v30 = vmul.f32 0.17677669, %v2015_v29  ;;  %v10113_v31 = vpop.f32.mrb[19].mxu1 }
 0x5da   : > { %v2099_v33 = vsel %vm1767_vm2, %v2097_v30, -inf }
 0x5db   : > { %2100 = vmax.xlane.f32.xlu1 %v2099_v33  ;;  %v2093_v34 = vpop.f32.mrb[20].mxu1 }
 0x5dc   : > { %v2098_v35 = vmul.f32 0.17677669, %v2093_v34  ;;  %v10118_v36 = vpop.f32.mrb[21].mxu1  ;;  %v10579_v34 = vld [vmem:[%s12089_s6] ss:$8 sps:$4 sm:$0xff]  }
 0x5de   : > { %v2102_v38 = vsel %vm1767_vm2, %v2098_v35, -inf }
 0x5df   : > { %1769 = vmax.xlane.f32.xlu1 %v1768_v37  ;;  %2103 = vmax.xlane.f32.xlu0 %v2102_v38  ;;  %v10584_v37 = vld [vmem:[%s12089_s6 + $0x14] ss:$8 sps:$4 sm:$0xff]   ;;  %v10582_v38 = vld [vmem:[%s12089_s6 + $0x10] ss:$8 sps:$4 sm:$0xff]  }
 0x5f5   : > { %2122 = vrot.lane.b32.xlu0 %v12318_v3, %s11552_s15 }
 0x5f9   : > { %2412 = vrot.lane.b32.xlu0 %v12284_v59, %s11553_s19 }
 0x5fd   : > { %2490 = vrot.lane.b32.xlu0 %v12295_v61, %s11553_s19 }
 0x668   : > { %v2101_v39 = vpop.xlane.xlu1 %2100 }
 0x669   : > { %v2105_v40 = vsub.f32 %v2097_v30, %v2101_v39 }
 0x66b   : > { %v2107_v48 = vmul.f32 1.442695, %v2105_v40 }
 0x66c   : > { %v1770_v41 = vpop.xlane.xlu1 %1769  ;;  %v2104_v44 = vpop.xlane.xlu0 %2103 }
 0x66d   : > { %v1774_v46 = vsub.f32 %v1765_v32, %v1770_v41  ;;  %v2106_v53 = vsub.f32 %v2098_v35, %v2104_v44 }
 0x66f   : > { %v1776_v52 = vmul.f32 1.442695, %v1774_v46  ;;  %v2109_v57 = vmul.f32 1.442695, %v2106_v53 }
 0x670   : > { %v2123_v54 = vpop.permute.xlu0 %2122 }
 0x671   : > { %11009 = vpow2.f32 %v1776_v52  ;;  %10120 = vmatpush3.msra.mxu1 %v2123_v54 }
 0x672   : > { %10124 = vmatprep.subr.mxu1 %v11550_v42  ;;  %11011 = vpow2.f32 %v2107_v48 }
 0x673   : > { %11013 = vpow2.f32 %v2109_v57 }
 0x674   : > { %v2413_v39 = vpop.permute.xlu0 %2412 }
 0x678   : > { %v2491_v41 = vpop.permute.xlu0 %2490 }
 0x67b   : > { %v11010_v0 = vpop.eup %11009 }
 0x67c   : > { %v1780_v1 = vsel %vm1767_vm2, %v11010_v0, 0.0  ;;  %v11012_v5 = vpop.eup %11011 }
 0x67d   : > { %1781 = vadd.xlane.f32.xlu1 %v1780_v1  ;;  %v2111_v7 = vsel %vm1767_vm2, %v11012_v5, 0.0  ;;  %v11014_v9 = vpop.eup %11013 }
 0x67e   : > { %v2114_v10 = vsel %vm1767_vm2, %v11014_v9, 0.0 }
 0x681   : > { %2112 = vadd.xlane.f32.xlu1 %v2111_v7 }
 0x685   : > { %2115 = vadd.xlane.f32.xlu1 %v2114_v10 }
 0x696   : > { %2199 = vrot.lane.b32.xlu1 %v12322_v6, %s11552_s15 }
 0x69a   : > { %2414 = vrot.lane.b32.xlu1 %v12274_v55, %s11553_s19 }
 0x69e   : > { %2492 = vrot.lane.b32.xlu1 %v12287_v60, %s11553_s19 }
 0x70a   : > { %v1782_v11 = vpop.xlane.xlu1 %1781 }
 0x70b   : > { %11015 = vrcp.f32 %v1782_v11 }
 0x70e   : > { %v2113_v12 = vpop.xlane.xlu1 %2112 }
 0x70f   : > { %11017 = vrcp.f32 %v2113_v12 }
 0x712   : > { %v2116_v13 = vpop.xlane.xlu1 %2115 }
 0x713   : > { %11019 = vrcp.f32 %v2116_v13 }
 0x715   : > { %v11016_v14 = vpop.eup %11015 }
 0x716   : > { %v1788_v15 = vmul.f32 %v11016_v14, %v11010_v0  ;;  %v2200_v18 = vpop.permute.xlu1 %2199 }
 0x718   : > { %10102 = vmatmul.mubr.msk.f32.vlgmr.msra.gmra.mrb[0].mxu0 %vm1767_vm2, %v1788_v15 }
 0x719   : > { %v11018_v16 = vpop.eup %11017  ;;  %10146 = vmatprep.mubr.msk.f32.mxu0 %vm11551_vm0, %v11550_v42 }
 0x71a   : > { %v2119_v17 = vmul.f32 %v11018_v16, %v11012_v5 }
 0x71c   : > { %10122 = vmatmul.mubr.msk.f32.vlgmr.msra.gmra.mrb[22].mxu1 %vm1767_vm2, %v2119_v17 }
 0x71d   : > { %v11020_v20 = vpop.eup %11019  ;;  %10125 = vmatpush3.msra.mxu1 %v2200_v18  ;;  %10126 = vmatprep.mubr.msk.f32.mxu1 %vm11551_vm0, %v11550_v42 }
 0x71e   : > { %v2120_v19 = vmul.f32 %v11020_v20, %v11014_v9  ;;  %2303 = vmatprep.subr.bf16.mxu1 %v10575_v22 }
 0x720   : > { %10127 = vmatmul.mubr.msk.f32.vlgmr.msra.gmra.mrb[24].mxu1 %vm1767_vm2, %v2120_v19 }
 0x721   : > { %2304 = vmatpush1.bf16.msra.mxu1 %v10573_v21  ;;  %2335 = vmatprep.mubr.bf16.mxu1 %v11554_v26 }
 0x722   : > { %2305 = vmatprep.subr.bf16.mxu1 %v10578_v24 }
 0x725   : > { %2306 = vmatpush1.bf16.msra.mxu1 %v10576_v23 }
 0x726   : > { %2369 = vmatprep.subr.bf16.mxu1 %v10581_v25 }
 0x7eb   : > { %v1859_v28 = vpop.f32.mrb[0].mxu0 }
 0x7ec   : > { %v1936_v29 = vpack.c.bf16 %v12348_v27, %v1859_v28  ;;  %v10103_v30 = vpop.f32.mrb[1].mxu0  ;;  %v2415_v27 = vpop.permute.xlu1 %2414  ;;  %v12434_v28 = vsub.s32 3, %v12259_v43 }
 0x7ed   : > { %v12441_v30 = vsub.s32 1, %v12259_v43 }
 0x7ef   : > { %v2194_v31 = vpop.f32.mrb[22].mxu1 }
 0x7f0   : > { %v10123_v32 = vpop.f32.mrb[23].mxu1  ;;  %v2493_v40 = vpop.permute.xlu1 %2492 }
 0x7f1   : > { %v980_v32 = vrot.slane %v12265_v50, %v12441_v30 }
 0x7f3   : > { %v2271_v33 = vpop.f32.mrb[24].mxu1 }
 0x7f4   : > { %v2275_v35 = vpack.c.bf16 %v2271_v33, %v2194_v31  ;;  %v10128_v36 = vpop.f32.mrb[25].mxu1 }
 0x7f6   : > { %9427 = vmatmul.mubr.msk.bf16.vlgmr.msra.gmra.mrb[28].mxu1 %vm1612_vm1, %v2275_v35  ;;  %v12456_v35 = vadd.f32 %v12255_v45, %v980_v32  ;;  %v12474_v45 = vadd.f32 %v12320_v4, %v12316_v2 }
 0x7f7   : > { %2370 = vmatpush1.bf16.msra.mxu1 %v10579_v34  ;;  %2401 = vmatprep.mubr.bf16.mxu1 %v11554_v26 }
 0x7f8   : > { %2371 = vmatprep.subr.bf16.mxu1 %v10584_v37 }
 0x7fb   : > { %2372 = vmatpush1.bf16.msra.mxu1 %v10582_v38 }
 0x7fc   : > { %10129 = vmatprep.subr.mxu1 %v11550_v42 }
 0x802   : > { %9432 = vmatmul.mubr.msk.bf16.vlgmr.msra.gmra.mrb[28].mxu1 %vm1612_vm1, %v1936_v29 }
 0x803   : > { %10131 = vmatprep.mubr.msk.f32.mxu1 %vm11551_vm0, %v11550_v42 }
 0x804   : > { %10130 = vmatpush3.xpose.msk.msra.mxu1 %vm1612_vm1, %v2415_v27 }
 0x805   : > { %10134 = vmatprep.subr.mxu1 %v11550_v42 }
 0x80a   : > { %10132 = vmatmul.mubr.msk.f32.vlgmr.msra.gmra.mrb[26].mxu1 %vm1612_vm1, %v2413_v39 }
 0x80b   : > { %10135 = vmatpush3.xpose.msk.msra.mxu1 %vm1612_vm1, %v2493_v40  ;;  %10136 = vmatprep.mubr.msk.f32.mxu1 %vm11551_vm0, %v11550_v42 }
 0x80c   : > { %10139 = vmatprep.subr.mxu1 %v11550_v42 }
 0x80e   : > { %10137 = vmatmul.mubr.msk.f32.vlgmr.msra.gmra.mrb[32].mxu1 %vm1612_vm1, %v2491_v41 }
 0x80f   : > { %10141 = vmatprep.mubr.msk.f32.mxu1 %vm11551_vm0, %v11550_v42 }
 0x8dd   : > { %v12402_v44 = vpop.f32.mrb[26].mxu1 }
 0x8de   : > { %v10133_v46 = vpop.f32.mrb[27].mxu1 }
 0x8e1   : > { %v2564_v48 = vpop.f32.mrb[32].mxu1 }
 0x8e2   : > { %v2569_v52 = vmul.f32 0.17677669, %v2564_v48  ;;  %v10138_v53 = vpop.f32.mrb[33].mxu1 }
 0x8e4   : > { %v2573_v54 = vsel %vm1767_vm2, %v2569_v52, -inf }
 0x8e5   : > { %2574 = vmax.xlane.f32.xlu1 %v2573_v54 }
 0x8f6   : > { %2821 = vrot.lane.b32.xlu1 %v12274_v55, %s11555_s28 }
 0x8fa   : > { %2819 = vrot.lane.b32.xlu1 %v12284_v59, %s11555_s28 }
 0x972   : > { %v2575_v57 = vpop.xlane.xlu1 %2574 }
 0x973   : > { %v2577_v0 = vsub.f32 %v2569_v52, %v2575_v57 }
 0x975   : > { %v2580_v1 = vmul.f32 1.442695, %v2577_v0 }
 0x976   : > { %v2822_v11 = vpop.permute.xlu1 %2821 }
 0x977   : > { %11021 = vpow2.f32 %v2580_v1 }
 0x97a   : > { %v2820_v12 = vpop.permute.xlu1 %2819 }
 0x981   : > { %v11022_v5 = vpop.eup %11021 }
 0x982   : > { %v2585_v7 = vsel %vm1767_vm2, %v11022_v5, 0.0 }
 0x983   : > { %2586 = vadd.xlane.f32.xlu0 %v2585_v7 }
 0x999   : > { %2668 = vrot.lane.b32.xlu0 %v12322_v6, %s11553_s19 }
 0xa10   : > { %v2587_v9 = vpop.xlane.xlu0 %2586 }
 0xa11   : > { %11023 = vrcp.f32 %v2587_v9 }
 0xa14   : > { %v2669_v10 = vpop.permute.xlu0 %2668 }
 0xa15   : > { %10145 = vmatpush3.msra.mxu0 %v2669_v10  ;;  %v2568_v10 = vmul.f32 0.17677669, %v12402_v44 }
 0xa16   : > { %10149 = vmatprep.subr.mxu0 %v11550_v42 }
 0xa1b   : > { %v11024_v55 = vpop.eup %11023 }
 0xa1c   : > { %v2591_v59 = vmul.f32 %v11024_v55, %v11022_v5  ;;  %v2570_v55 = vsel %vm1767_vm2, %v2568_v10, -inf }
 0xa1e   : > { %10147 = vmatmul.mubr.msk.f32.vlgmr.msra.gmra.mrb[2].mxu0 %vm1767_vm2, %v2591_v59 }
 0xa1f   : > { %10150 = vmatpush3.xpose.msk.msra.mxu0 %vm1612_vm1, %v2822_v11  ;;  %10151 = vmatprep.mubr.msk.f32.mxu0 %vm11551_vm0, %v11550_v42 }
 0xa20   : > { %10154 = vmatprep.subr.mxu0 %v11550_v42 }
 0xa22   : > { %10152 = vmatmul.mubr.msk.f32.vlgmr.msra.gmra.mrb[4].mxu0 %vm1612_vm1, %v2820_v12 }
 0xa23   : > { %10156 = vmatprep.mubr.msk.f32.mxu0 %vm11551_vm0, %v11550_v42 }
 0xaf1   : > { %v12421_v13 = vpop.f32.mrb[2].mxu0 }
 0xaf2   : > { %v10148_v14 = vpop.f32.mrb[3].mxu0 }
 0xaf5   : > { %v2893_v15 = vpop.f32.mrb[4].mxu0 }
 0xaf6   : > { %v2975_v16 = vmul.f32 0.17677669, %v2893_v15  ;;  %v10153_v17 = vpop.f32.mrb[5].mxu0 }
 0xaf8   : > { %v2977_v18 = vsel %vm1767_vm2, %v2975_v16, -inf }
 0xaf9   : > { %2978 = vmax.xlane.f32.xlu0 %v2977_v18 }
 0xb0f   : > { %2899 = vrot.lane.b32.xlu0 %v12287_v60, %s11555_s28 }
 0xb13   : > { %2999 = vrot.lane.b32.xlu0 %v12318_v3, %s11555_s28 }
 0xb86   : > { %v2979_v20 = vpop.xlane.xlu0 %2978 }
 0xb87   : > { %v2983_v19 = vsub.f32 %v2975_v16, %v2979_v20 }
 0xb89   : > { %v2985_v21 = vmul.f32 1.442695, %v2983_v19 }
 0xb8a   : > { %v2900_v22 = vpop.permute.xlu0 %2899 }
 0xb8b   : > { %11025 = vpow2.f32 %v2985_v21  ;;  %10155 = vmatpush3.xpose.msk.msra.mxu0 %vm1612_vm1, %v2900_v22 }
 0xb8c   : > { %10159 = vmatprep.subr.mxu0 %v11550_v42 }
 0xb8e   : > { %v3000_v29 = vpop.permute.xlu0 %2999 }
 0xb95   : > { %v11026_v23 = vpop.eup %11025 }
 0xb96   : > { %v2989_v24 = vsel %vm1767_vm2, %v11026_v23, 0.0 }
 0xb97   : > { %2990 = vadd.xlane.f32.xlu1 %v2989_v24 }
 0xba8   : > { %2897 = vrot.lane.b32.xlu1 %v12295_v61, %s11555_s28  ;;  %v988_v61 = vrot.slane %v12265_v50, %v12434_v28  ;;  %v12469_v50 = vadd.f32 %v12257_v47, %v980_v32 }
 0xbaa   : > { %v12448_v34 = vadd.f32 %v12276_v56, %v988_v61  ;;  %v12460_v36 = vadd.f32 %v12278_v58, %v988_v61 }
 0xc24   : > { %v2991_v60 = vpop.xlane.xlu1 %2990 }
 0xc25   : > { %11027 = vrcp.f32 %v2991_v60 }
 0xc28   : > { %v2898_v25 = vpop.permute.xlu1 %2897 }
 0xc29   : > { %10157 = vmatmul.mubr.msk.f32.vlgmr.msra.gmra.mrb[6].mxu0 %vm1612_vm1, %v2898_v25 }
 0xc2a   : > { %10160 = vmatpush3.msra.mxu0 %v3000_v29  ;;  %10161 = vmatprep.mubr.msk.f32.mxu0 %vm11551_vm0, %v11550_v42 }
 0xc2b   : > { %10169 = vmatprep.subr.mxu0 %v11550_v42 }
 0xc2f   : > { %v11028_v31 = vpop.eup %11027 }
 0xc30   : > { %v2997_v33 = vmul.f32 %v11028_v31, %v11026_v23 }
 0xc32   : > { %10162 = vmatmul.mubr.msk.f32.vlgmr.msra.gmra.mrb[8].mxu0 %vm1767_vm2, %v2997_v33 }
 0xc33   : > { %10170 = vmatpush3.xpose.msk.msra.mxu0 %vm1612_vm1, %v12448_v34  ;;  %10171 = vmatprep.mubr.msk.f32.mxu0 %vm11551_vm0, %v11550_v42 }
 0xc34   : > { %10174 = vmatprep.subr.mxu0 %v11550_v42 }
 0xc36   : > { %10172 = vmatmul.mubr.msk.f32.vlgmr.msra.gmra.mrb[10].mxu0 %vm1612_vm1, %v12456_v35 }
 0xc37   : > { %10175 = vmatpush3.xpose.msk.msra.mxu0 %vm1612_vm1, %v12460_v36  ;;  %10176 = vmatprep.mubr.msk.f32.mxu0 %vm11551_vm0, %v11550_v42 }
 0xc38   : > { %10179 = vmatprep.subr.mxu0 %v11550_v42 }
 0xc3a   : > { %10177 = vmatmul.mubr.msk.f32.vlgmr.msra.gmra.mrb[12].mxu0 %vm1612_vm1, %v12469_v50 }
 0xc3b   : > { %10180 = vmatpush3.msra.mxu0 %v12474_v45  ;;  %10181 = vmatprep.mubr.msk.f32.mxu0 %vm11551_vm0, %v11550_v42 }
 0xc3c   : > { %10184 = vmatprep.subr.mxu0 %v11550_v42 }
 0xcfc   : > { %v12482_v56 = vpop.f32.mrb[6].mxu0 }
 0xcfd   : > { %v10158_v47 = vpop.f32.mrb[7].mxu0 }
 0xd05   : > { %v12484_v58 = vpop.f32.mrb[8].mxu0 }
 0xd06   : > { %v10163_v37 = vpop.f32.mrb[9].mxu0 }
 0xd09   : > { %v3298_v38 = vpop.f32.mrb[10].mxu0 }
 0xd0a   : > { %v3378_v27 = vmul.f32 0.17677669, %v3298_v38  ;;  %v10173_v2 = vpop.f32.mrb[11].mxu0 }
 0xd0c   : > { %v3380_v4 = vsel %vm1767_vm2, %v3378_v27, -inf }
 0xd0d   : > { %3381 = vmax.xlane.f32.xlu1 %v3380_v4  ;;  %v3374_v39 = vpop.f32.mrb[12].mxu0 }
 0xd0e   : > { %v3379_v40 = vmul.f32 0.17677669, %v3374_v39  ;;  %v10178_v41 = vpop.f32.mrb[13].mxu0 }
 0xd10   : > { %v3383_v46 = vsel %vm1767_vm2, %v3379_v40, -inf }
 0xd11   : > { %3384 = vmax.xlane.f32.xlu0 %v3383_v46 }
 0xd1e   : > { %3623 = vrot.lane.b32.xlu1 %v12456_v35, %s11552_s15 }
 0xd9a   : > { %v3382_v48 = vpop.xlane.xlu1 %3381 }
 0xd9b   : > { %v3386_v52 = vsub.f32 %v3378_v27, %v3382_v48  ;;  %v2976_v48 = vmul.f32 0.17677669, %v12482_v56 }
 0xd9d   : > { %v3388_v53 = vmul.f32 1.442695, %v3386_v52  ;;  %v2980_v52 = vsel %vm1767_vm2, %v2976_v48, -inf }
 0xd9e   : > { %v3385_v54 = vpop.xlane.xlu0 %3384  ;;  %v3624_v11 = vpop.permute.xlu1 %3623 }
 0xd9f   : > { %11029 = vpow2.f32 %v3388_v53  ;;  %v3387_v57 = vsub.f32 %v3379_v40, %v3385_v54 }
 0xda1   : > { %v3390_v0 = vmul.f32 1.442695, %v3387_v57 }
 0xda3   : > { %11031 = vpow2.f32 %v3390_v0 }
 0xda9   : > { %v11030_v1 = vpop.eup %11029 }
 0xdaa   : > { %v3392_v5 = vsel %vm1767_vm2, %v11030_v1, 0.0 }
 0xdab   : > { %3393 = vadd.xlane.f32.xlu0 %v3392_v5 }
 0xdad   : > { %v11032_v7 = vpop.eup %11031 }
 0xdae   : > { %v3395_v9 = vsel %vm1767_vm2, %v11032_v7, 0.0 }
 0xdaf   : > { %3396 = vadd.xlane.f32.xlu1 %v3395_v9 }
 0xdc0   : > { %3703 = vrot.lane.b32.xlu1 %v12460_v36, %s11552_s15 }
 0xdc1   : > { %3625 = vrot.lane.b32.xlu0 %v12448_v34, %s11552_s15 }
 0xdc5   : > { %3701 = vrot.lane.b32.xlu0 %v12469_v50, %s11552_s15 }
 0xde4   : > { %2571 = vmax.xlane.f32.xlu0 %v2570_v55 }
 0xe38   : > { %v3394_v59 = vpop.xlane.xlu0 %3393 }
 0xe39   : > { %11033 = vrcp.f32 %v3394_v59 }
 0xe3c   : > { %v3397_v12 = vpop.xlane.xlu1 %3396  ;;  %v3626_v44 = vpop.permute.xlu0 %3625 }
 0xe3d   : > { %11035 = vrcp.f32 %v3397_v12  ;;  %v10587_v12 = vld [vmem:[%s12089_s6 + $0x44] ss:$8 sps:$4 sm:$0xff]  }
 0xe40   : > { %v3704_v18 = vpop.permute.xlu1 %3703  ;;  %v3702_v20 = vpop.permute.xlu0 %3701 }
 0xe43   : > { %v11034_v14 = vpop.eup %11033 }
 0xe44   : > { %v3400_v15 = vmul.f32 %v11034_v14, %v11030_v1  ;;  %v10585_v14 = vld [vmem:[%s12089_s6 + $0x40] ss:$8 sps:$4 sm:$0xff]  }
 0xe46   : > { %10182 = vmatmul.mubr.msk.f32.vlgmr.msra.gmra.mrb[14].mxu0 %vm1767_vm2, %v3400_v15  ;;  %v10590_v15 = vld [vmem:[%s12089_s6 + $0x54] ss:$8 sps:$4 sm:$0xff]  }
 0xe47   : > { %v11036_v16 = vpop.eup %11035  ;;  %10185 = vmatpush3.msra.mxu0 %v12326_v8  ;;  %10186 = vmatprep.mubr.msk.f32.mxu0 %vm11551_vm0, %v11550_v42 }
 0xe48   : > { %v3401_v17 = vmul.f32 %v11036_v16, %v11032_v7  ;;  %10189 = vmatprep.subr.mxu0 %v11550_v42  ;;  %v10588_v16 = vld [vmem:[%s12089_s6 + $0x50] ss:$8 sps:$4 sm:$0xff]  }
 0xe4a   : > { %10187 = vmatmul.mubr.msk.f32.vlgmr.msra.gmra.mrb[16].mxu0 %vm1767_vm2, %v3401_v17 }
 0xe4b   : > { %10191 = vmatprep.mubr.msk.f32.mxu0 %vm11551_vm0, %v11550_v42 }
 0xe4e   : > { %10190 = vmatpush3.xpose.msk.msra.mxu0 %vm1612_vm1, %v3626_v44 }
 0xe4f   : > { %10194 = vmatprep.subr.mxu0 %v11550_v42 }
 0xe51   : > { %10192 = vmatmul.mubr.msk.f32.vlgmr.msra.gmra.mrb[18].mxu0 %vm1612_vm1, %v3624_v11 }
 0xe52   : > { %10195 = vmatpush3.xpose.msk.msra.mxu0 %vm1612_vm1, %v3704_v18  ;;  %10196 = vmatprep.mubr.msk.f32.mxu0 %vm11551_vm0, %v11550_v42 }
 0xe53   : > { %10204 = vmatprep.subr.mxu0 %v11550_v42 }
 0xe55   : > { %10197 = vmatmul.mubr.msk.f32.vlgmr.msra.gmra.mrb[20].mxu0 %vm1612_vm1, %v3702_v20 }
 0xe56   : > { %10206 = vmatprep.mubr.msk.f32.mxu0 %vm11551_vm0, %v11550_v42 }
 0xe71   : > { %v2572_v33 = vpop.xlane.xlu0 %2571 }
 0xe72   : > { %v2576_v47 = vsub.f32 %v2568_v10, %v2572_v33 }
 0xe74   : > { %v2578_v37 = vmul.f32 1.442695, %v2576_v47 }
 0xe76   : > { %11037 = vpow2.f32 %v2578_v37 }
 0xe80   : > { %v11038_v38 = vpop.eup %11037 }
 0xe81   : > { %v2582_v27 = vsel %vm1767_vm2, %v11038_v38, 0.0 }
 0xf19   : > { %v12518_v19 = vpop.f32.mrb[14].mxu0 }
 0xf1a   : > { %v10183_v21 = vpop.f32.mrb[15].mxu0 }
 0xf1d   : > { %v12520_v22 = vpop.f32.mrb[16].mxu0 }
 0xf1e   : > { %v3548_v23 = vpack.c.bf16 %v12520_v22, %v12518_v19  ;;  %v10188_v24 = vpop.f32.mrb[17].mxu0 }
 0xf24   : > { %v12524_v60 = vpop.f32.mrb[18].mxu0 }
 0xf25   : > { %v10193_v25 = vpop.f32.mrb[19].mxu0 }
 0xf28   : > { %v3775_v29 = vpop.f32.mrb[20].mxu0 }
 0xf29   : > { %v3780_v61 = vmul.f32 0.17677669, %v3775_v29  ;;  %v10198_v31 = vpop.f32.mrb[21].mxu0 }
 0xf2b   : > { %v3784_v32 = vsel %vm1767_vm2, %v3780_v61, -inf }
 0xf2c   : > { %3785 = vmax.xlane.f32.xlu1 %v3784_v32 }
 0xf3d   : > { %3881 = vrot.lane.b32.xlu1 %v12326_v8, %s11552_s15 }
 0xf41   : > { %4032 = vrot.lane.b32.xlu1 %v12456_v35, %s11553_s19 }
 0xf65   : > { %2583 = vadd.xlane.f32.xlu1 %v2582_v27 }
 0xfb9   : > { %v3786_v2 = vpop.xlane.xlu1 %3785 }
 0xfba   : > { %v3788_v4 = vsub.f32 %v3780_v61, %v3786_v2 }
 0xfbc   : > { %v3791_v39 = vmul.f32 1.442695, %v3788_v4 }
 0xfbd   : > { %v3882_v40 = vpop.permute.xlu1 %3881 }
 0xfbe   : > { %11039 = vpow2.f32 %v3791_v39  ;;  %10205 = vmatpush3.msra.mxu0 %v3882_v40  ;;  %v10591_v39 = vld [vmem:[%s12089_s6 + $0x60] ss:$8 sps:$4 sm:$0xff]   ;;  %v10593_v40 = vld [vmem:[%s12089_s6 + $0x64] ss:$8 sps:$4 sm:$0xff]  }
 0xfbf   : > { %10209 = vmatprep.subr.mxu0 %v11550_v42 }
 0xfc1   : > { %v4033_v53 = vpop.permute.xlu1 %4032 }
 0xfc8   : > { %v11040_v41 = vpop.eup %11039 }
 0xfc9   : > { %v3796_v46 = vsel %vm1767_vm2, %v11040_v41, 0.0 }
 0xfca   : > { %3797 = vadd.xlane.f32.xlu0 %v3796_v46  ;;  %v10594_v46 = vld [vmem:[%s12089_s6 + $0x70] ss:$8 sps:$4 sm:$0xff]  }
 0xfe0   : > { %4034 = vrot.lane.b32.xlu0 %v12448_v34, %s11553_s19 }
 0xfe4   : > { %2592 = vrot.lane.b32.xlu0 %v12318_v3, %s11553_s19 }
 0xff2   : > { %v2584_v54 = vpop.xlane.xlu1 %2583 }
 0xff3   : > { %11041 = vrcp.f32 %v2584_v54 }
 0xffd   : > { %v11042_v1 = vpop.eup %11041 }
 0xffe   : > { %v2590_v5 = vmul.f32 %v11042_v1, %v11038_v38 }
0x1003   : > { %2981 = vmax.xlane.f32.xlu0 %v2980_v52 }
0x1057   : > { %v3798_v57 = vpop.xlane.xlu0 %3797 }
0x1058   : > { %11043 = vrcp.f32 %v3798_v57 }
0x105b   : > { %v4035_v0 = vpop.permute.xlu0 %4034 }
0x105f   : > { %v2593_v7 = vpop.permute.xlu0 %2592 }
0x1060   : > { %10140 = vmatpush3.msra.mxu1 %v2593_v7 }
0x1061   : > { %10142 = vmatmul.mubr.msk.f32.vlgmr.msra.gmra.mrb[34].mxu1 %vm1767_vm2, %v2590_v5  ;;  %2772 = vmatprep.subr.bf16.mxu1 %v10587_v12 }
0x1062   : > { %v11044_v9 = vpop.eup %11043  ;;  %2804 = vmatprep.mubr.bf16.mxu1 %v11554_v26  ;;  %2773 = vmatpush1.bf16.msra.mxu1 %v10585_v14 }
0x1063   : > { %v3802_v3 = vmul.f32 %v11044_v9, %v11040_v41  ;;  %2774 = vmatprep.subr.bf16.mxu1 %v10590_v15  ;;  %v10596_v41 = vld [vmem:[%s12089_s6 + $0x74] ss:$8 sps:$4 sm:$0xff]  }
0x1065   : > { %10207 = vmatmul.mubr.msk.f32.vlgmr.msra.gmra.mrb[22].mxu0 %vm1767_vm2, %v3802_v3 }
0x1066   : > { %10210 = vmatpush3.xpose.msk.msra.mxu0 %vm1612_vm1, %v4035_v0  ;;  %10211 = vmatprep.mubr.msk.f32.mxu0 %vm11551_vm0, %v11550_v42 }
0x1067   : > { %10214 = vmatprep.subr.mxu0 %v11550_v42  ;;  %2775 = vmatpush1.bf16.msra.mxu1 %v10588_v16  ;;  %v10600_v16 = vld [vmem:[%s12089_s6 + $0x90] ss:$8 sps:$4 sm:$0xff]  }
0x1068   : > { %10164 = vmatprep.subr.mxu1 %v11550_v42 }
0x1069   : > { %10212 = vmatmul.mubr.msk.f32.vlgmr.msra.gmra.mrb[24].mxu0 %vm1612_vm1, %v4033_v53 }
0x106a   : > { %10216 = vmatprep.mubr.msk.f32.mxu0 %vm11551_vm0, %v11550_v42 }
0x1090   : > { %v2982_v56 = vpop.xlane.xlu0 %2981 }
0x1091   : > { %v2984_v10 = vsub.f32 %v2976_v48, %v2982_v56 }
0x1093   : > { %v2987_v55 = vmul.f32 1.442695, %v2984_v10  ;;  %v10597_v10 = vld [vmem:[%s12089_s6 + $0x80] ss:$8 sps:$4 sm:$0xff]  }
0x1095   : > { %11045 = vpow2.f32 %v2987_v55 }
0x109f   : > { %v11046_v11 = vpop.eup %11045 }
0x10a0   : > { %v2992_v59 = vsel %vm1767_vm2, %v11046_v11, 0.0 }
0x10a1   : > { %2993 = vadd.xlane.f32.xlu0 %v2992_v59  ;;  %v10602_v59 = vld [vmem:[%s12089_s6 + $0x94] ss:$8 sps:$4 sm:$0xff]  }
0x10b7   : > { %4112 = vrot.lane.b32.xlu0 %v12460_v36, %s11553_s19 }
0x112e   : > { %v2994_v17 = vpop.xlane.xlu0 %2993 }
0x112f   : > { %11047 = vrcp.f32 %v2994_v17 }
0x1132   : > { %v4113_v44 = vpop.permute.xlu0 %4112 }
0x1133   : > { %10215 = vmatpush3.xpose.msk.msra.mxu0 %vm1612_vm1, %v4113_v44 }
0x1134   : > { %v2664_v18 = vpop.f32.mrb[34].mxu1  ;;  %10219 = vmatprep.subr.mxu0 %v11550_v42 }
0x1135   : > { %v2744_v20 = vpack.c.bf16 %v12421_v13, %v2664_v18  ;;  %v10143_v21 = vpop.f32.mrb[35].mxu1  ;;  %v3779_v13 = vmul.f32 0.17677669, %v12524_v60 }
0x1136   : > { %v10603_v21 = vld [vmem:[%s12089_s6 + $0xa0] ss:$8 sps:$4 sm:$0xff]  }
0x1137   : > { %9443 = vmatmul.mubr.msk.bf16.vlgmr.msra.gmra.mrb[28].mxu1 %vm1612_vm1, %v2744_v20  ;;  %v3781_v33 = vsel %vm1767_vm2, %v3779_v13, -inf }
0x1138   : > { %v12562_v24 = vpop.f32.mrb[22].mxu0  ;;  %10166 = vmatprep.mubr.msk.f32.mxu1 %vm11551_vm0, %v11550_v42 }
0x1139   : > { %v10208_v25 = vpop.f32.mrb[23].mxu0 }
0x113a   : > { %v10605_v25 = vld [vmem:[%s12089_s6 + $0xa4] ss:$8 sps:$4 sm:$0xff]  }
0x113c   : > { %v4106_v29 = vpop.f32.mrb[24].mxu0 }
0x113d   : > { %v4188_v61 = vmul.f32 0.17677669, %v4106_v29  ;;  %v10213_v31 = vpop.f32.mrb[25].mxu0  ;;  %v10608_v29 = vld [vmem:[%s12089_s6 + $0xb4] ss:$8 sps:$4 sm:$0xff]  }
0x113f   : > { %v4190_v32 = vsel %vm1767_vm2, %v4188_v61, -inf }
0x1140   : > { %4191 = vmax.xlane.f32.xlu1 %v4190_v32 }
0x1151   : > { %3075 = vrot.lane.b32.xlu1 %v12322_v6, %s11555_s28  ;;  %v11048_v6 = vpop.eup %11047 }
0x1152   : > { %v2998_v27 = vmul.f32 %v11048_v6, %v11046_v11 }
0x1155   : > { %4110 = vrot.lane.b32.xlu1 %v12469_v50, %s11553_s19 }
0x1159   : > { %4212 = vrot.lane.b32.xlu1 %v12474_v45, %s11553_s19 }
0x115d   : > { %4441 = vrot.lane.b32.xlu1 %v12448_v34, %s11555_s28 }
0x1161   : > { %4519 = vrot.lane.b32.xlu1 %v12460_v36, %s11555_s28 }
0x1185   : > { %3782 = vmax.xlane.f32.xlu1 %v3781_v33 }
0x11cd   : > { %v4192_v47 = vpop.xlane.xlu1 %4191 }
0x11ce   : > { %v4196_v37 = vsub.f32 %v4188_v61, %v4192_v47  ;;  %v10606_v61 = vld [vmem:[%s12089_s6 + $0xb0] ss:$8 sps:$4 sm:$0xff]  }
0x11d0   : > { %v4198_v38 = vmul.f32 1.442695, %v4196_v37 }
0x11d1   : > { %v3076_v2 = vpop.permute.xlu1 %3075 }
0x11d2   : > { %11049 = vpow2.f32 %v4198_v38  ;;  %10165 = vmatpush3.msra.mxu1 %v3076_v2 }
0x11d3   : > { %10167 = vmatmul.mubr.msk.f32.vlgmr.msra.gmra.mrb[36].mxu1 %vm1767_vm2, %v2998_v27  ;;  %3179 = vmatprep.subr.bf16.mxu1 %v10593_v40 }
0x11d4   : > { %3211 = vmatprep.mubr.bf16.mxu1 %v11554_v26  ;;  %3180 = vmatpush1.bf16.msra.mxu1 %v10591_v39 }
0x11d5   : > { %v4111_v34 = vpop.permute.xlu1 %4110  ;;  %3181 = vmatprep.subr.bf16.mxu1 %v10596_v41 }
0x11d6   : > { %10217 = vmatmul.mubr.msk.f32.vlgmr.msra.gmra.mrb[26].mxu0 %vm1612_vm1, %v4111_v34 }
0x11d7   : > { %10221 = vmatprep.mubr.msk.f32.mxu0 %vm11551_vm0, %v11550_v42 }
0x11d8   : > { %3182 = vmatpush1.bf16.msra.mxu1 %v10594_v46 }
0x11d9   : > { %v4213_v36 = vpop.permute.xlu1 %4212 }
0x11da   : > { %10220 = vmatpush3.msra.mxu0 %v4213_v36 }
0x11db   : > { %10229 = vmatprep.subr.mxu0 %v11550_v42 }
0x11dc   : > { %v11050_v60 = vpop.eup %11049 }
0x11dd   : > { %v4202_v4 = vsel %vm1767_vm2, %v11050_v60, 0.0  ;;  %v4442_v48 = vpop.permute.xlu1 %4441 }
0x11de   : > { %4203 = vadd.xlane.f32.xlu0 %v4202_v4 }
0x11e1   : > { %v4520_v52 = vpop.permute.xlu1 %4519 }
0x11f4   : > { %4439 = vrot.lane.b32.xlu0 %v12456_v35, %s11555_s28 }
0x11f8   : > { %4517 = vrot.lane.b32.xlu0 %v12469_v50, %s11555_s28  ;;  %v10599_v50 = vld [vmem:[%s12089_s6 + $0x84] ss:$8 sps:$4 sm:$0xff]  }
0x11f9   : > { %3576 = vmatprep.subr.bf16.mxu1 %v10599_v50 }
0x1212   : > { %v3783_v53 = vpop.xlane.xlu1 %3782 }
0x1213   : > { %v3787_v54 = vsub.f32 %v3779_v13, %v3783_v53 }
0x1215   : > { %v3789_v57 = vmul.f32 1.442695, %v3787_v54 }
0x1217   : > { %11051 = vpow2.f32 %v3789_v57 }
0x1221   : > { %v11052_v0 = vpop.eup %11051 }
0x1222   : > { %v3793_v35 = vsel %vm1767_vm2, %v11052_v0, 0.0 }
0x1223   : > { %3794 = vadd.xlane.f32.xlu0 %v3793_v35 }
0x1239   : > { %3804 = vrot.lane.b32.xlu0 %v12474_v45, %s11552_s15 }
0x126b   : > { %v4204_v1 = vpop.xlane.xlu0 %4203 }
0x126c   : > { %11053 = vrcp.f32 %v4204_v1 }
0x126f   : > { %v4440_v9 = vpop.permute.xlu0 %4439 }
0x1273   : > { %v4518_v3 = vpop.permute.xlu0 %4517 }
0x1276   : > { %v11054_v5 = vpop.eup %11053 }
0x1277   : > { %v4210_v7 = vmul.f32 %v11054_v5, %v11050_v60  ;;  %v10611_v5 = vld [vmem:[%s12089_s6 + $0xc4] ss:$8 sps:$4 sm:$0xff]  }
0x1279   : > { %10222 = vmatmul.mubr.msk.f32.vlgmr.msra.gmra.mrb[28].mxu0 %vm1767_vm2, %v4210_v7  ;;  %v10609_v7 = vld [vmem:[%s12089_s6 + $0xc0] ss:$8 sps:$4 sm:$0xff]  }
0x127a   : > { %10230 = vmatpush3.xpose.msk.msra.mxu0 %vm1612_vm1, %v4442_v48  ;;  %10231 = vmatprep.mubr.msk.f32.mxu0 %vm11551_vm0, %v11550_v42 }
0x127b   : > { %10234 = vmatprep.subr.mxu0 %v11550_v42 }
0x127d   : > { %10232 = vmatmul.mubr.msk.f32.vlgmr.msra.gmra.mrb[30].mxu0 %vm1612_vm1, %v4440_v9 }
0x127e   : > { %10235 = vmatpush3.xpose.msk.msra.mxu0 %vm1612_vm1, %v4520_v52  ;;  %10236 = vmatprep.mubr.msk.f32.mxu0 %vm11551_vm0, %v11550_v42 }
0x127f   : > { %10239 = vmatprep.subr.mxu0 %v11550_v42 }
0x1281   : > { %10237 = vmatmul.mubr.msk.f32.vlgmr.msra.gmra.mrb[32].mxu0 %vm1612_vm1, %v4518_v3 }
0x1282   : > { %10241 = vmatprep.mubr.msk.f32.mxu0 %vm11551_vm0, %v11550_v42 }
0x12a6   : > { %v3147_v56 = vpop.f32.mrb[36].mxu1 }
0x12a7   : > { %v3151_v55 = vpack.c.bf16 %v3147_v56, %v12484_v58  ;;  %v10168_v11 = vpop.f32.mrb[37].mxu1 }
0x12a9   : > { %9454 = vmatmul.mubr.msk.bf16.vlgmr.msra.gmra.mrb[28].mxu1 %vm1612_vm1, %v3151_v55  ;;  %v4184_v12 = vpop.f32.mrb[26].mxu0 }
0x12aa   : > { %v4189_v14 = vmul.f32 0.17677669, %v4184_v12  ;;  %v10218_v15 = vpop.f32.mrb[27].mxu0  ;;  %3577 = vmatpush1.bf16.msra.mxu1 %v10597_v10  ;;  %3608 = vmatprep.mubr.bf16.mxu1 %v11554_v26  ;;  %v10614_v10 = vld [vmem:[%s12089_s6 + $0xd4] ss:$8 sps:$4 sm:$0xff]  }
0x12ab   : > { %3578 = vmatprep.subr.bf16.mxu1 %v10602_v59  ;;  %v10617_v15 = vld [vmem:[%s12089_s6 + $0xe4] ss:$8 sps:$4 sm:$0xff]  }
0x12ac   : > { %v4193_v17 = vsel %vm1767_vm2, %v4189_v14, -inf }
0x12ad   : > { %4194 = vmax.xlane.f32.xlu1 %v4193_v17  ;;  %v10615_v17 = vld [vmem:[%s12089_s6 + $0xe0] ss:$8 sps:$4 sm:$0xff]  }
0x12ae   : > { %3579 = vmatpush1.bf16.msra.mxu1 %v10600_v16 }
0x12af   : > { %10199 = vmatprep.subr.mxu1 %v11550_v42 }
0x12b0   : > { %v3795_v58 = vpop.xlane.xlu0 %3794 }
0x12b1   : > { %11055 = vrcp.f32 %v3795_v58 }
0x12b4   : > { %v3805_v44 = vpop.permute.xlu0 %3804 }
0x12b5   : > { %9465 = vmatmul.mubr.msk.bf16.vlgmr.msra.gmra.mrb[28].mxu1 %vm1612_vm1, %v3548_v23 }
0x12b6   : > { %10200 = vmatpush3.msra.mxu1 %v3805_v44  ;;  %10201 = vmatprep.mubr.msk.f32.mxu1 %vm11551_vm0, %v11550_v42 }
0x12b7   : > { %3985 = vmatprep.subr.bf16.mxu1 %v10605_v25 }
0x12bb   : > { %v11056_v18 = vpop.eup %11055 }
0x12bc   : > { %v3801_v20 = vmul.f32 %v11056_v18, %v11052_v0  ;;  %v10620_v18 = vld [vmem:[%s12089_s6 + $0xf4] ss:$8 sps:$4 sm:$0xff]  }
0x12be   : > { %10202 = vmatmul.mubr.msk.f32.vlgmr.msra.gmra.mrb[38].mxu1 %vm1767_vm2, %v3801_v20  ;;  %v10618_v20 = vld [vmem:[%s12089_s6 + $0xf0] ss:$8 sps:$4 sm:$0xff]  }
0x12bf   : > { %4017 = vmatprep.mubr.bf16.mxu1 %v11554_v26  ;;  %3986 = vmatpush1.bf16.msra.mxu1 %v10603_v21 }
0x12c0   : > { %3987 = vmatprep.subr.bf16.mxu1 %v10608_v29 }
0x12c3   : > { %3988 = vmatpush1.bf16.msra.mxu1 %v10606_v61 }
0x12c4   : > { %10224 = vmatprep.subr.mxu1 %v11550_v42 }
0x133a   : > { %v4195_v19 = vpop.xlane.xlu1 %4194 }
0x133b   : > { %v4197_v22 = vsub.f32 %v4189_v14, %v4195_v19  ;;  %v4846_v19 = vld [vmem:[%s691_s13] sm:$0x3]  ;;  %s11557_s13 = smov [#allocation23]  }
0x133d   : > { %v4200_v23 = vmul.f32 1.442695, %v4197_v22  ;;  %v4851_v22 = vrot.slane %v4846_v19, %v12268_v51 }
0x133f   : > { %11057 = vpow2.f32 %v4200_v23  ;;  %v4855_v23 = vrot.slane %v4846_v19, %v12441_v30 }
0x1349   : > { %v11058_v34 = vpop.eup %11057 }
0x134a   : > { %v4205_v36 = vsel %vm1767_vm2, %v11058_v34, 0.0 }
0x134c   : > { %v12632_v31 = vpop.f32.mrb[28].mxu0 }
0x134d   : > { %v10223_v32 = vpop.f32.mrb[29].mxu0 }
0x1350   : > { %v4513_v13 = vpop.f32.mrb[30].mxu0 }
0x1351   : > { %v4595_v33 = vmul.f32 0.17677669, %v4513_v13  ;;  %v10233_v47 = vpop.f32.mrb[31].mxu0 }
0x1352   : > { %v11077_v47 = vld [vmem:[#allocation2] sm:$0xff] }
0x1353   : > { %v4597_v6 = vsel %vm1767_vm2, %v4595_v33, -inf }
0x1354   : > { %4598 = vmax.xlane.f32.xlu1 %v4597_v6  ;;  %v4591_v37 = vpop.f32.mrb[32].mxu0 }
0x1355   : > { %v4596_v38 = vmul.f32 0.17677669, %v4591_v37  ;;  %v10238_v27 = vpop.f32.mrb[33].mxu0 }
0x1356   : > { %v11078_v27 = vld [vmem:[#allocation2 + $0x8] sm:$0xff] }
0x1357   : > { %v4600_v2 = vsel %vm1767_vm2, %v4596_v38, -inf }
0x1358   : > { %4601 = vmax.xlane.f32.xlu1 %v4600_v2 }
0x135c   : > { %4206 = vadd.xlane.f32.xlu1 %v4205_v36  ;;  %v11079_v36 = vld [vmem:[#allocation2 + $0x10] sm:$0xff] }
0x1391   : > { %v3876_v60 = vpop.f32.mrb[38].mxu1 }
0x1392   : > { %v3957_v4 = vpack.c.bf16 %v12562_v24, %v3876_v60  ;;  %v10203_v39 = vpop.f32.mrb[39].mxu1 }
0x1394   : > { %9476 = vmatmul.mubr.msk.bf16.vlgmr.msra.gmra.mrb[28].mxu1 %vm1612_vm1, %v3957_v4  ;;  %v11080_v4 = vld [vmem:[#allocation2 + $0x18] sm:$0xff] }
0x1395   : > { %10226 = vmatprep.mubr.msk.f32.mxu1 %vm11551_vm0, %v11550_v42 }
0x13e1   : > { %v4599_v40 = vpop.xlane.xlu1 %4598 }
0x13e2   : > { %v4603_v41 = vsub.f32 %v4595_v33, %v4599_v40 }
0x13e4   : > { %v4605_v46 = vmul.f32 1.442695, %v4603_v41 }
0x13e5   : > { %v4602_v48 = vpop.xlane.xlu1 %4601 }
0x13e6   : > { %11059 = vpow2.f32 %v4605_v46  ;;  %v4604_v52 = vsub.f32 %v4596_v38, %v4602_v48  ;;  %v4933_v46 = vld [vmem:[%s12106_s21] sm:$0xff] }
0x13e7   : > { %v4941_v48 = vld [vmem:[%s12106_s21 + $0x40] sm:$0xff] }
0x13e8   : > { %v4607_v53 = vmul.f32 1.442695, %v4604_v52  ;;  %v4937_v52 = vld [vmem:[%s12106_s21 + $0x20] sm:$0xff] }
0x13e9   : > { %v4207_v35 = vpop.xlane.xlu1 %4206 }
0x13ea   : > { %11061 = vpow2.f32 %v4607_v53  ;;  %v9499_v53 = vcombine.low %v4933_v46, %v4941_v48 }
0x13eb   : > { %11063 = vrcp.f32 %v4207_v35 }
0x13f0   : > { %v11060_v54 = vpop.eup %11059 }
0x13f1   : > { %v4609_v57 = vsel %vm1767_vm2, %v11060_v54, 0.0 }
0x13f2   : > { %4610 = vadd.xlane.f32.xlu1 %v4609_v57  ;;  %v4945_v57 = vld [vmem:[%s12106_s21 + $0x60] sm:$0xff] }
0x13f3   : > { %v9507_v35 = vcombine.low %v4937_v52, %v4945_v57 }
0x13f4   : > { %v11062_v24 = vpop.eup %11061 }
0x13f5   : > { %v4612_v0 = vsel %vm1767_vm2, %v11062_v24, 0.0  ;;  %v11064_v1 = vpop.eup %11063 }
0x13f6   : > { %4613 = vadd.xlane.f32.xlu0 %v4612_v0  ;;  %v4211_v9 = vmul.f32 %v11064_v1, %v11058_v34  ;;  %v4957_v0 = vld [vmem:[%s12106_s21 + $0xc0] sm:$0xff] }
0x1403   : > { %4288 = vrot.lane.b32.xlu1 %v12326_v8, %s11553_s19 }
0x1407   : > { %4619 = vrot.lane.b32.xlu1 %v12474_v45, %s11555_s28  ;;  %v10612_v45 = vld [vmem:[%s12089_s6 + $0xd0] ss:$8 sps:$4 sm:$0xff]   ;;  %s13459_s6 = scalar_lea.vmem [#allocation20], %s12087_s17  ;;  %s13460_s17 = sld [smem:[#allocation33_spill]] }
0x140b   : > { %4695 = vrot.lane.b32.xlu1 %v12326_v8, %s11555_s28 }
0x140d   : > { %p10381_p3 = scmp.eq.s32.totalorder %s13460_s17, 5 }
0x147f   : > { %v4611_v50 = vpop.xlane.xlu1 %4610 }
0x1480   : > { %11065 = vrcp.f32 %v4611_v50  ;;  %v9508_v50 = vcombine.high %v4937_v52, %v4945_v57  ;;  %v5053_v52 = vld [vmem:[%s12106_s21 + $0x3c0] sm:$0xff] }
0x1483   : > { %v4614_v3 = vpop.xlane.xlu0 %4613  ;;  %v4289_v56 = vpop.permute.xlu1 %4288 }
0x1484   : > { %11067 = vrcp.f32 %v4614_v3  ;;  %10225 = vmatpush3.msra.mxu1 %v4289_v56  ;;  %v4973_v56 = vld [vmem:[%s12106_s21 + $0x140] sm:$0xff] }
0x1485   : > { %10227 = vmatmul.mubr.msk.f32.vlgmr.msra.gmra.mrb[40].mxu1 %vm1767_vm2, %v4211_v9  ;;  %4392 = vmatprep.subr.bf16.mxu1 %v10611_v5  ;;  %v4953_v5 = vld [vmem:[%s12106_s21 + $0xa0] sm:$0xff] }
0x1486   : > { %4393 = vmatpush1.bf16.msra.mxu1 %v10609_v7  ;;  %4424 = vmatprep.mubr.bf16.mxu1 %v11554_v26  ;;  %v4961_v7 = vld [vmem:[%s12106_s21 + $0xe0] sm:$0xff] }
0x1487   : > { %v4620_v8 = vpop.permute.xlu1 %4619  ;;  %4394 = vmatprep.subr.bf16.mxu1 %v10614_v10  ;;  %v4965_v9 = vld [vmem:[%s12106_s21 + $0x100] sm:$0xff]  ;;  %v9524_v3 = vcombine.high %v4953_v5, %v4961_v7 }
0x1488   : > { %10240 = vmatpush3.msra.mxu0 %v4620_v8  ;;  %v4969_v10 = vld [vmem:[%s12106_s21 + $0x120] sm:$0xff] }
0x1489   : > { %10244 = vmatprep.subr.mxu0 %v11550_v42 }
0x148a   : > { %v11066_v55 = vpop.eup %11065  ;;  %4395 = vmatpush1.bf16.msra.mxu1 %v10612_v45  ;;  %v4977_v45 = vld [vmem:[%s12106_s21 + $0x160] sm:$0xff] }
0x148b   : > { %v4617_v11 = vmul.f32 %v11066_v55, %v11060_v54  ;;  %v4696_v59 = vpop.permute.xlu1 %4695  ;;  %4799 = vmatprep.subr.bf16.mxu1 %v10617_v15  ;;  %v9500_v54 = vcombine.high %v4933_v46, %v4941_v48  ;;  %v9523_v55 = vcombine.low %v4953_v5, %v4961_v7  ;;  %v4985_v15 = vld [vmem:[%s12106_s21 + $0x1a0] sm:$0xff] }
0x148c   : > { %v5045_v48 = vld [vmem:[%s12106_s21 + $0x380] sm:$0xff] }
0x148d   : > { %10242 = vmatmul.mubr.msk.f32.vlgmr.msra.gmra.mrb[34].mxu0 %vm1767_vm2, %v4617_v11  ;;  %v9532_v11 = vcombine.high %v4965_v9, %v4973_v56  ;;  %v5065_v5 = vld [vmem:[%s12106_s21 + $0x420] sm:$0xff] }
0x148e   : > { %v11068_v12 = vpop.eup %11067  ;;  %10245 = vmatpush3.msra.mxu0 %v4696_v59  ;;  %10246 = vmatprep.mubr.msk.f32.mxu0 %vm11551_vm0, %v11550_v42  ;;  %v9540_v59 = vcombine.high %v4969_v10, %v4977_v45  ;;  %v5073_v7 = vld [vmem:[%s12106_s21 + $0x460] sm:$0xff] }
0x148f   : > { %v4618_v14 = vmul.f32 %v11068_v12, %v11062_v24  ;;  %v4949_v24 = vld [vmem:[%s12106_s21 + $0x80] sm:$0xff]  ;;  %6725 = vmatprep.subr.bf16.mxu0 %v9508_v50 }
0x1490   : > { %v9516_v1 = vcombine.high %v4949_v24, %v4957_v0  ;;  %v9515_v8 = vcombine.low %v4949_v24, %v4957_v0  ;;  %v4981_v12 = vld [vmem:[%s12106_s21 + $0x180] sm:$0xff]  ;;  %v9612_v0 = vcombine.high %v5045_v48, %v5053_v52 }
0x1491   : > { %10247 = vmatmul.mubr.msk.f32.vlgmr.msra.gmra.mrb[36].mxu0 %vm1767_vm2, %v4618_v14  ;;  %v4989_v14 = vld [vmem:[%s12106_s21 + $0x1c0] sm:$0xff] }
0x1492   : > { %6726 = vmatpush1.bf16.msra.mxu0 %v9507_v35  ;;  %v5061_v50 = vld [vmem:[%s12106_s21 + $0x400] sm:$0xff] }
0x1493   : > { %6727 = vmatprep.subr.bf16.mxu0 %v9524_v3 }
0x1496   : > { %6728 = vmatpush1.bf16.msra.mxu0 %v9523_v55  ;;  %v5081_v55 = vld [vmem:[%s12106_s21 + $0x4a0] sm:$0xff] }
0x1497   : > { %6729 = vmatprep.subr.bf16.mxu0 %v9540_v59 }
0x1558   : > { %v4360_v16 = vpop.f32.mrb[40].mxu1 }
0x1559   : > { %v4364_v58 = vpack.c.bf16 %v4360_v16, %v12632_v31  ;;  %v10228_v44 = vpop.f32.mrb[41].mxu1  ;;  %v4993_v16 = vld [vmem:[%s12106_s21 + $0x1e0] sm:$0xff] }
0x155a   : > { %v9548_v44 = vcombine.high %v4981_v12, %v4989_v14 }
0x155b   : > { %9487 = vmatmul.mubr.msk.bf16.vlgmr.msra.gmra.mrb[28].mxu1 %vm1612_vm1, %v4364_v58  ;;  %v9539_v58 = vcombine.low %v4969_v10, %v4977_v45  ;;  %v9636_v10 = vcombine.high %v5065_v5, %v5073_v7  ;;  %v5077_v45 = vld [vmem:[%s12106_s21 + $0x480] sm:$0xff] }
0x155c   : > { %4800 = vmatpush1.bf16.msra.mxu1 %v10615_v17  ;;  %4831 = vmatprep.mubr.bf16.mxu1 %v11554_v26  ;;  %v9531_v17 = vcombine.low %v4965_v9, %v4973_v56  ;;  %v9611_v9 = vcombine.low %v5045_v48, %v5053_v52  ;;  %v5133_v48 = vld [vmem:[%s12106_s21 + $0x640] sm:$0xff] }
0x155d   : > { %4801 = vmatprep.subr.bf16.mxu1 %v10620_v18  ;;  %v9556_v18 = vcombine.high %v4985_v15, %v4993_v16  ;;  %6730 = vmatpush1.bf16.msra.mxu0 %v9539_v58  ;;  %v5129_v52 = vld [vmem:[%s12106_s21 + $0x620] sm:$0xff] }
0x155f   : > { %6731 = vmatprep.subr.bf16.mxu0 %v9556_v18 }
0x1560   : > { %v4691_v42 = vpop.f32.mrb[34].mxu0  ;;  %4802 = vmatpush1.bf16.msra.mxu1 %v10618_v20  ;;  %v4997_v20 = vld [vmem:[%s12106_s21 + $0x200] sm:$0xff] }
0x1561   : > { %v10243_v21 = vpop.f32.mrb[35].mxu0  ;;  %6553 = vmatprep.subr.bf16.mxu1 %v9500_v54  ;;  %v5057_v54 = vld [vmem:[%s12106_s21 + $0x3e0] sm:$0xff] }
0x1562   : > { %v5001_v21 = vld [vmem:[%s12106_s21 + $0x220] sm:$0xff] }
0x1564   : > { %v4767_v25 = vpop.f32.mrb[36].mxu0 }
0x1565   : > { %v4771_v29 = vpack.c.bf16 %v4767_v25, %v4691_v42  ;;  %v10248_v61 = vpop.f32.mrb[37].mxu0  ;;  %v5005_v42 = vld [vmem:[%s12106_s21 + $0x240] sm:$0xff] }
0x1566   : > { %v5009_v25 = vld [vmem:[%s12106_s21 + $0x260] sm:$0xff]  ;;  %v9555_v61 = vcombine.low %v4985_v15, %v4993_v16  ;;  %v9564_v19 = vcombine.high %v4997_v20, %v5005_v42 }
0x1567   : > { %9498 = vmatmul.mubr.msk.bf16.vlgmr.msra.gmra.mrb[28].mxu1 %vm1612_vm1, %v4771_v29  ;;  %v9547_v29 = vcombine.low %v4981_v12, %v4989_v14  ;;  %v9635_v12 = vcombine.low %v5065_v5, %v5073_v7  ;;  %v5153_v7 = vld [vmem:[%s12106_s21 + $0x6e0] sm:$0xff] }
0x1568   : > { %6554 = vmatpush1.bf16.msra.mxu1 %v9499_v53  ;;  %6732 = vmatpush1.bf16.msra.mxu0 %v9555_v61  ;;  %v5049_v53 = vld [vmem:[%s12106_s21 + $0x3a0] sm:$0xff] }
0x1569   : > { %6555 = vmatprep.subr.bf16.mxu1 %v9516_v1  ;;  %v9620_v35 = vcombine.high %v5049_v53, %v5057_v54  ;;  %v5069_v1 = vld [vmem:[%s12106_s21 + $0x440] sm:$0xff]  ;;  %v9619_v3 = vcombine.low %v5049_v53, %v5057_v54 }
0x156a   : > { %v9628_v56 = vcombine.high %v5061_v50, %v5069_v1  ;;  %v9627_v59 = vcombine.low %v5061_v50, %v5069_v1  ;;  %v5137_v54 = vld [vmem:[%s12106_s21 + $0x660] sm:$0xff] }
0x156b   : > { %v5149_v50 = vld [vmem:[%s12106_s21 + $0x6c0] sm:$0xff] }
0x156c   : > { %6556 = vmatpush1.bf16.msra.mxu1 %v9515_v8  ;;  %v5085_v8 = vld [vmem:[%s12106_s21 + $0x4c0] sm:$0xff] }
0x156d   : > { %6557 = vmatprep.subr.bf16.mxu1 %v9532_v11  ;;  %v5089_v11 = vld [vmem:[%s12106_s21 + $0x4e0] sm:$0xff]  ;;  %v9644_v14 = vcombine.high %v5077_v45, %v5085_v8  ;;  %v9643_v16 = vcombine.low %v5077_v45, %v5085_v8 }
0x156e   : > { %v9652_v15 = vcombine.high %v5081_v55, %v5089_v11  ;;  %v5145_v1 = vld [vmem:[%s12106_s21 + $0x6a0] sm:$0xff] }
0x156f   : > { %v5165_v45 = vld [vmem:[%s12106_s21 + $0x740] sm:$0xff] }
0x1570   : > { %6558 = vmatpush1.bf16.msra.mxu1 %v9531_v17  ;;  %v9651_v17 = vcombine.low %v5081_v55, %v5089_v11  ;;  %v5161_v8 = vld [vmem:[%s12106_s21 + $0x720] sm:$0xff] }
0x1571   : > { %6559 = vmatprep.subr.bf16.mxu1 %v9548_v44  ;;  %v5169_v11 = vld [vmem:[%s12106_s21 + $0x760] sm:$0xff] }
0x1574   : > { %6560 = vmatpush1.bf16.msra.mxu1 %v9547_v29 }
0x1575   : > { %6561 = vmatprep.subr.bf16.mxu1 %v9564_v19 }
0x163a   : > { %v4833_v31 = vpop.f32.mrb[28].mxu1 }
0x163b   : > { %v4858_v32 = vadd.f32 %v4851_v22, %v4833_v31  ;;  %v4835_v13 = vpop.f32.mrb[29].mxu1  ;;  %v5021_v31 = vld [vmem:[%s12106_s21 + $0x2c0] sm:$0xff] }
0x163c   : > { %v4859_v33 = vadd.f32 %v4855_v23, %v4835_v13  ;;  %v4837_v26 = vpop.f32.mrb[30].mxu1  ;;  %v5025_v13 = vld [vmem:[%s12106_s21 + $0x2e0] sm:$0xff] }
0x163d   : > { %v12672_v6 = vadd.f32 %v11077_v47, %v4858_v32  ;;  %v4860_v37 = vadd.f32 %v4851_v22, %v4837_v26  ;;  %v4839_v38 = vpop.f32.mrb[31].mxu1  ;;  %v9572_v22 = vcombine.high %v5001_v21, %v5009_v25  ;;  %v5017_v32 = vld [vmem:[%s12106_s21 + $0x2a0] sm:$0xff]  ;;  %v9571_v26 = vcombine.low %v5001_v21, %v5009_v25 }
0x163e   : > { %v12674_v2 = vadd.f32 %v11078_v27, %v4859_v33  ;;  %v4861_v34 = vadd.f32 %v4855_v23, %v4839_v38  ;;  %v5013_v23 = vld [vmem:[%s12106_s21 + $0x280] sm:$0xff]  ;;  %v9563_v33 = vcombine.low %v4997_v20, %v5005_v42 }
0x163f   : > { %v12676_v60 = vadd.f32 %v11079_v36, %v4860_v37  ;;  %v9580_v47 = vcombine.high %v5013_v23, %v5021_v31  ;;  %6733 = vmatprep.subr.bf16.mxu0 %v9572_v22  ;;  %v9588_v37 = vcombine.high %v5017_v32, %v5025_v13  ;;  %v5029_v38 = vld [vmem:[%s12106_s21 + $0x300] sm:$0xff] }
0x1640   : > { %v12678_v39 = vadd.f32 %v11080_v4, %v4861_v34  ;;  %v4866_v40 = vadd.f32 %v12674_v2, %v12672_v6  ;;  %v5037_v27 = vld [vmem:[%s12106_s21 + $0x340] sm:$0xff]  ;;  %6562 = vmatpush1.bf16.msra.mxu1 %v9563_v33  ;;  %v9579_v4 = vcombine.low %v5013_v23, %v5021_v31  ;;  %6734 = vmatpush1.bf16.msra.mxu0 %v9571_v26 }
0x1641   : > { %v5033_v34 = vld [vmem:[%s12106_s21 + $0x320] sm:$0xff]  ;;  %6563 = vmatprep.subr.bf16.mxu1 %v9580_v47  ;;  %6735 = vmatprep.subr.bf16.mxu0 %v9588_v37  ;;  %v9595_v57 = vcombine.low %v5029_v38, %v5037_v27 }
0x1642   : > { %4867 = vadd.xlane.f32.xlu1 %v4866_v40  ;;  %v4869_v41 = vadd.f32 %v12678_v39, %v12676_v60  ;;  %v5041_v36 = vld [vmem:[%s12106_s21 + $0x360] sm:$0xff]  ;;  %v9587_v40 = vcombine.low %v5017_v32, %v5025_v13 }
0x1643   : > { %v9604_v46 = vcombine.high %v5033_v34, %v5041_v36  ;;  %v9603_v24 = vcombine.low %v5033_v34, %v5041_v36  ;;  %v5101_v23 = vld [vmem:[%s12106_s21 + $0x540] sm:$0xff] }
0x1644   : > { %4870 = vadd.xlane.f32.xlu0 %v4869_v41  ;;  %v9596_v41 = vcombine.high %v5029_v38, %v5037_v27  ;;  %6564 = vmatpush1.bf16.msra.mxu1 %v9579_v4  ;;  %v5097_v31 = vld [vmem:[%s12106_s21 + $0x520] sm:$0xff] }
0x1645   : > { %6736 = vmatpush1.bf16.msra.mxu0 %v9587_v40  ;;  %v5105_v13 = vld [vmem:[%s12106_s21 + $0x560] sm:$0xff] }
0x1646   : > { %6565 = vmatprep.subr.bf16.mxu1 %v9596_v41  ;;  %6737 = vmatprep.subr.bf16.mxu0 %v9604_v46  ;;  %v9667_v26 = vcombine.low %v5097_v31, %v5105_v13  ;;  %v9668_v47 = vcombine.high %v5097_v31, %v5105_v13  ;;  %v5109_v37 = vld [vmem:[%s12106_s21 + $0x580] sm:$0xff] }
0x1647   : > { %v5117_v38 = vld [vmem:[%s12106_s21 + $0x5c0] sm:$0xff] }
0x1648   : > { %6566 = vmatpush1.bf16.msra.mxu1 %v9595_v57  ;;  %v5113_v27 = vld [vmem:[%s12106_s21 + $0x5a0] sm:$0xff]  ;;  %v9676_v34 = vcombine.high %v5109_v37, %v5117_v38  ;;  %v9675_v4 = vcombine.low %v5109_v37, %v5117_v38  ;;  %v4899_v38 = vld [vmem:[%s700_s3] sm:$0x3]  ;;  %s8980_s3 = sshll.u32 %s11557_s13, 4  ;;  %s8981_s3 = int_to_ptr.vmem [resolvable:$true] %s8980_s3 }
0x1649   : > { %6738 = vmatpush1.bf16.msra.mxu0 %v9603_v24  ;;  %6567 = vmatprep.subr.bf16.mxu1 %v9612_v0  ;;  %v5121_v36 = vld [vmem:[%s12106_s21 + $0x5e0] sm:$0xff]  ;;  %v9699_v24 = vcombine.low %v5129_v52, %v5137_v54  ;;  %v9700_v0 = vcombine.high %v5129_v52, %v5137_v54  ;;  %p11449_p11 = scmp.lt.s32.totalorder %s8981_s3, %s8981_s3 }
0x164a   : > { %6739 = vmatprep.subr.bf16.mxu0 %v9620_v35  ;;  %v9683_v40 = vcombine.low %v5113_v27, %v5121_v36  ;;  %v9684_v41 = vcombine.high %v5113_v27, %v5121_v36  ;;  %v5125_v46 = vld [vmem:[%s12106_s21 + $0x600] sm:$0xff]  ;;  %v4908_v36 = vrot.slane %v4899_v38, %v12441_v30 }
0x164b   : > { %v9692_v53 = vcombine.high %v5125_v46, %v5133_v48  ;;  %v9691_v57 = vcombine.low %v5125_v46, %v5133_v48  ;;  %v5141_v35 = vld [vmem:[%s12106_s21 + $0x680] sm:$0xff] }
0x164c   : > { %6568 = vmatpush1.bf16.msra.mxu1 %v9611_v9  ;;  %v9708_v5 = vcombine.high %v5141_v35, %v5149_v50  ;;  %v9707_v9 = vcombine.low %v5141_v35, %v5149_v50 }
0x164d   : > { %6740 = vmatpush1.bf16.msra.mxu0 %v9619_v3  ;;  %6569 = vmatprep.subr.bf16.mxu1 %v9628_v56  ;;  %v9715_v3 = vcombine.low %v5145_v1, %v5153_v7  ;;  %v9716_v56 = vcombine.high %v5145_v1, %v5153_v7  ;;  %v4958_v7 = vld [vmem:[%s12106_s21 + $0xc8] sm:$0xff] }
0x164e   : > { %6741 = vmatprep.subr.bf16.mxu0 %v9636_v10  ;;  %v5157_v10 = vld [vmem:[%s12106_s21 + $0x700] sm:$0xff] }
0x164f   : > { %v9724_v55 = vcombine.high %v5157_v10, %v5165_v45 }
0x1650   : > { %6570 = vmatpush1.bf16.msra.mxu1 %v9627_v59  ;;  %v9723_v59 = vcombine.low %v5157_v10, %v5165_v45 }
0x1651   : > { %6742 = vmatpush1.bf16.msra.mxu0 %v9635_v12  ;;  %6571 = vmatprep.subr.bf16.mxu1 %v9644_v14  ;;  %v9731_v12 = vcombine.low %v5161_v8, %v5169_v11  ;;  %v9732_v14 = vcombine.high %v5161_v8, %v5169_v11  ;;  %v4974_v8 = vld [vmem:[%s12106_s21 + $0x148] sm:$0xff]  ;;  %v4979_v11 = vld [vmem:[%s12106_s21 + $0x170] sm:$0xff] }
0x1652   : > { %6743 = vmatprep.subr.bf16.mxu0 %v9652_v15  ;;  %v5173_v15 = vld [vmem:[%s12106_s21 + $0x780] sm:$0xff] }
0x1654   : > { %6572 = vmatpush1.bf16.msra.mxu1 %v9643_v16  ;;  %v5181_v16 = vld [vmem:[%s12106_s21 + $0x7c0] sm:$0xff] }
0x1655   : > { %6744 = vmatpush1.bf16.msra.mxu0 %v9651_v17  ;;  %v5177_v17 = vld [vmem:[%s12106_s21 + $0x7a0] sm:$0xff] }
0x1656   : > { %6745 = vmatprep.subr.bf16.mxu0 %v9668_v47 }
0x1659   : > { %6746 = vmatpush1.bf16.msra.mxu0 %v9667_v26 }
0x165a   : > { %6747 = vmatprep.subr.bf16.mxu0 %v9684_v41 }
0x165d   : > { %6748 = vmatpush1.bf16.msra.mxu0 %v9683_v40 }
0x165e   : > { %6749 = vmatprep.subr.bf16.mxu0 %v9700_v0 }
0x1661   : > { %6750 = vmatpush1.bf16.msra.mxu0 %v9699_v24 }
0x1662   : > { %6751 = vmatprep.subr.bf16.mxu0 %v9716_v56  ;;  %v4966_v56 = vld [vmem:[%s12106_s21 + $0x108] sm:$0xff] }
0x1665   : > { %6752 = vmatpush1.bf16.msra.mxu0 %v9715_v3  ;;  %v4963_v3 = vld [vmem:[%s12106_s21 + $0xf0] sm:$0xff] }
0x1666   : > { %6753 = vmatprep.subr.bf16.mxu0 %v9732_v14  ;;  %v9534_v14 = vcombine.high %v4966_v56, %v4974_v8 }
0x1669   : > { %6754 = vmatpush1.bf16.msra.mxu0 %v9731_v12 }
0x16cf   : > { %v4868_v58 = vpop.xlane.xlu1 %4867 }
0x16d0   : > { %v4873_v44 = vmul.f32 0.00390625, %v4868_v58  ;;  %v9740_v58 = vcombine.high %v5173_v15, %v5181_v16 }
0x16d1   : > { %v4871_v18 = vpop.xlane.xlu0 %4870 }
0x16d2   : > { %v12725_v20 = vsub.f32 %v12672_v6, %v4873_v44  ;;  %v12728_v42 = vsub.f32 %v12674_v2, %v4873_v44  ;;  %v4874_v21 = vmul.f32 0.00390625, %v4871_v18  ;;  %v5185_v44 = vld [vmem:[%s12106_s21 + $0x7e0] sm:$0xff]  ;;  %v9739_v18 = vcombine.low %v5173_v15, %v5181_v16  ;;  %v4982_v16 = vld [vmem:[%s12106_s21 + $0x188] sm:$0xff] }
0x16d4   : > { %v12731_v25 = vsub.f32 %v12676_v60, %v4874_v21  ;;  %v12734_v29 = vsub.f32 %v12678_v39, %v4874_v21  ;;  %v4879_v61 = vmul.f32 %v12725_v20, %v12725_v20  ;;  %v4880_v19 = vmul.f32 %v12728_v42, %v12728_v42  ;;  %v5093_v39 = vld [vmem:[%s12106_s21 + $0x500] sm:$0xff] }
0x16d5   : > { %v9660_v32 = vcombine.high %v5093_v39, %v5101_v23  ;;  %v9659_v33 = vcombine.low %v5093_v39, %v5101_v23  ;;  %v9747_v21 = vcombine.low %v5177_v17, %v5185_v44 }
0x16d6   : > { %v4883_v22 = vadd.f32 %v4880_v19, %v4879_v61  ;;  %v4881_v6 = vmul.f32 %v12731_v25, %v12731_v25  ;;  %v4882_v2 = vmul.f32 %v12734_v29, %v12734_v29  ;;  %v9748_v61 = vcombine.high %v5177_v17, %v5185_v44  ;;  %v4934_v19 = vld [vmem:[%s12106_s21 + $0x8] sm:$0xff]  ;;  %v4995_v44 = vld [vmem:[%s12106_s21 + $0x1f0] sm:$0xff] }
0x16d7   : > { %6573 = vmatprep.subr.bf16.mxu1 %v9660_v32  ;;  %v4990_v17 = vld [vmem:[%s12106_s21 + $0x1c8] sm:$0xff] }
0x16d8   : > { %4884 = vadd.xlane.f32.xlu0 %v4883_v22  ;;  %v4886_v60 = vadd.f32 %v4882_v2, %v4881_v6  ;;  %6574 = vmatpush1.bf16.msra.mxu1 %v9659_v33  ;;  %v4942_v22 = vld [vmem:[%s12106_s21 + $0x48] sm:$0xff]  ;;  %v4939_v6 = vld [vmem:[%s12106_s21 + $0x30] sm:$0xff] }
0x16d9   : > { %6575 = vmatprep.subr.bf16.mxu1 %v9676_v34  ;;  %6755 = vmatprep.subr.bf16.mxu0 %v9748_v61  ;;  %v9502_v2 = vcombine.high %v4934_v19, %v4942_v22  ;;  %v9501_v39 = vcombine.low %v4934_v19, %v4942_v22  ;;  %v4904_v34 = vrot.slane %v4899_v38, %v12268_v51  ;;  %v4998_v22 = vld [vmem:[%s12106_s21 + $0x208] sm:$0xff] }
0x16da   : > { %6756 = vmatpush1.bf16.msra.mxu0 %v9747_v21  ;;  %v9550_v61 = vcombine.high %v4982_v16, %v4990_v17 }
0x16dc   : > { %4887 = vadd.xlane.f32.xlu0 %v4886_v60  ;;  %6576 = vmatpush1.bf16.msra.mxu1 %v9675_v4  ;;  %v4947_v60 = vld [vmem:[%s12106_s21 + $0x70] sm:$0xff]  ;;  %v4915_v4 = vld [vmem:[%s709_s1] sm:$0x3]  ;;  %s11442_s1 = scalar_lea.vmem %s8981_s3, 64 }
0x16dd   : > { %6577 = vmatprep.subr.bf16.mxu1 %v9692_v53  ;;  %v9511_v23 = vcombine.low %v4939_v6, %v4947_v60  ;;  %v9512_v31 = vcombine.high %v4939_v6, %v4947_v60  ;;  %v4920_v48 = vrot.slane %v4915_v4, %v12268_v51  ;;  %v4924_v52 = vrot.slane %v4915_v4, %v12441_v30  ;;  %v5006_v6 = vld [vmem:[%s12106_s21 + $0x248] sm:$0xff]  ;;  %v5011_v60 = vld [vmem:[%s12106_s21 + $0x270] sm:$0xff]  ;;  %p11443_p5 = scmp.ne.s32.totalorder %s8981_s3, %s11442_s1  ;;  %p11450_p6 = scmp.lt.s32.totalorder %s11442_s1, %s11442_s1 }
0x16de   : > { %v5038_v4 = vld [vmem:[%s12106_s21 + $0x348] sm:$0xff] }
0x16df   : > { %6811 = vmatprep.subr.bf16.mxu0 %v9512_v31  ;;  %v9566_v31 = vcombine.high %v4998_v22, %v5006_v6  ;;  %p11444_p10 = pnand %p11443_p5, %p10381_p3  ;;  %p11451_p2 = por %p11450_p6, %p11449_p11 }
0x16e0   : > { %6578 = vmatpush1.bf16.msra.mxu1 %v9691_v57 }
0x16e1   : > { %6579 = vmatprep.subr.bf16.mxu1 %v9708_v5  ;;  %v4950_v5 = vld [vmem:[%s12106_s21 + $0x88] sm:$0xff]  ;;  %p11445_p0 = pneg %p11444_p10 }
0x16e2   : > { %v9518_v10 = vcombine.high %v4950_v5, %v4958_v7 }
0x16e3   : > { %p11452_p7 = pnand %p11451_p2, %p11445_p0 }
0x16e4   : > { %6580 = vmatpush1.bf16.msra.mxu1 %v9707_v9  ;;  %v4955_v9 = vld [vmem:[%s12106_s21 + $0xb0] sm:$0xff] }
0x16e5   : > { %6581 = vmatprep.subr.bf16.mxu1 %v9724_v55  ;;  %v9528_v45 = vcombine.high %v4955_v9, %v4963_v3  ;;  %v4971_v55 = vld [vmem:[%s12106_s21 + $0x130] sm:$0xff]  ;;  %v9527_v12 = vcombine.low %v4955_v9, %v4963_v3  ;;  %v5062_v3 = vld [vmem:[%s12106_s21 + $0x408] sm:$0xff] }
0x16e6   : > { %v9544_v15 = vcombine.high %v4971_v55, %v4979_v11  ;;  %v9543_v21 = vcombine.low %v4971_v55, %v4979_v11 }
0x16e8   : > { %6582 = vmatpush1.bf16.msra.mxu1 %v9723_v59  ;;  %v9517_v59 = vcombine.low %v4950_v5, %v4958_v7 }
0x16e9   : > { %6583 = vmatprep.subr.bf16.mxu1 %v9740_v58  ;;  %v4987_v58 = vld [vmem:[%s12106_s21 + $0x1b0] sm:$0xff] }
0x16ea   : > { %v9560_v19 = vcombine.high %v4987_v58, %v4995_v44 }
0x16ec   : > { %6584 = vmatpush1.bf16.msra.mxu1 %v9739_v18  ;;  %v9533_v18 = vcombine.low %v4966_v56, %v4974_v8  ;;  %v5070_v56 = vld [vmem:[%s12106_s21 + $0x448] sm:$0xff] }
0x16ed   : > { %6596 = vmatprep.subr.bf16.mxu1 %v9502_v2  ;;  %v5003_v2 = vld [vmem:[%s12106_s21 + $0x230] sm:$0xff]  ;;  %v9630_v11 = vcombine.high %v5062_v3, %v5070_v56 }
0x16ee   : > { %v9575_v38 = vcombine.low %v5003_v2, %v5011_v60 }
0x1765   : > { %v4885_v32 = vpop.xlane.xlu0 %4884 }
0x1766   : > { %v4889_v13 = vmul.f32 0.00390625, %v4885_v32  ;;  %v9576_v32 = vcombine.high %v5003_v2, %v5011_v60 }
0x1768   : > { %v4891_v33 = vadd.f32 1e-05, %v4889_v13  ;;  %v5014_v13 = vld [vmem:[%s12106_s21 + $0x288] sm:$0xff] }
0x1769   : > { %v4888_v26 = vpop.xlane.xlu0 %4887 }
0x176a   : > { %11069 = vrsqrt.f32 %v4891_v33  ;;  %v4890_v47 = vmul.f32 0.00390625, %v4888_v26  ;;  %v5022_v33 = vld [vmem:[%s12106_s21 + $0x2c8] sm:$0xff]  ;;  %v5019_v26 = vld [vmem:[%s12106_s21 + $0x2b0] sm:$0xff] }
0x176c   : > { %v4892_v37 = vadd.f32 1e-05, %v4890_v47  ;;  %v5027_v47 = vld [vmem:[%s12106_s21 + $0x2f0] sm:$0xff] }
0x176e   : > { %11071 = vrsqrt.f32 %v4892_v37  ;;  %v9565_v37 = vcombine.low %v4998_v22, %v5006_v6  ;;  %v5107_v22 = vld [vmem:[%s12106_s21 + $0x570] sm:$0xff] }
0x1774   : > { %v11070_v27 = vpop.eup %11069 }
0x1775   : > { %v4895_v40 = vmul.f32 %v11070_v27, %v12725_v20  ;;  %v4896_v41 = vmul.f32 %v11070_v27, %v12728_v42  ;;  %v9582_v27 = vcombine.high %v5014_v13, %v5022_v33 }
0x1777   : > { %v4911_v53 = vmul.f32 %v4904_v34, %v4895_v40  ;;  %v4912_v54 = vmul.f32 %v4908_v36, %v4896_v41  ;;  %v5035_v40 = vld [vmem:[%s12106_s21 + $0x330] sm:$0xff] }
0x1778   : > { %v11072_v46 = vpop.eup %11071  ;;  %v5043_v41 = vld [vmem:[%s12106_s21 + $0x370] sm:$0xff] }
0x1779   : > { %v4897_v57 = vmul.f32 %v11072_v46, %v12731_v25  ;;  %v4898_v24 = vmul.f32 %v11072_v46, %v12734_v29  ;;  %v12784_v20 = vadd.f32 %v4920_v48, %v4911_v53  ;;  %v12786_v42 = vadd.f32 %v4924_v52, %v4912_v54  ;;  %v5046_v54 = vld [vmem:[%s12106_s21 + $0x388] sm:$0xff] }
0x177a   : > { %v9581_v46 = vcombine.low %v5014_v13, %v5022_v33  ;;  %v9608_v53 = vcombine.high %v5035_v40, %v5043_v41  ;;  %v9607_v5 = vcombine.low %v5035_v40, %v5043_v41  ;;  %v5123_v13 = vld [vmem:[%s12106_s21 + $0x5f0] sm:$0xff] }
0x177b   : > { %v4913_v0 = vmul.f32 %v4904_v34, %v4897_v57  ;;  %v4914_v35 = vmul.f32 %v4908_v36, %v4898_v24  ;;  %v9592_v34 = vcombine.high %v5019_v26, %v5027_v47  ;;  %v5030_v36 = vld [vmem:[%s12106_s21 + $0x308] sm:$0xff]  ;;  %v5051_v24 = vld [vmem:[%s12106_s21 + $0x3b0] sm:$0xff] }
0x177c   : > { %v5054_v57 = vld [vmem:[%s12106_s21 + $0x3c8] sm:$0xff] }
0x177d   : > { %v12788_v50 = vadd.f32 %v4920_v48, %v4913_v0  ;;  %v12790_v1 = vadd.f32 %v4924_v52, %v4914_v35  ;;  %v9591_v48 = vcombine.low %v5019_v26, %v5027_v47  ;;  %v9598_v52 = vcombine.high %v5030_v36, %v5038_v4  ;;  %v5059_v0 = vld [vmem:[%s12106_s21 + $0x3f0] sm:$0xff] }
0x177e   : > { %v9597_v35 = vcombine.low %v5030_v36, %v5038_v4  ;;  %v9614_v7 = vcombine.high %v5046_v54, %v5054_v57  ;;  %v9624_v9 = vcombine.high %v5051_v24, %v5059_v0  ;;  %v9613_v8 = vcombine.low %v5046_v54, %v5054_v57  ;;  %v5139_v36 = vld [vmem:[%s12106_s21 + $0x670] sm:$0xff] }
0x177f   : > { %v12798_v25 = vpack.c.bf16 %v12788_v50, %v12784_v20  ;;  %v12802_v29 = vpack.c.bf16 %v12790_v1, %v12786_v42  ;;  %v9623_v55 = vcombine.low %v5051_v24, %v5059_v0  ;;  %v5155_v54 = vld [vmem:[%s12106_s21 + $0x6f0] sm:$0xff] }
0x1781   : > { %6585 = vmatprep.mubr.bf16.mxu1 %v12802_v29  ;;  %6757 = vmatprep.mubr.bf16.mxu0 %v12802_v29 }
0x1782   : > { %6586 = vmatmul.mubr.bf16.vlgmr.msra.gmra.mrb[44].mxu1 %v12798_v25  ;;  %6758 = vmatmul.mubr.bf16.vlgmr.msra.gmra.mrb[40].mxu0 %v12798_v25 }
0x1783   : > { %6597 = vmatpush1.bf16.msra.mxu1 %v9501_v39  ;;  %6812 = vmatpush1.bf16.msra.mxu0 %v9511_v23  ;;  %v9549_v39 = vcombine.low %v4982_v16, %v4990_v17  ;;  %v9559_v23 = vcombine.low %v4987_v58, %v4995_v44  ;;  %v5091_v16 = vld [vmem:[%s12106_s21 + $0x4f0] sm:$0xff]  ;;  %v9629_v17 = vcombine.low %v5062_v3, %v5070_v56 }
0x1784   : > { %6628 = vmatprep.mubr.bf16.mxu1 %v12802_v29  ;;  %6843 = vmatprep.mubr.bf16.mxu0 %v12802_v29  ;;  %v5171_v3 = vld [vmem:[%s12106_s21 + $0x770] sm:$0xff] }
0x1785   : > { %6598 = vmatprep.subr.bf16.mxu1 %v9518_v10  ;;  %6813 = vmatprep.subr.bf16.mxu0 %v9528_v45  ;;  %v5067_v10 = vld [vmem:[%s12106_s21 + $0x430] sm:$0xff] }
0x1786   : > { %v5075_v45 = vld [vmem:[%s12106_s21 + $0x470] sm:$0xff] }
0x1787   : > { %6599 = vmatpush1.bf16.msra.mxu1 %v9517_v59  ;;  %6814 = vmatpush1.bf16.msra.mxu0 %v9527_v12  ;;  %v9640_v59 = vcombine.high %v5067_v10, %v5075_v45  ;;  %v5078_v12 = vld [vmem:[%s12106_s21 + $0x488] sm:$0xff]  ;;  %v9639_v58 = vcombine.low %v5067_v10, %v5075_v45 }
0x1788   : > { %6600 = vmatprep.subr.bf16.mxu1 %v9534_v14  ;;  %6815 = vmatprep.subr.bf16.mxu0 %v9544_v15  ;;  %v5086_v14 = vld [vmem:[%s12106_s21 + $0x4c8] sm:$0xff]  ;;  %v5083_v15 = vld [vmem:[%s12106_s21 + $0x4b0] sm:$0xff] }
0x1789   : > { %v9646_v44 = vcombine.high %v5078_v12, %v5086_v14  ;;  %v9645_v6 = vcombine.low %v5078_v12, %v5086_v14  ;;  %v9655_v2 = vcombine.low %v5083_v15, %v5091_v16  ;;  %v5187_v12 = vld [vmem:[%s12106_s21 + $0x7f0] sm:$0xff] }
0x178b   : > { %6601 = vmatpush1.bf16.msra.mxu1 %v9533_v18  ;;  %6816 = vmatpush1.bf16.msra.mxu0 %v9543_v21  ;;  %v9656_v18 = vcombine.high %v5083_v15, %v5091_v16  ;;  %v5094_v21 = vld [vmem:[%s12106_s21 + $0x508] sm:$0xff] }
0x178c   : > { %6602 = vmatprep.subr.bf16.mxu1 %v9550_v61  ;;  %6817 = vmatprep.subr.bf16.mxu0 %v9560_v19  ;;  %v5102_v61 = vld [vmem:[%s12106_s21 + $0x548] sm:$0xff]  ;;  %v5099_v19 = vld [vmem:[%s12106_s21 + $0x530] sm:$0xff] }
0x178d   : > { %v9662_v60 = vcombine.high %v5094_v21, %v5102_v61  ;;  %v9661_v33 = vcombine.low %v5094_v21, %v5102_v61  ;;  %v9671_v26 = vcombine.low %v5099_v19, %v5107_v22 }
0x178f   : > { %6603 = vmatpush1.bf16.msra.mxu1 %v9549_v39  ;;  %6818 = vmatpush1.bf16.msra.mxu0 %v9559_v23  ;;  %v9672_v39 = vcombine.high %v5099_v19, %v5107_v22  ;;  %v5110_v23 = vld [vmem:[%s12106_s21 + $0x588] sm:$0xff]  ;;  %v4951_v22 = vld [vmem:[%s12106_s21 + $0x90] sm:$0xff] }
0x1790   : > { %6604 = vmatprep.subr.bf16.mxu1 %v9566_v31  ;;  %6819 = vmatprep.subr.bf16.mxu0 %v9576_v32  ;;  %v5118_v31 = vld [vmem:[%s12106_s21 + $0x5c8] sm:$0xff]  ;;  %v5115_v32 = vld [vmem:[%s12106_s21 + $0x5b0] sm:$0xff] }
0x1791   : > { %v9678_v47 = vcombine.high %v5110_v23, %v5118_v31  ;;  %v9677_v4 = vcombine.low %v5110_v23, %v5118_v31  ;;  %v9687_v40 = vcombine.low %v5115_v32, %v5123_v13  ;;  %v10623_v19 = vld [vmem:[%s12115_s23 + $0x4] ss:$8 sps:$4 sm:$0xff]   ;;  %v4967_v23 = vld [vmem:[%s12106_s21 + $0x110] sm:$0xff] }
0x1792   : > { %v4975_v31 = vld [vmem:[%s12106_s21 + $0x150] sm:$0xff] }
0x1793   : > { %6605 = vmatpush1.bf16.msra.mxu1 %v9565_v37  ;;  %6820 = vmatpush1.bf16.msra.mxu0 %v9575_v38  ;;  %v9688_v37 = vcombine.high %v5115_v32, %v5123_v13  ;;  %v5126_v38 = vld [vmem:[%s12106_s21 + $0x608] sm:$0xff]  ;;  %v10626_v32 = vld [vmem:[%s12115_s23 + $0x14] ss:$8 sps:$4 sm:$0xff]  }
0x1794   : > { %6606 = vmatprep.subr.bf16.mxu1 %v9582_v27  ;;  %6821 = vmatprep.subr.bf16.mxu0 %v9592_v34  ;;  %v5134_v27 = vld [vmem:[%s12106_s21 + $0x648] sm:$0xff]  ;;  %v5131_v34 = vld [vmem:[%s12106_s21 + $0x630] sm:$0xff] }
0x1795   : > { %v9694_v41 = vcombine.high %v5126_v38, %v5134_v27  ;;  %v9693_v57 = vcombine.low %v5126_v38, %v5134_v27  ;;  %v9703_v24 = vcombine.low %v5131_v34, %v5139_v36  ;;  %v10629_v38 = vld [vmem:[%s12115_s23 + $0x24] ss:$8 sps:$4 sm:$0xff]   ;;  %v9535_v27 = vcombine.low %v4967_v23, %v4975_v31 }
0x1797   : > { %6607 = vmatpush1.bf16.msra.mxu1 %v9581_v46  ;;  %6822 = vmatpush1.bf16.msra.mxu0 %v9591_v48  ;;  %v9704_v46 = vcombine.high %v5131_v34, %v5139_v36  ;;  %v5142_v48 = vld [vmem:[%s12106_s21 + $0x688] sm:$0xff] }
0x1798   : > { %6608 = vmatprep.subr.bf16.mxu1 %v9598_v52  ;;  %6823 = vmatprep.subr.bf16.mxu0 %v9608_v53  ;;  %v5150_v52 = vld [vmem:[%s12106_s21 + $0x6c8] sm:$0xff]  ;;  %v5147_v53 = vld [vmem:[%s12106_s21 + $0x6b0] sm:$0xff] }
0x1799   : > { %v9710_v0 = vcombine.high %v5142_v48, %v5150_v52  ;;  %v9709_v56 = vcombine.low %v5142_v48, %v5150_v52  ;;  %v9719_v10 = vcombine.low %v5147_v53, %v5155_v54  ;;  %v10627_v36 = vld [vmem:[%s12115_s23 + $0x20] ss:$8 sps:$4 sm:$0xff]   ;;  %v10630_v52 = vld [vmem:[%s12115_s23 + $0x30] ss:$8 sps:$4 sm:$0xff]  }
0x179b   : > { %6609 = vmatpush1.bf16.msra.mxu1 %v9597_v35  ;;  %6824 = vmatpush1.bf16.msra.mxu0 %v9607_v5  ;;  %v9720_v35 = vcombine.high %v5147_v53, %v5155_v54  ;;  %v5158_v5 = vld [vmem:[%s12106_s21 + $0x708] sm:$0xff]  ;;  %v5015_v53 = vld [vmem:[%s12106_s21 + $0x290] sm:$0xff] }
0x179c   : > { %6610 = vmatprep.subr.bf16.mxu1 %v9614_v7  ;;  %6825 = vmatprep.subr.bf16.mxu0 %v9624_v9  ;;  %v5166_v7 = vld [vmem:[%s12106_s21 + $0x748] sm:$0xff]  ;;  %v5163_v9 = vld [vmem:[%s12106_s21 + $0x730] sm:$0xff] }
0x179d   : > { %v9726_v45 = vcombine.high %v5158_v5, %v5166_v7  ;;  %v9725_v14 = vcombine.low %v5158_v5, %v5166_v7  ;;  %v9735_v15 = vcombine.low %v5163_v9, %v5171_v3  ;;  %v5023_v54 = vld [vmem:[%s12106_s21 + $0x2d0] sm:$0xff] }
0x179e   : > { %v5031_v5 = vld [vmem:[%s12106_s21 + $0x310] sm:$0xff] }
0x179f   : > { %6611 = vmatpush1.bf16.msra.mxu1 %v9613_v8  ;;  %6826 = vmatpush1.bf16.msra.mxu0 %v9623_v55  ;;  %v9736_v8 = vcombine.high %v5163_v9, %v5171_v3  ;;  %v5174_v55 = vld [vmem:[%s12106_s21 + $0x788] sm:$0xff]  ;;  %v5039_v7 = vld [vmem:[%s12106_s21 + $0x350] sm:$0xff]  ;;  %v9583_v3 = vcombine.low %v5015_v53, %v5023_v54 }
0x17a0   : > { %6612 = vmatprep.subr.bf16.mxu1 %v9630_v11  ;;  %6827 = vmatprep.subr.bf16.mxu0 %v9640_v59  ;;  %v5182_v11 = vld [vmem:[%s12106_s21 + $0x7c8] sm:$0xff]  ;;  %v5179_v59 = vld [vmem:[%s12106_s21 + $0x7b0] sm:$0xff] }
0x17a1   : > { %v9742_v16 = vcombine.high %v5174_v55, %v5182_v11  ;;  %v9751_v21 = vcombine.low %v5179_v59, %v5187_v12  ;;  %v10638_v9 = vld [vmem:[%s12115_s23 + $0x54] ss:$8 sps:$4 sm:$0xff]  }
0x17a3   : > { %6613 = vmatpush1.bf16.msra.mxu1 %v9629_v17  ;;  %6828 = vmatpush1.bf16.msra.mxu0 %v9639_v58  ;;  %v9752_v17 = vcombine.high %v5179_v59, %v5187_v12  ;;  %v4935_v58 = vld [vmem:[%s12106_s21 + $0x10] sm:$0xff]  ;;  %v10639_v12 = vld [vmem:[%s12115_s23 + $0x60] ss:$8 sps:$4 sm:$0xff]  }
0x17a4   : > { %6614 = vmatprep.subr.bf16.mxu1 %v9646_v44  ;;  %6829 = vmatprep.subr.bf16.mxu0 %v9656_v18  ;;  %v4943_v44 = vld [vmem:[%s12106_s21 + $0x50] sm:$0xff]  ;;  %v9741_v18 = vcombine.low %v5174_v55, %v5182_v11  ;;  %v10641_v55 = vld [vmem:[%s12115_s23 + $0x64] ss:$8 sps:$4 sm:$0xff]   ;;  %v9599_v11 = vcombine.low %v5031_v5, %v5039_v7 }
0x17a5   : > { %v9504_v61 = vcombine.high %v4935_v58, %v4943_v44 }
0x17a7   : > { %6615 = vmatpush1.bf16.msra.mxu1 %v9645_v6  ;;  %6830 = vmatpush1.bf16.msra.mxu0 %v9655_v2  ;;  %v4959_v6 = vld [vmem:[%s12106_s21 + $0xd0] sm:$0xff]  ;;  %v9503_v2 = vcombine.low %v4935_v58, %v4943_v44 }
0x17a8   : > { %6616 = vmatprep.subr.bf16.mxu1 %v9662_v60  ;;  %6831 = vmatprep.subr.bf16.mxu0 %v9672_v39  ;;  %v9520_v60 = vcombine.high %v4951_v22, %v4959_v6  ;;  %v10621_v39 = vld [vmem:[%s12115_s23] ss:$8 sps:$4 sm:$0xff]   ;;  %v9519_v13 = vcombine.low %v4951_v22, %v4959_v6  ;;  %v10642_v44 = vld [vmem:[%s12115_s23 + $0x70] ss:$8 sps:$4 sm:$0xff]  }
0x17a9   : > { %v10645_v6 = vld [vmem:[%s12115_s23 + $0x80] ss:$8 sps:$4 sm:$0xff]  }
0x17ab   : > { %6617 = vmatpush1.bf16.msra.mxu1 %v9661_v33  ;;  %6832 = vmatpush1.bf16.msra.mxu0 %v9671_v26  ;;  %v9536_v33 = vcombine.high %v4967_v23, %v4975_v31  ;;  %v10624_v26 = vld [vmem:[%s12115_s23 + $0x10] ss:$8 sps:$4 sm:$0xff]  }
0x17ac   : > { %6618 = vmatprep.subr.bf16.mxu1 %v9678_v47  ;;  %6833 = vmatprep.subr.bf16.mxu0 %v9688_v37  ;;  %v4983_v47 = vld [vmem:[%s12106_s21 + $0x190] sm:$0xff] }
0x17ad   : > { %v4991_v37 = vld [vmem:[%s12106_s21 + $0x1d0] sm:$0xff] }
0x17ae   : > { %v9552_v34 = vcombine.high %v4983_v47, %v4991_v37 }
0x17af   : > { %6619 = vmatpush1.bf16.msra.mxu1 %v9677_v4  ;;  %6834 = vmatpush1.bf16.msra.mxu0 %v9687_v40  ;;  %v4999_v4 = vld [vmem:[%s12106_s21 + $0x210] sm:$0xff] }
0x17b0   : > { %6620 = vmatprep.subr.bf16.mxu1 %v9694_v41  ;;  %6835 = vmatprep.subr.bf16.mxu0 %v9704_v46  ;;  %v5007_v40 = vld [vmem:[%s12106_s21 + $0x250] sm:$0xff]  ;;  %v9551_v46 = vcombine.low %v4983_v47, %v4991_v37 }
0x17b1   : > { %v10632_v41 = vld [vmem:[%s12115_s23 + $0x34] ss:$8 sps:$4 sm:$0xff]   ;;  %v9568_v48 = vcombine.high %v4999_v4, %v5007_v40 }
0x17b3   : > { %6621 = vmatpush1.bf16.msra.mxu1 %v9693_v57  ;;  %6836 = vmatpush1.bf16.msra.mxu0 %v9703_v24  ;;  %v10635_v57 = vld [vmem:[%s12115_s23 + $0x44] ss:$8 sps:$4 sm:$0xff]   ;;  %v9567_v24 = vcombine.low %v4999_v4, %v5007_v40 }
0x17b4   : > { %6622 = vmatprep.subr.bf16.mxu1 %v9710_v0  ;;  %6837 = vmatprep.subr.bf16.mxu0 %v9720_v35  ;;  %v9584_v0 = vcombine.high %v5015_v53, %v5023_v54  ;;  %v10633_v35 = vld [vmem:[%s12115_s23 + $0x40] ss:$8 sps:$4 sm:$0xff]  }
0x17b7   : > { %6623 = vmatpush1.bf16.msra.mxu1 %v9709_v56  ;;  %6838 = vmatpush1.bf16.msra.mxu0 %v9719_v10  ;;  %v9600_v56 = vcombine.high %v5031_v5, %v5039_v7  ;;  %v10636_v10 = vld [vmem:[%s12115_s23 + $0x50] ss:$8 sps:$4 sm:$0xff]  }
0x17b8   : > { %6624 = vmatprep.subr.bf16.mxu1 %v9726_v45  ;;  %6839 = vmatprep.subr.bf16.mxu0 %v9736_v8  ;;  %v5047_v45 = vld [vmem:[%s12106_s21 + $0x390] sm:$0xff] }
0x17b9   : > { %v5055_v8 = vld [vmem:[%s12106_s21 + $0x3d0] sm:$0xff] }
0x17ba   : > { %v9616_v59 = vcombine.high %v5047_v45, %v5055_v8 }
0x17bb   : > { %6625 = vmatpush1.bf16.msra.mxu1 %v9725_v14  ;;  %6840 = vmatpush1.bf16.msra.mxu0 %v9735_v15  ;;  %v5063_v14 = vld [vmem:[%s12106_s21 + $0x410] sm:$0xff] }
0x17bc   : > { %6626 = vmatprep.subr.bf16.mxu1 %v9742_v16  ;;  %6841 = vmatprep.subr.bf16.mxu0 %v9752_v17  ;;  %v5071_v15 = vld [vmem:[%s12106_s21 + $0x450] sm:$0xff]  ;;  %v9615_v17 = vcombine.low %v5047_v45, %v5055_v8 }
0x17bd   : > { %v10644_v16 = vld [vmem:[%s12115_s23 + $0x74] ss:$8 sps:$4 sm:$0xff]   ;;  %v9632_v58 = vcombine.high %v5063_v14, %v5071_v15 }
0x17bf   : > { %6627 = vmatpush1.bf16.msra.mxu1 %v9741_v18  ;;  %6842 = vmatpush1.bf16.msra.mxu0 %v9751_v21  ;;  %v5079_v18 = vld [vmem:[%s12106_s21 + $0x490] sm:$0xff] }
0x17c0   : > { %6639 = vmatprep.subr.bf16.mxu1 %v9504_v61  ;;  %8493 = vmatprep.subr.bf16.mxu0 %v10623_v19  ;;  %v5087_v21 = vld [vmem:[%s12106_s21 + $0x4d0] sm:$0xff]  ;;  %v10647_v61 = vld [vmem:[%s12115_s23 + $0x84] ss:$8 sps:$4 sm:$0xff]   ;;  %v9631_v19 = vcombine.low %v5063_v14, %v5071_v15 }
0x17c1   : > { %v9648_v22 = vcombine.high %v5079_v18, %v5087_v21  ;;  %v9647_v23 = vcombine.low %v5079_v18, %v5087_v21 }
0x17c2   : > { %6629 = vmatmul.mubr.bf16.vlgmr.msra.gmra.mrb[48].mxu1 %v12798_v25  ;;  %6844 = vmatmul.mubr.bf16.vlgmr.msra.gmra.mrb[44].mxu0 %v12798_v25 }
0x17c3   : > { %6640 = vmatpush1.bf16.msra.mxu1 %v9503_v2  ;;  %6671 = vmatprep.mubr.bf16.mxu1 %v12802_v29  ;;  %v5095_v2 = vld [vmem:[%s12106_s21 + $0x510] sm:$0xff] }
0x17c4   : > { %6641 = vmatprep.subr.bf16.mxu1 %v9520_v60  ;;  %8494 = vmatpush1.bf16.msra.mxu0 %v10621_v39  ;;  %v5103_v60 = vld [vmem:[%s12106_s21 + $0x550] sm:$0xff] }
0x17c5   : > { %8495 = vmatprep.subr.bf16.mxu0 %v10626_v32  ;;  %v10650_v39 = vld [vmem:[%s12115_s23 + $0x94] ss:$8 sps:$4 sm:$0xff]   ;;  %v9664_v31 = vcombine.high %v5095_v2, %v5103_v60  ;;  %v10648_v32 = vld [vmem:[%s12115_s23 + $0x90] ss:$8 sps:$4 sm:$0xff]   ;;  %v9663_v47 = vcombine.low %v5095_v2, %v5103_v60 }
0x17c6   : > { %v4984_v2 = vld [vmem:[%s12106_s21 + $0x198] sm:$0xff] }
0x17c7   : > { %6642 = vmatpush1.bf16.msra.mxu1 %v9519_v13  ;;  %v5111_v13 = vld [vmem:[%s12106_s21 + $0x590] sm:$0xff]  ;;  %v4992_v60 = vld [vmem:[%s12106_s21 + $0x1d8] sm:$0xff] }
0x17c8   : > { %6643 = vmatprep.subr.bf16.mxu1 %v9536_v33  ;;  %8496 = vmatpush1.bf16.msra.mxu0 %v10624_v26  ;;  %v5119_v33 = vld [vmem:[%s12106_s21 + $0x5d0] sm:$0xff]  ;;  %v10653_v26 = vld [vmem:[%s12115_s23 + $0xa4] ss:$8 sps:$4 sm:$0xff]  }
0x17c9   : > { %8497 = vmatprep.subr.bf16.mxu0 %v10629_v38  ;;  %v9680_v37 = vcombine.high %v5111_v13, %v5119_v33  ;;  %v10651_v38 = vld [vmem:[%s12115_s23 + $0xa0] ss:$8 sps:$4 sm:$0xff]   ;;  %v9679_v4 = vcombine.low %v5111_v13, %v5119_v33  ;;  %v9553_v13 = vcombine.low %v4984_v2, %v4992_v60 }
0x17cb   : > { %6644 = vmatpush1.bf16.msra.mxu1 %v9535_v27  ;;  %v5127_v27 = vld [vmem:[%s12106_s21 + $0x610] sm:$0xff] }
0x17cc   : > { %6645 = vmatprep.subr.bf16.mxu1 %v9552_v34  ;;  %8498 = vmatpush1.bf16.msra.mxu0 %v10627_v36  ;;  %v5135_v34 = vld [vmem:[%s12106_s21 + $0x650] sm:$0xff] }
0x17cd   : > { %8499 = vmatprep.subr.bf16.mxu0 %v10632_v41  ;;  %v10656_v36 = vld [vmem:[%s12115_s23 + $0xb4] ss:$8 sps:$4 sm:$0xff]   ;;  %v9696_v40 = vcombine.high %v5127_v27, %v5135_v34  ;;  %v10654_v41 = vld [vmem:[%s12115_s23 + $0xb0] ss:$8 sps:$4 sm:$0xff]   ;;  %v9695_v53 = vcombine.low %v5127_v27, %v5135_v34 }
0x17ce   : > { %v5032_v27 = vld [vmem:[%s12106_s21 + $0x318] sm:$0xff] }
0x17cf   : > { %6646 = vmatpush1.bf16.msra.mxu1 %v9551_v46  ;;  %v5143_v46 = vld [vmem:[%s12106_s21 + $0x690] sm:$0xff]  ;;  %v5040_v34 = vld [vmem:[%s12106_s21 + $0x358] sm:$0xff] }
0x17d0   : > { %6647 = vmatprep.subr.bf16.mxu1 %v9568_v48  ;;  %8500 = vmatpush1.bf16.msra.mxu0 %v10630_v52  ;;  %v5151_v48 = vld [vmem:[%s12106_s21 + $0x6d0] sm:$0xff]  ;;  %v10659_v52 = vld [vmem:[%s12115_s23 + $0xc4] ss:$8 sps:$4 sm:$0xff]  }
0x17d1   : > { %8501 = vmatprep.subr.bf16.mxu0 %v10635_v57  ;;  %v9712_v54 = vcombine.high %v5143_v46, %v5151_v48  ;;  %v10657_v57 = vld [vmem:[%s12115_s23 + $0xc0] ss:$8 sps:$4 sm:$0xff]   ;;  %v9711_v5 = vcombine.low %v5143_v46, %v5151_v48  ;;  %v9601_v46 = vcombine.low %v5032_v27, %v5040_v34 }
0x17d3   : > { %6648 = vmatpush1.bf16.msra.mxu1 %v9567_v24  ;;  %v5159_v24 = vld [vmem:[%s12106_s21 + $0x710] sm:$0xff] }
0x17d4   : > { %6649 = vmatprep.subr.bf16.mxu1 %v9584_v0  ;;  %8502 = vmatpush1.bf16.msra.mxu0 %v10633_v35  ;;  %v5167_v0 = vld [vmem:[%s12106_s21 + $0x750] sm:$0xff] }
0x17d5   : > { %8503 = vmatprep.subr.bf16.mxu0 %v10638_v9  ;;  %v10662_v35 = vld [vmem:[%s12115_s23 + $0xd4] ss:$8 sps:$4 sm:$0xff]   ;;  %v9728_v7 = vcombine.high %v5159_v24, %v5167_v0  ;;  %v10660_v9 = vld [vmem:[%s12115_s23 + $0xd0] ss:$8 sps:$4 sm:$0xff]   ;;  %v9727_v45 = vcombine.low %v5159_v24, %v5167_v0 }
0x17d6   : > { %v5080_v24 = vld [vmem:[%s12106_s21 + $0x498] sm:$0xff] }
0x17d7   : > { %6650 = vmatpush1.bf16.msra.mxu1 %v9583_v3  ;;  %v5175_v3 = vld [vmem:[%s12106_s21 + $0x790] sm:$0xff]  ;;  %v5088_v0 = vld [vmem:[%s12106_s21 + $0x4d8] sm:$0xff] }
0x17d8   : > { %6651 = vmatprep.subr.bf16.mxu1 %v9600_v56  ;;  %8504 = vmatpush1.bf16.msra.mxu0 %v10636_v10  ;;  %v5183_v56 = vld [vmem:[%s12106_s21 + $0x7d0] sm:$0xff]  ;;  %v10665_v10 = vld [vmem:[%s12115_s23 + $0xe4] ss:$8 sps:$4 sm:$0xff]  }
0x17d9   : > { %8505 = vmatprep.subr.bf16.mxu0 %v10641_v55  ;;  %v9744_v8 = vcombine.high %v5175_v3, %v5183_v56  ;;  %v10663_v55 = vld [vmem:[%s12115_s23 + $0xe0] ss:$8 sps:$4 sm:$0xff]   ;;  %v9743_v14 = vcombine.low %v5175_v3, %v5183_v56  ;;  %v9649_v3 = vcombine.low %v5080_v24, %v5088_v0 }
0x17db   : > { %6652 = vmatpush1.bf16.msra.mxu1 %v9599_v11  ;;  %v4936_v11 = vld [vmem:[%s12106_s21 + $0x18] sm:$0xff] }
0x17dc   : > { %6653 = vmatprep.subr.bf16.mxu1 %v9616_v59  ;;  %8506 = vmatpush1.bf16.msra.mxu0 %v10639_v12  ;;  %v4944_v59 = vld [vmem:[%s12106_s21 + $0x58] sm:$0xff] }
0x17dd   : > { %8507 = vmatprep.subr.bf16.mxu0 %v10644_v16  ;;  %v10668_v12 = vld [vmem:[%s12115_s23 + $0xf4] ss:$8 sps:$4 sm:$0xff]   ;;  %v9506_v15 = vcombine.high %v4936_v11, %v4944_v59  ;;  %v10666_v16 = vld [vmem:[%s12115_s23 + $0xf0] ss:$8 sps:$4 sm:$0xff]   ;;  %v9505_v18 = vcombine.low %v4936_v11, %v4944_v59 }
0x17de   : > { %v5128_v11 = vld [vmem:[%s12106_s21 + $0x618] sm:$0xff] }
0x17df   : > { %6654 = vmatpush1.bf16.msra.mxu1 %v9615_v17  ;;  %v4952_v17 = vld [vmem:[%s12106_s21 + $0x98] sm:$0xff] }
0x17e0   : > { %6655 = vmatprep.subr.bf16.mxu1 %v9632_v58  ;;  %8508 = vmatpush1.bf16.msra.mxu0 %v10642_v44  ;;  %v4960_v58 = vld [vmem:[%s12106_s21 + $0xd8] sm:$0xff]  ;;  %v10671_v44 = vld [vmem:[%s12115_s23 + $0x104] ss:$8 sps:$4 sm:$0xff]  }
0x17e1   : > { %8509 = vmatprep.subr.bf16.mxu0 %v10647_v61  ;;  %v9522_v21 = vcombine.high %v4952_v17, %v4960_v58  ;;  %v4968_v61 = vld [vmem:[%s12106_s21 + $0x118] sm:$0xff] }
0x17e2   : > { %v5136_v59 = vld [vmem:[%s12106_s21 + $0x658] sm:$0xff] }
0x17e3   : > { %6656 = vmatpush1.bf16.msra.mxu1 %v9631_v19  ;;  %v4976_v19 = vld [vmem:[%s12106_s21 + $0x158] sm:$0xff] }
0x17e4   : > { %6657 = vmatprep.subr.bf16.mxu1 %v9648_v22  ;;  %8510 = vmatpush1.bf16.msra.mxu0 %v10645_v6  ;;  %v9521_v22 = vcombine.low %v4952_v17, %v4960_v58  ;;  %v9538_v6 = vcombine.high %v4968_v61, %v4976_v19  ;;  %v9697_v17 = vcombine.low %v5128_v11, %v5136_v59 }
0x17e5   : > { %8511 = vmatprep.subr.bf16.mxu0 %v10650_v39  ;;  %v9537_v39 = vcombine.low %v4968_v61, %v4976_v19  ;;  %v5176_v19 = vld [vmem:[%s12106_s21 + $0x798] sm:$0xff] }
0x17e7   : > { %6658 = vmatpush1.bf16.msra.mxu1 %v9647_v23  ;;  %v9554_v23 = vcombine.high %v4984_v2, %v4992_v60  ;;  %v4938_v60 = vld [vmem:[%s12106_s21 + $0x28] sm:$0xff] }
0x17e8   : > { %6659 = vmatprep.subr.bf16.mxu1 %v9664_v31  ;;  %8512 = vmatpush1.bf16.msra.mxu0 %v10648_v32  ;;  %v5000_v31 = vld [vmem:[%s12106_s21 + $0x218] sm:$0xff] }
0x17e9   : > { %8513 = vmatprep.subr.bf16.mxu0 %v10653_v26  ;;  %v5008_v32 = vld [vmem:[%s12106_s21 + $0x258] sm:$0xff] }
0x17ea   : > { %v9570_v33 = vcombine.high %v5000_v31, %v5008_v32  ;;  %v5016_v26 = vld [vmem:[%s12106_s21 + $0x298] sm:$0xff] }
0x17eb   : > { %6660 = vmatpush1.bf16.msra.mxu1 %v9663_v47  ;;  %v5024_v47 = vld [vmem:[%s12106_s21 + $0x2d8] sm:$0xff] }
0x17ec   : > { %6661 = vmatprep.subr.bf16.mxu1 %v9680_v37  ;;  %8514 = vmatpush1.bf16.msra.mxu0 %v10651_v38  ;;  %v9569_v37 = vcombine.low %v5000_v31, %v5008_v32  ;;  %v9586_v38 = vcombine.high %v5016_v26, %v5024_v47  ;;  %v4954_v32 = vld [vmem:[%s12106_s21 + $0xa8] sm:$0xff] }
0x17ed   : > { %8515 = vmatprep.subr.bf16.mxu0 %v10656_v36  ;;  %v9585_v36 = vcombine.low %v5016_v26, %v5024_v47  ;;  %v4970_v47 = vld [vmem:[%s12106_s21 + $0x128] sm:$0xff] }
0x17ef   : > { %6662 = vmatpush1.bf16.msra.mxu1 %v9679_v4  ;;  %v9602_v4 = vcombine.high %v5032_v27, %v5040_v34  ;;  %v4986_v34 = vld [vmem:[%s12106_s21 + $0x1a8] sm:$0xff] }
0x17f0   : > { %6663 = vmatprep.subr.bf16.mxu1 %v9696_v40  ;;  %8516 = vmatpush1.bf16.msra.mxu0 %v10654_v41  ;;  %v5048_v40 = vld [vmem:[%s12106_s21 + $0x398] sm:$0xff] }
0x17f1   : > { %8517 = vmatprep.subr.bf16.mxu0 %v10659_v52  ;;  %v5056_v41 = vld [vmem:[%s12106_s21 + $0x3d8] sm:$0xff] }
0x17f2   : > { %v9618_v48 = vcombine.high %v5048_v40, %v5056_v41  ;;  %v5064_v52 = vld [vmem:[%s12106_s21 + $0x418] sm:$0xff] }
0x17f3   : > { %6664 = vmatpush1.bf16.msra.mxu1 %v9695_v53  ;;  %v5072_v53 = vld [vmem:[%s12106_s21 + $0x458] sm:$0xff] }
0x17f4   : > { %6665 = vmatprep.subr.bf16.mxu1 %v9712_v54  ;;  %8518 = vmatpush1.bf16.msra.mxu0 %v10657_v57  ;;  %v9617_v54 = vcombine.low %v5048_v40, %v5056_v41  ;;  %v9634_v57 = vcombine.high %v5064_v52, %v5072_v53  ;;  %v5002_v41 = vld [vmem:[%s12106_s21 + $0x228] sm:$0xff] }
0x17f5   : > { %8519 = vmatprep.subr.bf16.mxu0 %v10662_v35  ;;  %v9633_v35 = vcombine.low %v5064_v52, %v5072_v53  ;;  %v5018_v53 = vld [vmem:[%s12106_s21 + $0x2a8] sm:$0xff] }
0x17f7   : > { %6666 = vmatpush1.bf16.msra.mxu1 %v9711_v5  ;;  %v9650_v5 = vcombine.high %v5080_v24, %v5088_v0  ;;  %v12983_v24 = vld [vmem:[%s12109_s24] sm:$0xff]  ;;  %v12986_v0 = vld [vmem:[%s12109_s24 + $0x8] sm:$0xff] }
0x17f8   : > { %6667 = vmatprep.subr.bf16.mxu1 %v9728_v7  ;;  %8520 = vmatpush1.bf16.msra.mxu0 %v10660_v9  ;;  %v5096_v7 = vld [vmem:[%s12106_s21 + $0x518] sm:$0xff] }
0x17f9   : > { %8521 = vmatprep.subr.bf16.mxu0 %v10665_v10  ;;  %v5104_v9 = vld [vmem:[%s12106_s21 + $0x558] sm:$0xff] }
0x17fa   : > { %v9666_v56 = vcombine.high %v5096_v7, %v5104_v9  ;;  %v5112_v10 = vld [vmem:[%s12106_s21 + $0x598] sm:$0xff] }
0x17fb   : > { %6668 = vmatpush1.bf16.msra.mxu1 %v9727_v45  ;;  %v5120_v45 = vld [vmem:[%s12106_s21 + $0x5d8] sm:$0xff] }
0x17fc   : > { %6669 = vmatprep.subr.bf16.mxu1 %v9744_v8  ;;  %8522 = vmatpush1.bf16.msra.mxu0 %v10663_v55  ;;  %v9665_v8 = vcombine.low %v5096_v7, %v5104_v9  ;;  %v9682_v55 = vcombine.high %v5112_v10, %v5120_v45  ;;  %v5042_v7 = vld [vmem:[%s12106_s21 + $0x368] sm:$0xff]  ;;  %v5196_v9 = vrot.slane %v12983_v24, %v12268_v51 }
0x17fd   : > { %8523 = vmatprep.subr.bf16.mxu0 %v10668_v12  ;;  %v9681_v12 = vcombine.low %v5112_v10, %v5120_v45  ;;  %v5200_v10 = vrot.slane %v12983_v24, %v12441_v30  ;;  %v5232_v45 = vrot.slane %v12986_v0, %v12441_v30 }
0x17ff   : > { %6670 = vmatpush1.bf16.msra.mxu1 %v9743_v14  ;;  %v9698_v14 = vcombine.high %v5128_v11, %v5136_v59  ;;  %v5050_v59 = vld [vmem:[%s12106_s21 + $0x3a8] sm:$0xff] }
0x1800   : > { %6682 = vmatprep.subr.bf16.mxu1 %v9506_v15  ;;  %8524 = vmatpush1.bf16.msra.mxu0 %v10666_v16  ;;  %v5144_v15 = vld [vmem:[%s12106_s21 + $0x698] sm:$0xff] }
0x1801   : > { %8536 = vmatprep.subr.bf16.mxu0 %v10671_v44  ;;  %v5152_v16 = vld [vmem:[%s12106_s21 + $0x6d8] sm:$0xff] }
0x1802   : > { %6672 = vmatmul.mubr.bf16.vlgmr.msra.gmra.mrb[52].mxu1 %v12798_v25  ;;  %v9714_v58 = vcombine.high %v5144_v15, %v5152_v16  ;;  %v5160_v44 = vld [vmem:[%s12106_s21 + $0x718] sm:$0xff] }
0x1803   : > { %6683 = vmatpush1.bf16.msra.mxu1 %v9505_v18  ;;  %6714 = vmatprep.mubr.bf16.mxu1 %v12802_v29  ;;  %v5168_v18 = vld [vmem:[%s12106_s21 + $0x758] sm:$0xff] }
0x1804   : > { %6684 = vmatprep.subr.bf16.mxu1 %v9522_v21  ;;  %v9713_v21 = vcombine.low %v5144_v15, %v5152_v16  ;;  %v9730_v61 = vcombine.high %v5160_v44, %v5168_v18 }
0x1807   : > { %6685 = vmatpush1.bf16.msra.mxu1 %v9521_v22  ;;  %v5184_v22 = vld [vmem:[%s12106_s21 + $0x7d8] sm:$0xff] }
0x1808   : > { %6686 = vmatprep.subr.bf16.mxu1 %v9538_v6  ;;  %v9729_v6 = vcombine.low %v5160_v44, %v5168_v18  ;;  %v9746_v2 = vcombine.high %v5176_v19, %v5184_v22 }
0x180b   : > { %6687 = vmatpush1.bf16.msra.mxu1 %v9537_v39  ;;  %v4946_v39 = vld [vmem:[%s12106_s21 + $0x68] sm:$0xff] }
0x180c   : > { %6688 = vmatprep.subr.bf16.mxu1 %v9554_v23  ;;  %v9745_v23 = vcombine.low %v5176_v19, %v5184_v22  ;;  %v9510_v31 = vcombine.high %v4938_v60, %v4946_v39 }
0x180f   : > { %6689 = vmatpush1.bf16.msra.mxu1 %v9553_v13  ;;  %v4962_v13 = vld [vmem:[%s12106_s21 + $0xe8] sm:$0xff] }
0x1810   : > { %6690 = vmatprep.subr.bf16.mxu1 %v9570_v33  ;;  %v9509_v33 = vcombine.low %v4938_v60, %v4946_v39  ;;  %v9526_v26 = vcombine.high %v4954_v32, %v4962_v13 }
0x1813   : > { %6691 = vmatpush1.bf16.msra.mxu1 %v9569_v37  ;;  %v4978_v37 = vld [vmem:[%s12106_s21 + $0x168] sm:$0xff] }
0x1814   : > { %6692 = vmatprep.subr.bf16.mxu1 %v9586_v38  ;;  %v9525_v38 = vcombine.low %v4954_v32, %v4962_v13  ;;  %v9542_v27 = vcombine.high %v4970_v47, %v4978_v37  ;;  %v5066_v32 = vld [vmem:[%s12106_s21 + $0x428] sm:$0xff] }
0x1815   : > { %v5074_v13 = vld [vmem:[%s12106_s21 + $0x468] sm:$0xff] }
0x1817   : > { %6693 = vmatpush1.bf16.msra.mxu1 %v9585_v36  ;;  %v4994_v36 = vld [vmem:[%s12106_s21 + $0x1e8] sm:$0xff] }
0x1818   : > { %6694 = vmatprep.subr.bf16.mxu1 %v9602_v4  ;;  %v9541_v4 = vcombine.low %v4970_v47, %v4978_v37  ;;  %v9558_v40 = vcombine.high %v4986_v34, %v4994_v36 }
0x181b   : > { %6695 = vmatpush1.bf16.msra.mxu1 %v9601_v46  ;;  %v5010_v46 = vld [vmem:[%s12106_s21 + $0x268] sm:$0xff] }
0x181c   : > { %6696 = vmatprep.subr.bf16.mxu1 %v9618_v48  ;;  %v9557_v48 = vcombine.low %v4986_v34, %v4994_v36  ;;  %v9574_v52 = vcombine.high %v5002_v41, %v5010_v46 }
0x181f   : > { %6697 = vmatpush1.bf16.msra.mxu1 %v9617_v54  ;;  %v5026_v54 = vld [vmem:[%s12106_s21 + $0x2e8] sm:$0xff] }
0x1820   : > { %6698 = vmatprep.subr.bf16.mxu1 %v9634_v57  ;;  %v9573_v57 = vcombine.low %v5002_v41, %v5010_v46  ;;  %v9638_v41 = vcombine.high %v5066_v32, %v5074_v13 }
0x1823   : > { %6699 = vmatpush1.bf16.msra.mxu1 %v9633_v35  ;;  %v9590_v35 = vcombine.high %v5018_v53, %v5026_v54 }
0x1824   : > { %6700 = vmatprep.subr.bf16.mxu1 %v9650_v5  ;;  %v5034_v5 = vld [vmem:[%s12106_s21 + $0x328] sm:$0xff] }
0x1827   : > { %6701 = vmatpush1.bf16.msra.mxu1 %v9649_v3  ;;  %v5228_v3 = vrot.slane %v12986_v0, %v12268_v51 }
0x1828   : > { %6702 = vmatprep.subr.bf16.mxu1 %v9666_v56  ;;  %v9589_v56 = vcombine.low %v5018_v53, %v5026_v54  ;;  %v5082_v53 = vld [vmem:[%s12106_s21 + $0x4a8] sm:$0xff] }
0x1829   : > { %v5090_v54 = vld [vmem:[%s12106_s21 + $0x4e8] sm:$0xff] }
0x182b   : > { %6703 = vmatpush1.bf16.msra.mxu1 %v9665_v8  ;;  %v9606_v8 = vcombine.high %v5034_v5, %v5042_v7 }
0x182c   : > { %6704 = vmatprep.subr.bf16.mxu1 %v9682_v55 }
0x182f   : > { %6705 = vmatpush1.bf16.msra.mxu1 %v9681_v12  ;;  %v5058_v12 = vld [vmem:[%s12106_s21 + $0x3e8] sm:$0xff] }
0x1830   : > { %6706 = vmatprep.subr.bf16.mxu1 %v9698_v14  ;;  %v9622_v60 = vcombine.high %v5050_v59, %v5058_v12 }
0x1833   : > { %6707 = vmatpush1.bf16.msra.mxu1 %v9697_v17 }
0x1834   : > { %6708 = vmatprep.subr.bf16.mxu1 %v9714_v58 }
0x1837   : > { %6709 = vmatpush1.bf16.msra.mxu1 %v9713_v21 }
0x1838   : > { %6710 = vmatprep.subr.bf16.mxu1 %v9730_v61  ;;  %v9605_v61 = vcombine.low %v5034_v5, %v5042_v7  ;;  %v9654_v5 = vcombine.high %v5082_v53, %v5090_v54  ;;  %v10672_v7 = vld [vmem:[%s12115_s23 + $0x110] ss:$8 sps:$4 sm:$0xff]  }
0x183b   : > { %6711 = vmatpush1.bf16.msra.mxu1 %v9729_v6 }
0x183c   : > { %6712 = vmatprep.subr.bf16.mxu1 %v9746_v2 }
0x183f   : > { %6713 = vmatpush1.bf16.msra.mxu1 %v9745_v23 }
0x1840   : > { %6768 = vmatprep.subr.bf16.mxu1 %v9510_v31  ;;  %v9621_v31 = vcombine.low %v5050_v59, %v5058_v12  ;;  %v10680_v59 = vld [vmem:[%s12115_s23 + $0x134] ss:$8 sps:$4 sm:$0xff]  }
0x1842   : > { %6715 = vmatmul.mubr.bf16.vlgmr.msra.gmra.mrb[56].mxu1 %v12798_v25 }
0x1843   : > { %6769 = vmatpush1.bf16.msra.mxu1 %v9509_v33  ;;  %6800 = vmatprep.mubr.bf16.mxu1 %v12802_v29 }
0x1844   : > { %6770 = vmatprep.subr.bf16.mxu1 %v9526_v26 }
0x1847   : > { %6771 = vmatpush1.bf16.msra.mxu1 %v9525_v38 }
0x1848   : > { %6772 = vmatprep.subr.bf16.mxu1 %v9542_v27 }
0x184b   : > { %6773 = vmatpush1.bf16.msra.mxu1 %v9541_v4 }
0x184c   : > { %6774 = vmatprep.subr.bf16.mxu1 %v9558_v40 }
0x184f   : > { %6775 = vmatpush1.bf16.msra.mxu1 %v9557_v48 }
0x1850   : > { %6776 = vmatprep.subr.bf16.mxu1 %v9574_v52  ;;  %v10669_v52 = vld [vmem:[%s12115_s23 + $0x100] ss:$8 sps:$4 sm:$0xff]  }
0x1853   : > { %6777 = vmatpush1.bf16.msra.mxu1 %v9573_v57  ;;  %v10674_v57 = vld [vmem:[%s12115_s23 + $0x114] ss:$8 sps:$4 sm:$0xff]  }
0x1854   : > { %6778 = vmatprep.subr.bf16.mxu1 %v9590_v35  ;;  %v9637_v35 = vcombine.low %v5066_v32, %v5074_v13 }
0x1855   : > { %v6587_v55 = vpop.f32.mrb[44].mxu1  ;;  %v6759_v11 = vpop.f32.mrb[40].mxu0 }
0x1856   : > { %v6588_v14 = vadd.f32 %v6587_v55, %v5196_v9  ;;  %v6760_v15 = vadd.f32 %v6759_v11, %v5228_v3  ;;  %v6589_v16 = vpop.f32.mrb[45].mxu1  ;;  %v6761_v17 = vpop.f32.mrb[41].mxu0  ;;  %v5114_v55 = vld [vmem:[%s12106_s21 + $0x5a8] sm:$0xff] }
0x1857   : > { %v6590_v58 = vadd.f32 %v6589_v16, %v5200_v10  ;;  %v6762_v44 = vadd.f32 %v6761_v17, %v5232_v45  ;;  %6779 = vmatpush1.bf16.msra.mxu1 %v9589_v56  ;;  %v6591_v18 = vpop.f32.mrb[46].mxu1  ;;  %v6763_v21 = vpop.f32.mrb[42].mxu0  ;;  %v10677_v56 = vld [vmem:[%s12115_s23 + $0x124] ss:$8 sps:$4 sm:$0xff]  }
0x1858   : > { %v6592_v19 = vadd.f32 %v6591_v18, %v5196_v9  ;;  %v6764_v22 = vadd.f32 %v6763_v21, %v5228_v3  ;;  %v6593_v6 = vpop.f32.mrb[47].mxu1  ;;  %v6765_v2 = vpop.f32.mrb[43].mxu0  ;;  %6780 = vmatprep.subr.bf16.mxu1 %v9606_v8  ;;  %v6897_v33 = vmax.f32 %v6588_v14, 0.0  ;;  %v6905_v26 = vmax.f32 %v6760_v15, 0.0  ;;  %v5098_v9 = vld [vmem:[%s12106_s21 + $0x528] sm:$0xff] }
0x1859   : > { %v6594_v39 = vadd.f32 %v6593_v6, %v5200_v10  ;;  %v6766_v23 = vadd.f32 %v6765_v2, %v5232_v45  ;;  %v6898_v38 = vmax.f32 %v6590_v58, 0.0  ;;  %v6906_v27 = vmax.f32 %v6762_v44, 0.0  ;;  %v5106_v3 = vld [vmem:[%s12106_s21 + $0x568] sm:$0xff]  ;;  %v10678_v15 = vld [vmem:[%s12115_s23 + $0x130] ss:$8 sps:$4 sm:$0xff]  }
0x185a   : > { %v6913_v47 = vmax.f32 %v6592_v19, 0.0  ;;  %v6921_v37 = vmax.f32 %v6764_v22, 0.0  ;;  %v9653_v10 = vcombine.low %v5082_v53, %v5090_v54  ;;  %v9670_v45 = vcombine.high %v5098_v9, %v5106_v3  ;;  %v10675_v8 = vld [vmem:[%s12115_s23 + $0x120] ss:$8 sps:$4 sm:$0xff]   ;;  %v10683_v58 = vld [vmem:[%s12115_s23 + $0x144] ss:$8 sps:$4 sm:$0xff]  }
0x185b   : > { %v6914_v34 = vmax.f32 %v6594_v39, 0.0  ;;  %v6922_v36 = vmax.f32 %v6766_v23, 0.0  ;;  %6781 = vmatpush1.bf16.msra.mxu1 %v9605_v61  ;;  %v5122_v11 = vld [vmem:[%s12106_s21 + $0x5e8] sm:$0xff]  ;;  %v9669_v12 = vcombine.low %v5098_v9, %v5106_v3  ;;  %v10686_v22 = vld [vmem:[%s12115_s23 + $0x154] ss:$8 sps:$4 sm:$0xff]  }
0x185c   : > { %v6929_v4 = vpack.c.bf16 %v6913_v47, %v6897_v33  ;;  %v13002_v40 = vpack.c.bf16 %v6921_v37, %v6905_v26  ;;  %6782 = vmatprep.subr.bf16.mxu1 %v9622_v60  ;;  %v9686_v14 = vcombine.high %v5114_v55, %v5122_v11  ;;  %v5130_v16 = vld [vmem:[%s12106_s21 + $0x628] sm:$0xff]  ;;  %v9685_v44 = vcombine.low %v5114_v55, %v5122_v11  ;;  %v10684_v60 = vld [vmem:[%s12115_s23 + $0x150] ss:$8 sps:$4 sm:$0xff]   ;;  %v10692_v37 = vld [vmem:[%s12115_s23 + $0x174] ss:$8 sps:$4 sm:$0xff]  }
0x185d   : > { %v6930_v46 = vpack.c.bf16 %v6914_v34, %v6898_v38  ;;  %v13004_v48 = vpack.c.bf16 %v6922_v36, %v6906_v27  ;;  %v5138_v17 = vld [vmem:[%s12106_s21 + $0x668] sm:$0xff]  ;;  %v10690_v34 = vld [vmem:[%s12115_s23 + $0x170] ss:$8 sps:$4 sm:$0xff]  }
0x185e   : > { %v9702_v18 = vcombine.high %v5130_v16, %v5138_v17  ;;  %v10681_v21 = vld [vmem:[%s12115_s23 + $0x140] ss:$8 sps:$4 sm:$0xff]   ;;  %v9701_v6 = vcombine.low %v5130_v16, %v5138_v17  ;;  %v4940_v36 = vld [vmem:[%s12106_s21 + $0x38] sm:$0xff] }
0x185f   : > { %6783 = vmatpush1.bf16.msra.mxu1 %v9621_v31  ;;  %8525 = vmatprep.mubr.bf16.mxu0 %v6930_v46  ;;  %v5146_v61 = vld [vmem:[%s12106_s21 + $0x6a8] sm:$0xff]  ;;  %v4956_v54 = vld [vmem:[%s12106_s21 + $0xb8] sm:$0xff] }
0x1860   : > { %8526 = vmatmul.mubr.bf16.vlgmr.msra.gmra.mrb[48].mxu0 %v6929_v4  ;;  %6784 = vmatprep.subr.bf16.mxu1 %v9638_v41  ;;  %v5154_v19 = vld [vmem:[%s12106_s21 + $0x6e8] sm:$0xff]  ;;  %v4948_v4 = vld [vmem:[%s12106_s21 + $0x78] sm:$0xff] }
0x1861   : > { %8537 = vmatpush1.bf16.msra.mxu0 %v10669_v52  ;;  %v9718_v2 = vcombine.high %v5146_v61, %v5154_v19  ;;  %v5162_v39 = vld [vmem:[%s12106_s21 + $0x728] sm:$0xff]  ;;  %v9717_v32 = vcombine.low %v5146_v61, %v5154_v19  ;;  %v9514_v52 = vcombine.high %v4940_v36, %v4948_v4  ;;  %v10696_v9 = vld [vmem:[%s12115_s23 + $0x190] ss:$8 sps:$4 sm:$0xff]  }
0x1862   : > { %8538 = vmatprep.subr.bf16.mxu0 %v10674_v57  ;;  %v5170_v23 = vld [vmem:[%s12106_s21 + $0x768] sm:$0xff]  ;;  %v4964_v57 = vld [vmem:[%s12106_s21 + $0xf8] sm:$0xff] }
0x1863   : > { %6785 = vmatpush1.bf16.msra.mxu1 %v9637_v35  ;;  %v10689_v31 = vld [vmem:[%s12115_s23 + $0x164] ss:$8 sps:$4 sm:$0xff]   ;;  %v9734_v13 = vcombine.high %v5162_v39, %v5170_v23  ;;  %v10687_v33 = vld [vmem:[%s12115_s23 + $0x160] ss:$8 sps:$4 sm:$0xff]   ;;  %v9733_v38 = vcombine.low %v5162_v39, %v5170_v23  ;;  %v10698_v35 = vld [vmem:[%s12115_s23 + $0x194] ss:$8 sps:$4 sm:$0xff]  }
0x1864   : > { %6786 = vmatprep.subr.bf16.mxu1 %v9654_v5  ;;  %v5178_v26 = vld [vmem:[%s12106_s21 + $0x7a8] sm:$0xff]  ;;  %v9513_v5 = vcombine.low %v4940_v36, %v4948_v4  ;;  %v4972_v3 = vld [vmem:[%s12106_s21 + $0x138] sm:$0xff] }
0x1865   : > { %8539 = vmatpush1.bf16.msra.mxu0 %v10672_v7  ;;  %v5186_v47 = vld [vmem:[%s12106_s21 + $0x7e8] sm:$0xff]  ;;  %v9530_v7 = vcombine.high %v4956_v54, %v4964_v57  ;;  %v4988_v11 = vld [vmem:[%s12106_s21 + $0x1b8] sm:$0xff] }
0x1866   : > { %8540 = vmatprep.subr.bf16.mxu0 %v10677_v56  ;;  %v9750_v27 = vcombine.high %v5178_v26, %v5186_v47  ;;  %v10695_v41 = vld [vmem:[%s12115_s23 + $0x184] ss:$8 sps:$4 sm:$0xff]   ;;  %v9749_v46 = vcombine.low %v5178_v26, %v5186_v47  ;;  %v10693_v53 = vld [vmem:[%s12115_s23 + $0x180] ss:$8 sps:$4 sm:$0xff]   ;;  %v4980_v56 = vld [vmem:[%s12106_s21 + $0x178] sm:$0xff]  ;;  %v5248_v26 = vrot.slane %v12986_v0, %v12310_v63 }
0x1867   : > { %6787 = vmatpush1.bf16.msra.mxu1 %v9653_v10  ;;  %v10701_v10 = vld [vmem:[%s12115_s23 + $0x1a4] ss:$8 sps:$4 sm:$0xff]   ;;  %v10699_v55 = vld [vmem:[%s12115_s23 + $0x1a0] ss:$8 sps:$4 sm:$0xff]   ;;  %v5004_v16 = vld [vmem:[%s12106_s21 + $0x238] sm:$0xff] }
0x1868   : > { %6788 = vmatprep.subr.bf16.mxu1 %v9670_v45  ;;  %v9529_v45 = vcombine.low %v4956_v54, %v4964_v57  ;;  %v5012_v17 = vld [vmem:[%s12106_s21 + $0x278] sm:$0xff] }
0x1869   : > { %8541 = vmatpush1.bf16.msra.mxu0 %v10675_v8  ;;  %v9546_v8 = vcombine.high %v4972_v3, %v4980_v56  ;;  %v5020_v61 = vld [vmem:[%s12106_s21 + $0x2b8] sm:$0xff] }
0x186a   : > { %8542 = vmatprep.subr.bf16.mxu0 %v10680_v59  ;;  %v4996_v59 = vld [vmem:[%s12106_s21 + $0x1f8] sm:$0xff] }
0x186b   : > { %6789 = vmatpush1.bf16.msra.mxu1 %v9669_v12  ;;  %v10704_v12 = vld [vmem:[%s12115_s23 + $0x1b4] ss:$8 sps:$4 sm:$0xff]  }
0x186c   : > { %6790 = vmatprep.subr.bf16.mxu1 %v9686_v14  ;;  %v9545_v14 = vcombine.low %v4972_v3, %v4980_v56  ;;  %v5028_v19 = vld [vmem:[%s12106_s21 + $0x2f8] sm:$0xff] }
0x186d   : > { %8543 = vmatpush1.bf16.msra.mxu0 %v10678_v15  ;;  %v9562_v15 = vcombine.high %v4988_v11, %v4996_v59  ;;  %v5036_v39 = vld [vmem:[%s12106_s21 + $0x338] sm:$0xff]  ;;  %v9593_v47 = vcombine.low %v5020_v61, %v5028_v19 }
0x186e   : > { %8544 = vmatprep.subr.bf16.mxu0 %v10683_v58  ;;  %v10707_v58 = vld [vmem:[%s12115_s23 + $0x1c4] ss:$8 sps:$4 sm:$0xff]   ;;  %v5044_v23 = vld [vmem:[%s12106_s21 + $0x378] sm:$0xff] }
0x186f   : > { %6791 = vmatpush1.bf16.msra.mxu1 %v9685_v44  ;;  %v9561_v44 = vcombine.low %v4988_v11, %v4996_v59  ;;  %v5052_v36 = vld [vmem:[%s12106_s21 + $0x3b8] sm:$0xff] }
0x1870   : > { %6792 = vmatprep.subr.bf16.mxu1 %v9702_v18  ;;  %v9578_v18 = vcombine.high %v5004_v16, %v5012_v17  ;;  %v5060_v4 = vld [vmem:[%s12106_s21 + $0x3f8] sm:$0xff] }
0x1871   : > { %8545 = vmatpush1.bf16.msra.mxu0 %v10681_v21  ;;  %v10705_v21 = vld [vmem:[%s12115_s23 + $0x1c0] ss:$8 sps:$4 sm:$0xff]   ;;  %v10716_v54 = vld [vmem:[%s12115_s23 + $0x1f4] ss:$8 sps:$4 sm:$0xff]   ;;  %v10714_v11 = vld [vmem:[%s12115_s23 + $0x1f0] ss:$8 sps:$4 sm:$0xff]   ;;  %v9625_v59 = vcombine.low %v5052_v36, %v5060_v4 }
0x1872   : > { %8546 = vmatprep.subr.bf16.mxu0 %v10686_v22  ;;  %v10710_v22 = vld [vmem:[%s12115_s23 + $0x1d4] ss:$8 sps:$4 sm:$0xff]  }
0x1873   : > { %6793 = vmatpush1.bf16.msra.mxu1 %v9701_v6  ;;  %v9577_v6 = vcombine.low %v5004_v16, %v5012_v17 }
0x1874   : > { %6794 = vmatprep.subr.bf16.mxu1 %v9718_v2  ;;  %v9594_v2 = vcombine.high %v5020_v61, %v5028_v19 }
0x1875   : > { %8547 = vmatpush1.bf16.msra.mxu0 %v10684_v60  ;;  %v10708_v60 = vld [vmem:[%s12115_s23 + $0x1d0] ss:$8 sps:$4 sm:$0xff]  }
0x1876   : > { %8548 = vmatprep.subr.bf16.mxu0 %v10689_v31  ;;  %v5204_v31 = vrot.slane %v12983_v24, %v12262_v49 }
0x1877   : > { %6795 = vmatpush1.bf16.msra.mxu1 %v9717_v32  ;;  %v5244_v32 = vrot.slane %v12986_v0, %v12307_v62 }
0x1878   : > { %6796 = vmatprep.subr.bf16.mxu1 %v9734_v13  ;;  %v10713_v13 = vld [vmem:[%s12115_s23 + $0x1e4] ss:$8 sps:$4 sm:$0xff]  }
0x1879   : > { %8549 = vmatpush1.bf16.msra.mxu0 %v10687_v33  ;;  %v5208_v33 = vrot.slane %v12983_v24, %v12434_v28 }
0x187a   : > { %8550 = vmatprep.subr.bf16.mxu0 %v10692_v37  ;;  %v9610_v37 = vcombine.high %v5036_v39, %v5044_v23 }
0x187b   : > { %6797 = vmatpush1.bf16.msra.mxu1 %v9733_v38 }
0x187c   : > { %6798 = vmatprep.subr.bf16.mxu1 %v9750_v27 }
0x187d   : > { %8551 = vmatpush1.bf16.msra.mxu0 %v10690_v34  ;;  %v10711_v34 = vld [vmem:[%s12115_s23 + $0x1e0] ss:$8 sps:$4 sm:$0xff]  }
0x187e   : > { %8552 = vmatprep.subr.bf16.mxu0 %v10695_v41 }
0x187f   : > { %6799 = vmatpush1.bf16.msra.mxu1 %v9749_v46 }
0x1880   : > { %6854 = vmatprep.subr.bf16.mxu1 %v9514_v52 }
0x1881   : > { %8553 = vmatpush1.bf16.msra.mxu0 %v10693_v53 }
0x1882   : > { %6801 = vmatmul.mubr.bf16.vlgmr.msra.gmra.mrb[60].mxu1 %v12798_v25  ;;  %8554 = vmatprep.subr.bf16.mxu0 %v10698_v35 }
0x1883   : > { %6855 = vmatpush1.bf16.msra.mxu1 %v9513_v5  ;;  %6886 = vmatprep.mubr.bf16.mxu1 %v12802_v29  ;;  %v10702_v29 = vld [vmem:[%s12115_s23 + $0x1b0] ss:$8 sps:$4 sm:$0xff]  }
0x1884   : > { %6856 = vmatprep.subr.bf16.mxu1 %v9530_v7  ;;  %v9609_v7 = vcombine.low %v5036_v39, %v5044_v23  ;;  %v10717_v39 = vld [vmem:[%s12115_s23 + $0x200] ss:$8 sps:$4 sm:$0xff]   ;;  %v5084_v23 = vld [vmem:[%s12106_s21 + $0x4b8] sm:$0xff] }
0x1885   : > { %8555 = vmatpush1.bf16.msra.mxu0 %v10696_v9 }
0x1886   : > { %8556 = vmatprep.subr.bf16.mxu0 %v10701_v10 }
0x1887   : > { %6857 = vmatpush1.bf16.msra.mxu1 %v9529_v45  ;;  %v9626_v45 = vcombine.high %v5052_v36, %v5060_v4  ;;  %v10723_v36 = vld [vmem:[%s12115_s23 + $0x220] ss:$8 sps:$4 sm:$0xff]   ;;  %v5116_v4 = vld [vmem:[%s12106_s21 + $0x5b8] sm:$0xff] }
0x1888   : > { %6858 = vmatprep.subr.bf16.mxu1 %v9546_v8 }
0x1889   : > { %8557 = vmatpush1.bf16.msra.mxu0 %v10699_v55 }
0x188a   : > { %8558 = vmatprep.subr.bf16.mxu0 %v10704_v12  ;;  %v5068_v12 = vld [vmem:[%s12106_s21 + $0x438] sm:$0xff] }
0x188b   : > { %6859 = vmatpush1.bf16.msra.mxu1 %v9545_v14  ;;  %v5076_v14 = vld [vmem:[%s12106_s21 + $0x478] sm:$0xff] }
0x188c   : > { %6860 = vmatprep.subr.bf16.mxu1 %v9562_v15 }
0x188d   : > { %8559 = vmatpush1.bf16.msra.mxu0 %v10702_v29 }
0x188e   : > { %8560 = vmatprep.subr.bf16.mxu0 %v10707_v58  ;;  %v10719_v58 = vld [vmem:[%s12115_s23 + $0x204] ss:$8 sps:$4 sm:$0xff]  }
0x188f   : > { %6861 = vmatpush1.bf16.msra.mxu1 %v9561_v44 }
0x1890   : > { %6862 = vmatprep.subr.bf16.mxu1 %v9578_v18 }
0x1891   : > { %8561 = vmatpush1.bf16.msra.mxu0 %v10705_v21 }
0x1892   : > { %8562 = vmatprep.subr.bf16.mxu0 %v10710_v22 }
0x1893   : > { %6863 = vmatpush1.bf16.msra.mxu1 %v9577_v6  ;;  %v9642_v6 = vcombine.high %v5068_v12, %v5076_v14 }
0x1894   : > { %6864 = vmatprep.subr.bf16.mxu1 %v9594_v2 }
0x1895   : > { %v6630_v38 = vpop.f32.mrb[48].mxu1  ;;  %v6845_v27 = vpop.f32.mrb[44].mxu0  ;;  %8563 = vmatpush1.bf16.msra.mxu0 %v10708_v60 }
0x1896   : > { %v6631_v41 = vadd.f32 %v6630_v38, %v5204_v31  ;;  %v6846_v46 = vadd.f32 %v6845_v27, %v5244_v32  ;;  %v6632_v52 = vpop.f32.mrb[49].mxu1  ;;  %v6847_v53 = vpop.f32.mrb[45].mxu0  ;;  %8564 = vmatprep.subr.bf16.mxu0 %v10713_v13  ;;  %v9641_v13 = vcombine.low %v5068_v12, %v5076_v14  ;;  %v10725_v38 = vld [vmem:[%s12115_s23 + $0x224] ss:$8 sps:$4 sm:$0xff]  }
0x1897   : > { %v6633_v57 = vadd.f32 %v6632_v52, %v5208_v33  ;;  %v6848_v35 = vadd.f32 %v6847_v53, %v5248_v26  ;;  %v6634_v0 = vpop.f32.mrb[50].mxu1  ;;  %v6849_v5 = vpop.f32.mrb[46].mxu0  ;;  %6865 = vmatpush1.bf16.msra.mxu1 %v9593_v47  ;;  %v5100_v47 = vld [vmem:[%s12106_s21 + $0x538] sm:$0xff]  ;;  %v10737_v12 = vld [vmem:[%s12115_s23 + $0x264] ss:$8 sps:$4 sm:$0xff]  }
0x1898   : > { %v6635_v9 = vadd.f32 %v6634_v0, %v5204_v31  ;;  %v6850_v3 = vadd.f32 %v6849_v5, %v5244_v32  ;;  %v6636_v56 = vpop.f32.mrb[51].mxu1  ;;  %v6851_v10 = vpop.f32.mrb[47].mxu0  ;;  %6866 = vmatprep.subr.bf16.mxu1 %v9610_v37  ;;  %v6899_v15 = vmax.f32 %v6631_v41, 0.0  ;;  %v6909_v29 = vmax.f32 %v6846_v46, 0.0  ;;  %v5092_v31 = vld [vmem:[%s12106_s21 + $0x4f8] sm:$0xff] }
0x1899   : > { %v6637_v8 = vadd.f32 %v6636_v56, %v5208_v33  ;;  %v6852_v55 = vadd.f32 %v6851_v10, %v5248_v26  ;;  %8565 = vmatpush1.bf16.msra.mxu0 %v10711_v34  ;;  %v6900_v44 = vmax.f32 %v6633_v57, 0.0  ;;  %v6910_v18 = vmax.f32 %v6848_v35, 0.0  ;;  %v10722_v32 = vld [vmem:[%s12115_s23 + $0x214] ss:$8 sps:$4 sm:$0xff]   ;;  %v10720_v26 = vld [vmem:[%s12115_s23 + $0x210] ss:$8 sps:$4 sm:$0xff]  }
0x189a   : > { %v6915_v16 = vmax.f32 %v6635_v9, 0.0  ;;  %v6925_v17 = vmax.f32 %v6850_v3, 0.0  ;;  %8566 = vmatprep.subr.bf16.mxu0 %v10716_v54  ;;  %v9658_v33 = vcombine.high %v5084_v23, %v5092_v31  ;;  %v5108_v37 = vld [vmem:[%s12106_s21 + $0x578] sm:$0xff]  ;;  %v9657_v27 = vcombine.low %v5084_v23, %v5092_v31  ;;  %v10731_v0 = vld [vmem:[%s12115_s23 + $0x244] ss:$8 sps:$4 sm:$0xff]  }
0x189b   : > { %v6916_v21 = vmax.f32 %v6637_v8, 0.0  ;;  %v6926_v61 = vmax.f32 %v6852_v55, 0.0  ;;  %6867 = vmatpush1.bf16.msra.mxu1 %v9609_v7  ;;  %v9674_v34 = vcombine.high %v5100_v47, %v5108_v37  ;;  %v5124_v41 = vld [vmem:[%s12106_s21 + $0x5f8] sm:$0xff]  ;;  %v9673_v52 = vcombine.low %v5100_v47, %v5108_v37  ;;  %v10729_v9 = vld [vmem:[%s12115_s23 + $0x240] ss:$8 sps:$4 sm:$0xff]  }
0x189c   : > { %v6931_v19 = vpack.c.bf16 %v6915_v16, %v6899_v15  ;;  %v13080_v22 = vpack.c.bf16 %v6925_v17, %v6909_v29  ;;  %6868 = vmatprep.subr.bf16.mxu1 %v9626_v45  ;;  %v10728_v46 = vld [vmem:[%s12115_s23 + $0x234] ss:$8 sps:$4 sm:$0xff]   ;;  %v9690_v53 = vcombine.high %v5116_v4, %v5124_v41  ;;  %v10726_v54 = vld [vmem:[%s12115_s23 + $0x230] ss:$8 sps:$4 sm:$0xff]   ;;  %v9689_v5 = vcombine.low %v5116_v4, %v5124_v41  ;;  %v10735_v29 = vld [vmem:[%s12115_s23 + $0x260] ss:$8 sps:$4 sm:$0xff]  }
0x189d   : > { %v6932_v2 = vpack.c.bf16 %v6916_v21, %v6900_v44  ;;  %v13082_v60 = vpack.c.bf16 %v6926_v61, %v6910_v18  ;;  %8567 = vmatpush1.bf16.msra.mxu0 %v10714_v11  ;;  %v5132_v57 = vld [vmem:[%s12106_s21 + $0x638] sm:$0xff]  ;;  %v10743_v61 = vld [vmem:[%s12115_s23 + $0x284] ss:$8 sps:$4 sm:$0xff]   ;;  %v10747_v31 = vld [vmem:[%s12115_s23 + $0x2a0] ss:$8 sps:$4 sm:$0xff]   ;;  %v5212_v37 = vrot.slane %v12983_v24, %v12307_v62 }
0x189e   : > { %8579 = vmatprep.subr.bf16.mxu0 %v10719_v58  ;;  %v5140_v35 = vld [vmem:[%s12106_s21 + $0x678] sm:$0xff]  ;;  %v10749_v23 = vld [vmem:[%s12115_s23 + $0x2a4] ss:$8 sps:$4 sm:$0xff]  }
0x189f   : > { %6869 = vmatpush1.bf16.msra.mxu1 %v9625_v59  ;;  %8568 = vmatprep.mubr.bf16.mxu0 %v6932_v2  ;;  %v9706_v7 = vcombine.high %v5132_v57, %v5140_v35  ;;  %v5148_v3 = vld [vmem:[%s12106_s21 + $0x6b8] sm:$0xff]  ;;  %v9705_v45 = vcombine.low %v5132_v57, %v5140_v35 }
0x18a0   : > { %8569 = vmatmul.mubr.bf16.vlgmr.msra.gmra.mrb[48].mxu0 %v6931_v19  ;;  %6870 = vmatprep.subr.bf16.mxu1 %v9642_v6  ;;  %v5156_v56 = vld [vmem:[%s12106_s21 + $0x6f8] sm:$0xff]  ;;  %v10741_v6 = vld [vmem:[%s12115_s23 + $0x280] ss:$8 sps:$4 sm:$0xff]  }
0x18a1   : > { %8580 = vmatpush1.bf16.msra.mxu0 %v10717_v39  ;;  %v10734_v10 = vld [vmem:[%s12115_s23 + $0x254] ss:$8 sps:$4 sm:$0xff]   ;;  %v9722_v8 = vcombine.high %v5148_v3, %v5156_v56  ;;  %v10732_v55 = vld [vmem:[%s12115_s23 + $0x250] ss:$8 sps:$4 sm:$0xff]   ;;  %v9721_v14 = vcombine.low %v5148_v3, %v5156_v56 }
0x18a2   : > { %8581 = vmatprep.subr.bf16.mxu0 %v10722_v32  ;;  %v5164_v11 = vld [vmem:[%s12106_s21 + $0x738] sm:$0xff] }
0x18a3   : > { %6871 = vmatpush1.bf16.msra.mxu1 %v9641_v13  ;;  %v5172_v59 = vld [vmem:[%s12106_s21 + $0x778] sm:$0xff] }
0x18a4   : > { %6872 = vmatprep.subr.bf16.mxu1 %v9658_v33  ;;  %v9738_v15 = vcombine.high %v5164_v11, %v5172_v59  ;;  %v5180_v16 = vld [vmem:[%s12106_s21 + $0x7b8] sm:$0xff]  ;;  %v9737_v44 = vcombine.low %v5164_v11, %v5172_v59  ;;  %v10755_v33 = vld [vmem:[%s12115_s23 + $0x2c4] ss:$8 sps:$4 sm:$0xff]   ;;  %v10771_v11 = vld [vmem:[%s12115_s23 + $0x320] ss:$8 sps:$4 sm:$0xff]  }
0x18a5   : > { %8582 = vmatpush1.bf16.msra.mxu0 %v10720_v26  ;;  %v5188_v17 = vld [vmem:[%s12106_s21 + $0x7f8] sm:$0xff]  ;;  %v10753_v26 = vld [vmem:[%s12115_s23 + $0x2c0] ss:$8 sps:$4 sm:$0xff]  }
0x18a6   : > { %8583 = vmatprep.subr.bf16.mxu0 %v10725_v38  ;;  %v10740_v58 = vld [vmem:[%s12115_s23 + $0x274] ss:$8 sps:$4 sm:$0xff]   ;;  %v9754_v18 = vcombine.high %v5180_v16, %v5188_v17  ;;  %v10738_v21 = vld [vmem:[%s12115_s23 + $0x270] ss:$8 sps:$4 sm:$0xff]   ;;  %v9753_v19 = vcombine.low %v5180_v16, %v5188_v17  ;;  %v10761_v38 = vld [vmem:[%s12115_s23 + $0x2e4] ss:$8 sps:$4 sm:$0xff]  }
0x18a7   : > { %6873 = vmatpush1.bf16.msra.mxu1 %v9657_v27  ;;  %v10746_v2 = vld [vmem:[%s12115_s23 + $0x294] ss:$8 sps:$4 sm:$0xff]   ;;  %v10744_v39 = vld [vmem:[%s12115_s23 + $0x290] ss:$8 sps:$4 sm:$0xff]   ;;  %v5216_v27 = vrot.slane %v12983_v24, %v12310_v63  ;;  %v10785_v17 = vld [vmem:[%s12115_s23 + $0x364] ss:$8 sps:$4 sm:$0xff]  }
0x18a8   : > { %6874 = vmatprep.subr.bf16.mxu1 %v9674_v34  ;;  %v10752_v32 = vld [vmem:[%s12115_s23 + $0x2b4] ss:$8 sps:$4 sm:$0xff]   ;;  %v10750_v13 = vld [vmem:[%s12115_s23 + $0x2b0] ss:$8 sps:$4 sm:$0xff]  }
0x18a9   : > { %8584 = vmatpush1.bf16.msra.mxu0 %v10723_v36  ;;  %v10758_v47 = vld [vmem:[%s12115_s23 + $0x2d4] ss:$8 sps:$4 sm:$0xff]   ;;  %v10759_v36 = vld [vmem:[%s12115_s23 + $0x2e0] ss:$8 sps:$4 sm:$0xff]   ;;  %v10762_v35 = vld [vmem:[%s12115_s23 + $0x2f0] ss:$8 sps:$4 sm:$0xff]  }
0x18aa   : > { %8585 = vmatprep.subr.bf16.mxu0 %v10728_v46  ;;  %v10764_v46 = vld [vmem:[%s12115_s23 + $0x2f4] ss:$8 sps:$4 sm:$0xff]   ;;  %v10780_v16 = vld [vmem:[%s12115_s23 + $0x350] ss:$8 sps:$4 sm:$0xff]  }
0x18ab   : > { %6875 = vmatpush1.bf16.msra.mxu1 %v9673_v52  ;;  %v10776_v59 = vld [vmem:[%s12115_s23 + $0x334] ss:$8 sps:$4 sm:$0xff]  }
0x18ac   : > { %6876 = vmatprep.subr.bf16.mxu1 %v9690_v53 }
0x18ad   : > { %8586 = vmatpush1.bf16.msra.mxu0 %v10726_v54 }
0x18ae   : > { %8587 = vmatprep.subr.bf16.mxu0 %v10731_v0 }
0x18af   : > { %6877 = vmatpush1.bf16.msra.mxu1 %v9689_v5  ;;  %v10767_v5 = vld [vmem:[%s12115_s23 + $0x304] ss:$8 sps:$4 sm:$0xff]  }
0x18b0   : > { %6878 = vmatprep.subr.bf16.mxu1 %v9706_v7 }
0x18b1   : > { %8588 = vmatpush1.bf16.msra.mxu0 %v10729_v9 }
0x18b2   : > { %8589 = vmatprep.subr.bf16.mxu0 %v10734_v10  ;;  %v10765_v10 = vld [vmem:[%s12115_s23 + $0x300] ss:$8 sps:$4 sm:$0xff]  }
0x18b3   : > { %6879 = vmatpush1.bf16.msra.mxu1 %v9705_v45  ;;  %v10770_v45 = vld [vmem:[%s12115_s23 + $0x314] ss:$8 sps:$4 sm:$0xff]  }
0x18b4   : > { %6880 = vmatprep.subr.bf16.mxu1 %v9722_v8  ;;  %v10768_v8 = vld [vmem:[%s12115_s23 + $0x310] ss:$8 sps:$4 sm:$0xff]  }
0x18b5   : > { %8590 = vmatpush1.bf16.msra.mxu0 %v10732_v55  ;;  %v10773_v55 = vld [vmem:[%s12115_s23 + $0x324] ss:$8 sps:$4 sm:$0xff]  }
0x18b6   : > { %8591 = vmatprep.subr.bf16.mxu0 %v10737_v12  ;;  %v10774_v12 = vld [vmem:[%s12115_s23 + $0x330] ss:$8 sps:$4 sm:$0xff]  }
0x18b7   : > { %6881 = vmatpush1.bf16.msra.mxu1 %v9721_v14  ;;  %v10779_v14 = vld [vmem:[%s12115_s23 + $0x344] ss:$8 sps:$4 sm:$0xff]  }
0x18b8   : > { %6882 = vmatprep.subr.bf16.mxu1 %v9738_v15  ;;  %v10777_v15 = vld [vmem:[%s12115_s23 + $0x340] ss:$8 sps:$4 sm:$0xff]  }
0x18b9   : > { %8592 = vmatpush1.bf16.msra.mxu0 %v10735_v29  ;;  %v10782_v29 = vld [vmem:[%s12115_s23 + $0x354] ss:$8 sps:$4 sm:$0xff]  }
0x18ba   : > { %8593 = vmatprep.subr.bf16.mxu0 %v10740_v58  ;;  %v10783_v58 = vld [vmem:[%s12115_s23 + $0x360] ss:$8 sps:$4 sm:$0xff]  }
0x18bb   : > { %6883 = vmatpush1.bf16.msra.mxu1 %v9737_v44  ;;  %v10788_v44 = vld [vmem:[%s12115_s23 + $0x374] ss:$8 sps:$4 sm:$0xff]  }
0x18bc   : > { %6884 = vmatprep.subr.bf16.mxu1 %v9754_v18  ;;  %v10786_v18 = vld [vmem:[%s12115_s23 + $0x370] ss:$8 sps:$4 sm:$0xff]  }
0x18bd   : > { %8594 = vmatpush1.bf16.msra.mxu0 %v10738_v21  ;;  %v10791_v21 = vld [vmem:[%s12115_s23 + $0x384] ss:$8 sps:$4 sm:$0xff]  }
0x18be   : > { %8595 = vmatprep.subr.bf16.mxu0 %v10743_v61  ;;  %v10789_v61 = vld [vmem:[%s12115_s23 + $0x380] ss:$8 sps:$4 sm:$0xff]  }
0x18bf   : > { %6885 = vmatpush1.bf16.msra.mxu1 %v9753_v19  ;;  %v10794_v19 = vld [vmem:[%s12115_s23 + $0x394] ss:$8 sps:$4 sm:$0xff]  }
0x18c1   : > { %8596 = vmatpush1.bf16.msra.mxu0 %v10741_v6  ;;  %v10792_v6 = vld [vmem:[%s12115_s23 + $0x390] ss:$8 sps:$4 sm:$0xff]  }
0x18c2   : > { %6887 = vmatmul.mubr.bf16.vlgmr.msra.gmra.mrb[64].mxu1 %v12798_v25  ;;  %8597 = vmatprep.subr.bf16.mxu0 %v10746_v2  ;;  %v10756_v25 = vld [vmem:[%s12115_s23 + $0x2d0] ss:$8 sps:$4 sm:$0xff]   ;;  %v10797_v2 = vld [vmem:[%s12115_s23 + $0x3a4] ss:$8 sps:$4 sm:$0xff]  }
0x18c5   : > { %8598 = vmatpush1.bf16.msra.mxu0 %v10744_v39  ;;  %v10795_v39 = vld [vmem:[%s12115_s23 + $0x3a0] ss:$8 sps:$4 sm:$0xff]  }
0x18c6   : > { %8599 = vmatprep.subr.bf16.mxu0 %v10749_v23  ;;  %v10800_v23 = vld [vmem:[%s12115_s23 + $0x3b4] ss:$8 sps:$4 sm:$0xff]  }
0x18c9   : > { %8600 = vmatpush1.bf16.msra.mxu0 %v10747_v31  ;;  %v10798_v31 = vld [vmem:[%s12115_s23 + $0x3b0] ss:$8 sps:$4 sm:$0xff]  }
0x18ca   : > { %8601 = vmatprep.subr.bf16.mxu0 %v10752_v32  ;;  %v10803_v32 = vld [vmem:[%s12115_s23 + $0x3c4] ss:$8 sps:$4 sm:$0xff]  }
0x18cd   : > { %8602 = vmatpush1.bf16.msra.mxu0 %v10750_v13  ;;  %v10801_v13 = vld [vmem:[%s12115_s23 + $0x3c0] ss:$8 sps:$4 sm:$0xff]  }
0x18ce   : > { %8603 = vmatprep.subr.bf16.mxu0 %v10755_v33  ;;  %v10806_v33 = vld [vmem:[%s12115_s23 + $0x3d4] ss:$8 sps:$4 sm:$0xff]  }
0x18d1   : > { %8604 = vmatpush1.bf16.msra.mxu0 %v10753_v26  ;;  %v5219_v26 = vsub.s32 6, %v12259_v43 }
0x18d2   : > { %8605 = vmatprep.subr.bf16.mxu0 %v10758_v47  ;;  %v5223_v47 = vsub.s32 7, %v12259_v43 }
0x18d5   : > { %v6673_v34 = vpop.f32.mrb[52].mxu1  ;;  %8606 = vmatpush1.bf16.msra.mxu0 %v10756_v25  ;;  %v10804_v25 = vld [vmem:[%s12115_s23 + $0x3d0] ss:$8 sps:$4 sm:$0xff]  }
0x18d6   : > { %v6674_v4 = vadd.f32 %v6673_v34, %v5212_v37  ;;  %v6675_v41 = vpop.f32.mrb[53].mxu1  ;;  %8607 = vmatprep.subr.bf16.mxu0 %v10761_v38  ;;  %v10809_v38 = vld [vmem:[%s12115_s23 + $0x3e4] ss:$8 sps:$4 sm:$0xff]  }
0x18d7   : > { %v6676_v52 = vadd.f32 %v6675_v41, %v5216_v27  ;;  %v6677_v53 = vpop.f32.mrb[54].mxu1 }
0x18d8   : > { %v6678_v54 = vadd.f32 %v6677_v53, %v5212_v37  ;;  %v6679_v57 = vpop.f32.mrb[55].mxu1  ;;  %v6901_v0 = vmax.f32 %v6674_v4, 0.0  ;;  %v5220_v37 = vrot.slane %v12983_v24, %v5219_v26 }
0x18d9   : > { %v6680_v62 = vadd.f32 %v6679_v57, %v5216_v27  ;;  %8608 = vmatpush1.bf16.msra.mxu0 %v10759_v36  ;;  %v6902_v7 = vmax.f32 %v6676_v52, 0.0  ;;  %v5224_v27 = vrot.slane %v12983_v24, %v5223_v47  ;;  %v10807_v36 = vld [vmem:[%s12115_s23 + $0x3e0] ss:$8 sps:$4 sm:$0xff]  }
0x18da   : > { %v6917_v63 = vmax.f32 %v6678_v54, 0.0  ;;  %8609 = vmatprep.subr.bf16.mxu0 %v10764_v46  ;;  %v10812_v46 = vld [vmem:[%s12115_s23 + $0x3f4] ss:$8 sps:$4 sm:$0xff]  }
0x18db   : > { %v6918_v9 = vmax.f32 %v6680_v62, 0.0 }
0x18dc   : > { %v6933_v3 = vpack.c.bf16 %v6917_v63, %v6901_v0  ;;  %v10815_v63 = vld [vmem:[%s12115_s23 + $0x404] ss:$8 sps:$4 sm:$0xff]  }
0x18dd   : > { %v6934_v56 = vpack.c.bf16 %v6918_v9, %v6902_v7  ;;  %8610 = vmatpush1.bf16.msra.mxu0 %v10762_v35  ;;  %v10810_v35 = vld [vmem:[%s12115_s23 + $0x3f0] ss:$8 sps:$4 sm:$0xff]  }
0x18de   : > { %8622 = vmatprep.subr.bf16.mxu0 %v10767_v5 }
0x18df   : > { %8611 = vmatprep.mubr.bf16.mxu0 %v6934_v56  ;;  %v10813_v56 = vld [vmem:[%s12115_s23 + $0x400] ss:$8 sps:$4 sm:$0xff]  }
0x18e0   : > { %8612 = vmatmul.mubr.bf16.vlgmr.msra.gmra.mrb[48].mxu0 %v6933_v3 }
0x18e1   : > { %8623 = vmatpush1.bf16.msra.mxu0 %v10765_v10  ;;  %v10818_v10 = vld [vmem:[%s12115_s23 + $0x414] ss:$8 sps:$4 sm:$0xff]  }
0x18e2   : > { %8624 = vmatprep.subr.bf16.mxu0 %v10770_v45  ;;  %v10816_v45 = vld [vmem:[%s12115_s23 + $0x410] ss:$8 sps:$4 sm:$0xff]  }
0x18e5   : > { %8625 = vmatpush1.bf16.msra.mxu0 %v10768_v8  ;;  %v10821_v8 = vld [vmem:[%s12115_s23 + $0x424] ss:$8 sps:$4 sm:$0xff]  }
0x18e6   : > { %8626 = vmatprep.subr.bf16.mxu0 %v10773_v55  ;;  %v10819_v55 = vld [vmem:[%s12115_s23 + $0x420] ss:$8 sps:$4 sm:$0xff]  }
0x18e9   : > { %8627 = vmatpush1.bf16.msra.mxu0 %v10771_v11  ;;  %v10824_v11 = vld [vmem:[%s12115_s23 + $0x434] ss:$8 sps:$4 sm:$0xff]  }
0x18ea   : > { %8628 = vmatprep.subr.bf16.mxu0 %v10776_v59  ;;  %v10822_v59 = vld [vmem:[%s12115_s23 + $0x430] ss:$8 sps:$4 sm:$0xff]  }
0x18ed   : > { %8629 = vmatpush1.bf16.msra.mxu0 %v10774_v12  ;;  %v10827_v12 = vld [vmem:[%s12115_s23 + $0x444] ss:$8 sps:$4 sm:$0xff]  }
0x18ee   : > { %8630 = vmatprep.subr.bf16.mxu0 %v10779_v14  ;;  %v10825_v14 = vld [vmem:[%s12115_s23 + $0x440] ss:$8 sps:$4 sm:$0xff]  }
0x18f1   : > { %8631 = vmatpush1.bf16.msra.mxu0 %v10777_v15  ;;  %v10828_v15 = vld [vmem:[%s12115_s23 + $0x450] ss:$8 sps:$4 sm:$0xff]  }
0x18f2   : > { %8632 = vmatprep.subr.bf16.mxu0 %v10782_v29  ;;  %v10833_v29 = vld [vmem:[%s12115_s23 + $0x464] ss:$8 sps:$4 sm:$0xff]  }
0x18f5   : > { %8633 = vmatpush1.bf16.msra.mxu0 %v10780_v16  ;;  %v10831_v16 = vld [vmem:[%s12115_s23 + $0x460] ss:$8 sps:$4 sm:$0xff]  }
0x18f6   : > { %8634 = vmatprep.subr.bf16.mxu0 %v10785_v17  ;;  %v10836_v17 = vld [vmem:[%s12115_s23 + $0x474] ss:$8 sps:$4 sm:$0xff]  }
0x18f9   : > { %8635 = vmatpush1.bf16.msra.mxu0 %v10783_v58  ;;  %v10834_v58 = vld [vmem:[%s12115_s23 + $0x470] ss:$8 sps:$4 sm:$0xff]  }
0x18fa   : > { %8636 = vmatprep.subr.bf16.mxu0 %v10788_v44  ;;  %v10839_v44 = vld [vmem:[%s12115_s23 + $0x484] ss:$8 sps:$4 sm:$0xff]  }
0x18fd   : > { %8637 = vmatpush1.bf16.msra.mxu0 %v10786_v18  ;;  %v10837_v18 = vld [vmem:[%s12115_s23 + $0x480] ss:$8 sps:$4 sm:$0xff]  }
0x18fe   : > { %8638 = vmatprep.subr.bf16.mxu0 %v10791_v21  ;;  %v10842_v21 = vld [vmem:[%s12115_s23 + $0x494] ss:$8 sps:$4 sm:$0xff]  }
0x1901   : > { %8639 = vmatpush1.bf16.msra.mxu0 %v10789_v61  ;;  %v10840_v61 = vld [vmem:[%s12115_s23 + $0x490] ss:$8 sps:$4 sm:$0xff]  }
0x1902   : > { %8640 = vmatprep.subr.bf16.mxu0 %v10794_v19  ;;  %v10845_v19 = vld [vmem:[%s12115_s23 + $0x4a4] ss:$8 sps:$4 sm:$0xff]  }
0x1905   : > { %8641 = vmatpush1.bf16.msra.mxu0 %v10792_v6  ;;  %v10843_v6 = vld [vmem:[%s12115_s23 + $0x4a0] ss:$8 sps:$4 sm:$0xff]  }
0x1906   : > { %8642 = vmatprep.subr.bf16.mxu0 %v10797_v2  ;;  %v10848_v2 = vld [vmem:[%s12115_s23 + $0x4b4] ss:$8 sps:$4 sm:$0xff]  }
0x1909   : > { %8643 = vmatpush1.bf16.msra.mxu0 %v10795_v39  ;;  %v10846_v39 = vld [vmem:[%s12115_s23 + $0x4b0] ss:$8 sps:$4 sm:$0xff]  }
0x190a   : > { %8644 = vmatprep.subr.bf16.mxu0 %v10800_v23  ;;  %v10851_v23 = vld [vmem:[%s12115_s23 + $0x4c4] ss:$8 sps:$4 sm:$0xff]  }
0x190d   : > { %8645 = vmatpush1.bf16.msra.mxu0 %v10798_v31  ;;  %v10849_v31 = vld [vmem:[%s12115_s23 + $0x4c0] ss:$8 sps:$4 sm:$0xff]  }
0x190e   : > { %8646 = vmatprep.subr.bf16.mxu0 %v10803_v32  ;;  %v10854_v32 = vld [vmem:[%s12115_s23 + $0x4d4] ss:$8 sps:$4 sm:$0xff]  }
0x1911   : > { %8647 = vmatpush1.bf16.msra.mxu0 %v10801_v13  ;;  %v10852_v13 = vld [vmem:[%s12115_s23 + $0x4d0] ss:$8 sps:$4 sm:$0xff]  }
0x1912   : > { %8648 = vmatprep.subr.bf16.mxu0 %v10806_v33  ;;  %v13204_v33 = vld [vmem:[%s12109_s24 + $0x8] sm:$0xff] }
0x1915   : > { %v6716_v34 = vpop.f32.mrb[56].mxu1  ;;  %8649 = vmatpush1.bf16.msra.mxu0 %v10804_v25  ;;  %v5236_v25 = vrot.slane %v13204_v33, %v12262_v49 }
0x1916   : > { %v6717_v4 = vadd.f32 %v6716_v34, %v5220_v37  ;;  %v6718_v41 = vpop.f32.mrb[57].mxu1  ;;  %8650 = vmatprep.subr.bf16.mxu0 %v10809_v38  ;;  %v5240_v38 = vrot.slane %v13204_v33, %v12434_v28  ;;  %v10855_v34 = vld [vmem:[%s12115_s23 + $0x4e0] ss:$8 sps:$4 sm:$0xff]  }
0x1917   : > { %v6719_v52 = vadd.f32 %v6718_v41, %v5224_v27  ;;  %v6720_v53 = vpop.f32.mrb[58].mxu1  ;;  %v10860_v41 = vld [vmem:[%s12115_s23 + $0x4f4] ss:$8 sps:$4 sm:$0xff]  }
0x1918   : > { %v6721_v54 = vadd.f32 %v6720_v53, %v5220_v37  ;;  %v6722_v57 = vpop.f32.mrb[59].mxu1  ;;  %v6903_v0 = vmax.f32 %v6717_v4, 0.0  ;;  %v10857_v37 = vld [vmem:[%s12115_s23 + $0x4e4] ss:$8 sps:$4 sm:$0xff]  }
0x1919   : > { %v6723_v62 = vadd.f32 %v6722_v57, %v5224_v27  ;;  %8651 = vmatpush1.bf16.msra.mxu0 %v10807_v36  ;;  %v6904_v5 = vmax.f32 %v6719_v52, 0.0  ;;  %v10858_v57 = vld [vmem:[%s12115_s23 + $0x4f0] ss:$8 sps:$4 sm:$0xff]  }
0x191a   : > { %v6919_v24 = vmax.f32 %v6721_v54, 0.0  ;;  %8652 = vmatprep.subr.bf16.mxu0 %v10812_v46 }
0x191b   : > { %v6920_v7 = vmax.f32 %v6723_v62, 0.0 }
0x191c   : > { %v6935_v9 = vpack.c.bf16 %v6919_v24, %v6903_v0 }
0x191d   : > { %v6936_v3 = vpack.c.bf16 %v6920_v7, %v6904_v5  ;;  %8653 = vmatpush1.bf16.msra.mxu0 %v10810_v35  ;;  %v10863_v35 = vld [vmem:[%s12115_s23 + $0x504] ss:$8 sps:$4 sm:$0xff]   ;;  %v10861_v7 = vld [vmem:[%s12115_s23 + $0x500] ss:$8 sps:$4 sm:$0xff]  }
0x191e   : > { %8665 = vmatprep.subr.bf16.mxu0 %v10815_v63 }
0x191f   : > { %8654 = vmatprep.mubr.bf16.mxu0 %v6936_v3  ;;  %v10864_v3 = vld [vmem:[%s12115_s23 + $0x510] ss:$8 sps:$4 sm:$0xff]  }
0x1920   : > { %8655 = vmatmul.mubr.bf16.vlgmr.msra.gmra.mrb[48].mxu0 %v6935_v9  ;;  %v10866_v9 = vld [vmem:[%s12115_s23 + $0x514] ss:$8 sps:$4 sm:$0xff]  }
0x1921   : > { %8666 = vmatpush1.bf16.msra.mxu0 %v10813_v56  ;;  %8697 = vmatprep.mubr.bf16.mxu0 %v13004_v48  ;;  %v10830_v48 = vld [vmem:[%s12115_s23 + $0x454] ss:$8 sps:$4 sm:$0xff]   ;;  %v10869_v56 = vld [vmem:[%s12115_s23 + $0x524] ss:$8 sps:$4 sm:$0xff]  }
0x1922   : > { %8667 = vmatprep.subr.bf16.mxu0 %v10818_v10  ;;  %v10867_v10 = vld [vmem:[%s12115_s23 + $0x520] ss:$8 sps:$4 sm:$0xff]  }
0x1925   : > { %8668 = vmatpush1.bf16.msra.mxu0 %v10816_v45  ;;  %v10872_v45 = vld [vmem:[%s12115_s23 + $0x534] ss:$8 sps:$4 sm:$0xff]  }
0x1926   : > { %8669 = vmatprep.subr.bf16.mxu0 %v10821_v8  ;;  %v10870_v8 = vld [vmem:[%s12115_s23 + $0x530] ss:$8 sps:$4 sm:$0xff]  }
0x1929   : > { %8670 = vmatpush1.bf16.msra.mxu0 %v10819_v55  ;;  %v10875_v55 = vld [vmem:[%s12115_s23 + $0x544] ss:$8 sps:$4 sm:$0xff]  }
0x192a   : > { %8671 = vmatprep.subr.bf16.mxu0 %v10824_v11  ;;  %v10878_v11 = vld [vmem:[%s12115_s23 + $0x554] ss:$8 sps:$4 sm:$0xff]  }
0x192d   : > { %8672 = vmatpush1.bf16.msra.mxu0 %v10822_v59  ;;  %v10876_v59 = vld [vmem:[%s12115_s23 + $0x550] ss:$8 sps:$4 sm:$0xff]  }
0x192e   : > { %8673 = vmatprep.subr.bf16.mxu0 %v10827_v12  ;;  %v10881_v12 = vld [vmem:[%s12115_s23 + $0x564] ss:$8 sps:$4 sm:$0xff]  }
0x1931   : > { %8674 = vmatpush1.bf16.msra.mxu0 %v10825_v14  ;;  %v10879_v14 = vld [vmem:[%s12115_s23 + $0x560] ss:$8 sps:$4 sm:$0xff]  }
0x1932   : > { %8675 = vmatprep.subr.bf16.mxu0 %v10830_v48  ;;  %v10884_v48 = vld [vmem:[%s12115_s23 + $0x574] ss:$8 sps:$4 sm:$0xff]  }
0x1935   : > { %8676 = vmatpush1.bf16.msra.mxu0 %v10828_v15  ;;  %v10882_v15 = vld [vmem:[%s12115_s23 + $0x570] ss:$8 sps:$4 sm:$0xff]  }
0x1936   : > { %8677 = vmatprep.subr.bf16.mxu0 %v10833_v29  ;;  %v10887_v29 = vld [vmem:[%s12115_s23 + $0x584] ss:$8 sps:$4 sm:$0xff]  }
0x1939   : > { %8678 = vmatpush1.bf16.msra.mxu0 %v10831_v16  ;;  %v10885_v16 = vld [vmem:[%s12115_s23 + $0x580] ss:$8 sps:$4 sm:$0xff]  }
0x193a   : > { %8679 = vmatprep.subr.bf16.mxu0 %v10836_v17  ;;  %v10890_v17 = vld [vmem:[%s12115_s23 + $0x594] ss:$8 sps:$4 sm:$0xff]  }
0x193d   : > { %8680 = vmatpush1.bf16.msra.mxu0 %v10834_v58  ;;  %v10888_v58 = vld [vmem:[%s12115_s23 + $0x590] ss:$8 sps:$4 sm:$0xff]  }
0x193e   : > { %8681 = vmatprep.subr.bf16.mxu0 %v10839_v44  ;;  %v10893_v44 = vld [vmem:[%s12115_s23 + $0x5a4] ss:$8 sps:$4 sm:$0xff]  }
0x1941   : > { %8682 = vmatpush1.bf16.msra.mxu0 %v10837_v18  ;;  %v10891_v18 = vld [vmem:[%s12115_s23 + $0x5a0] ss:$8 sps:$4 sm:$0xff]  }
0x1942   : > { %8683 = vmatprep.subr.bf16.mxu0 %v10842_v21  ;;  %v10896_v21 = vld [vmem:[%s12115_s23 + $0x5b4] ss:$8 sps:$4 sm:$0xff]  }
0x1945   : > { %8684 = vmatpush1.bf16.msra.mxu0 %v10840_v61  ;;  %v10894_v61 = vld [vmem:[%s12115_s23 + $0x5b0] ss:$8 sps:$4 sm:$0xff]  }
0x1946   : > { %8685 = vmatprep.subr.bf16.mxu0 %v10845_v19  ;;  %v10899_v19 = vld [vmem:[%s12115_s23 + $0x5c4] ss:$8 sps:$4 sm:$0xff]  }
0x1949   : > { %8686 = vmatpush1.bf16.msra.mxu0 %v10843_v6  ;;  %v10897_v6 = vld [vmem:[%s12115_s23 + $0x5c0] ss:$8 sps:$4 sm:$0xff]  }
0x194a   : > { %8687 = vmatprep.subr.bf16.mxu0 %v10848_v2  ;;  %v10902_v2 = vld [vmem:[%s12115_s23 + $0x5d4] ss:$8 sps:$4 sm:$0xff]  }
0x194d   : > { %8688 = vmatpush1.bf16.msra.mxu0 %v10846_v39  ;;  %v10900_v39 = vld [vmem:[%s12115_s23 + $0x5d0] ss:$8 sps:$4 sm:$0xff]  }
0x194e   : > { %8689 = vmatprep.subr.bf16.mxu0 %v10851_v23  ;;  %v5252_v23 = vrot.slane %v13204_v33, %v5219_v26 }
0x1951   : > { %8690 = vmatpush1.bf16.msra.mxu0 %v10849_v31  ;;  %v10905_v31 = vld [vmem:[%s12115_s23 + $0x5e4] ss:$8 sps:$4 sm:$0xff]  }
0x1952   : > { %8691 = vmatprep.subr.bf16.mxu0 %v10854_v32  ;;  %v5256_v32 = vrot.slane %v13204_v33, %v5223_v47  ;;  %v10911_v33 = vld [vmem:[%s12115_s23 + $0x604] ss:$8 sps:$4 sm:$0xff]  }
0x1955   : > { %v6802_v27 = vpop.f32.mrb[60].mxu1  ;;  %8692 = vmatpush1.bf16.msra.mxu0 %v10852_v13 }
0x1956   : > { %v6803_v36 = vadd.f32 %v6802_v27, %v5236_v25  ;;  %v6804_v4 = vpop.f32.mrb[61].mxu1  ;;  %8693 = vmatprep.subr.bf16.mxu0 %v10857_v37  ;;  %v10908_v27 = vld [vmem:[%s12115_s23 + $0x5f4] ss:$8 sps:$4 sm:$0xff]  }
0x1957   : > { %v6805_v46 = vadd.f32 %v6804_v4, %v5240_v38  ;;  %v6806_v52 = vpop.f32.mrb[62].mxu1 }
0x1958   : > { %v6807_v53 = vadd.f32 %v6806_v52, %v5236_v25  ;;  %v6808_v54 = vpop.f32.mrb[63].mxu1  ;;  %v6907_v62 = vmax.f32 %v6803_v36, 0.0  ;;  %v10903_v25 = vld [vmem:[%s12115_s23 + $0x5e0] ss:$8 sps:$4 sm:$0xff]  }
0x1959   : > { %v6809_v49 = vadd.f32 %v6808_v54, %v5240_v38  ;;  %8694 = vmatpush1.bf16.msra.mxu0 %v10855_v34  ;;  %v6908_v0 = vmax.f32 %v6805_v46, 0.0  ;;  %v10906_v46 = vld [vmem:[%s12115_s23 + $0x5f0] ss:$8 sps:$4 sm:$0xff]  }
0x195a   : > { %v6923_v28 = vmax.f32 %v6807_v53, 0.0  ;;  %8695 = vmatprep.subr.bf16.mxu0 %v10860_v41 }
0x195b   : > { %v6924_v24 = vmax.f32 %v6809_v49, 0.0 }
0x195c   : > { %v13215_v63 = vpack.c.bf16 %v6923_v28, %v6907_v62  ;;  %v10909_v62 = vld [vmem:[%s12115_s23 + $0x600] ss:$8 sps:$4 sm:$0xff]   ;;  %v10914_v28 = vld [vmem:[%s12115_s23 + $0x614] ss:$8 sps:$4 sm:$0xff]  }
0x195d   : > { %v6940_v5 = vpack.c.bf16 %v6924_v24, %v6908_v0  ;;  %8696 = vmatpush1.bf16.msra.mxu0 %v10858_v57  ;;  %v10917_v0 = vld [vmem:[%s12115_s23 + $0x624] ss:$8 sps:$4 sm:$0xff]   ;;  %v10915_v24 = vld [vmem:[%s12115_s23 + $0x620] ss:$8 sps:$4 sm:$0xff]  }
0x195e   : > { %8708 = vmatprep.subr.bf16.mxu0 %v10863_v35  ;;  %v10912_v35 = vld [vmem:[%s12115_s23 + $0x610] ss:$8 sps:$4 sm:$0xff]  }
0x1960   : > { %8698 = vmatmul.mubr.bf16.vlgmr.msra.gmra.mrb[48].mxu0 %v13002_v40  ;;  %v10873_v40 = vld [vmem:[%s12115_s23 + $0x540] ss:$8 sps:$4 sm:$0xff]  }
0x1961   : > { %8709 = vmatpush1.bf16.msra.mxu0 %v10861_v7  ;;  %8740 = vmatprep.mubr.bf16.mxu0 %v6940_v5  ;;  %v10920_v5 = vld [vmem:[%s12115_s23 + $0x634] ss:$8 sps:$4 sm:$0xff]   ;;  %v10918_v7 = vld [vmem:[%s12115_s23 + $0x630] ss:$8 sps:$4 sm:$0xff]  }
0x1962   : > { %8710 = vmatprep.subr.bf16.mxu0 %v10866_v9  ;;  %v10921_v9 = vld [vmem:[%s12115_s23 + $0x640] ss:$8 sps:$4 sm:$0xff]  }
0x1965   : > { %8711 = vmatpush1.bf16.msra.mxu0 %v10864_v3  ;;  %v10924_v3 = vld [vmem:[%s12115_s23 + $0x650] ss:$8 sps:$4 sm:$0xff]  }
0x1966   : > { %8712 = vmatprep.subr.bf16.mxu0 %v10869_v56  ;;  %v10929_v56 = vld [vmem:[%s12115_s23 + $0x664] ss:$8 sps:$4 sm:$0xff]  }
0x1969   : > { %8713 = vmatpush1.bf16.msra.mxu0 %v10867_v10  ;;  %v10927_v10 = vld [vmem:[%s12115_s23 + $0x660] ss:$8 sps:$4 sm:$0xff]  }
0x196a   : > { %8714 = vmatprep.subr.bf16.mxu0 %v10872_v45  ;;  %v10932_v45 = vld [vmem:[%s12115_s23 + $0x674] ss:$8 sps:$4 sm:$0xff]  }
0x196d   : > { %8715 = vmatpush1.bf16.msra.mxu0 %v10870_v8  ;;  %v10930_v8 = vld [vmem:[%s12115_s23 + $0x670] ss:$8 sps:$4 sm:$0xff]  }
0x196e   : > { %8716 = vmatprep.subr.bf16.mxu0 %v10875_v55  ;;  %v10935_v55 = vld [vmem:[%s12115_s23 + $0x684] ss:$8 sps:$4 sm:$0xff]  }
0x1971   : > { %8717 = vmatpush1.bf16.msra.mxu0 %v10873_v40  ;;  %v10933_v40 = vld [vmem:[%s12115_s23 + $0x680] ss:$8 sps:$4 sm:$0xff]  }
0x1972   : > { %8718 = vmatprep.subr.bf16.mxu0 %v10878_v11  ;;  %v10938_v11 = vld [vmem:[%s12115_s23 + $0x694] ss:$8 sps:$4 sm:$0xff]  }
0x1975   : > { %8719 = vmatpush1.bf16.msra.mxu0 %v10876_v59  ;;  %v10936_v59 = vld [vmem:[%s12115_s23 + $0x690] ss:$8 sps:$4 sm:$0xff]  }
0x1976   : > { %8720 = vmatprep.subr.bf16.mxu0 %v10881_v12  ;;  %v10941_v12 = vld [vmem:[%s12115_s23 + $0x6a4] ss:$8 sps:$4 sm:$0xff]  }
0x1979   : > { %8721 = vmatpush1.bf16.msra.mxu0 %v10879_v14  ;;  %v10939_v14 = vld [vmem:[%s12115_s23 + $0x6a0] ss:$8 sps:$4 sm:$0xff]  }
0x197a   : > { %8722 = vmatprep.subr.bf16.mxu0 %v10884_v48  ;;  %v10944_v48 = vld [vmem:[%s12115_s23 + $0x6b4] ss:$8 sps:$4 sm:$0xff]  }
0x197d   : > { %8723 = vmatpush1.bf16.msra.mxu0 %v10882_v15  ;;  %v10942_v15 = vld [vmem:[%s12115_s23 + $0x6b0] ss:$8 sps:$4 sm:$0xff]  }
0x197e   : > { %8724 = vmatprep.subr.bf16.mxu0 %v10887_v29  ;;  %v10947_v29 = vld [vmem:[%s12115_s23 + $0x6c4] ss:$8 sps:$4 sm:$0xff]  }
0x1981   : > { %8725 = vmatpush1.bf16.msra.mxu0 %v10885_v16  ;;  %v10945_v16 = vld [vmem:[%s12115_s23 + $0x6c0] ss:$8 sps:$4 sm:$0xff]  }
0x1982   : > { %8726 = vmatprep.subr.bf16.mxu0 %v10890_v17  ;;  %v10950_v17 = vld [vmem:[%s12115_s23 + $0x6d4] ss:$8 sps:$4 sm:$0xff]  }
0x1985   : > { %8727 = vmatpush1.bf16.msra.mxu0 %v10888_v58  ;;  %v10948_v58 = vld [vmem:[%s12115_s23 + $0x6d0] ss:$8 sps:$4 sm:$0xff]  }
0x1986   : > { %8728 = vmatprep.subr.bf16.mxu0 %v10893_v44  ;;  %v10953_v44 = vld [vmem:[%s12115_s23 + $0x6e4] ss:$8 sps:$4 sm:$0xff]  }
0x1989   : > { %8729 = vmatpush1.bf16.msra.mxu0 %v10891_v18  ;;  %v10951_v18 = vld [vmem:[%s12115_s23 + $0x6e0] ss:$8 sps:$4 sm:$0xff]  }
0x198a   : > { %8730 = vmatprep.subr.bf16.mxu0 %v10896_v21  ;;  %v10956_v21 = vld [vmem:[%s12115_s23 + $0x6f4] ss:$8 sps:$4 sm:$0xff]  }
0x198d   : > { %8731 = vmatpush1.bf16.msra.mxu0 %v10894_v61  ;;  %v10954_v61 = vld [vmem:[%s12115_s23 + $0x6f0] ss:$8 sps:$4 sm:$0xff]  }
0x198e   : > { %8732 = vmatprep.subr.bf16.mxu0 %v10899_v19  ;;  %v10959_v19 = vld [vmem:[%s12115_s23 + $0x704] ss:$8 sps:$4 sm:$0xff]  }
0x1991   : > { %8733 = vmatpush1.bf16.msra.mxu0 %v10897_v6  ;;  %v10957_v6 = vld [vmem:[%s12115_s23 + $0x700] ss:$8 sps:$4 sm:$0xff]  }
0x1992   : > { %8734 = vmatprep.subr.bf16.mxu0 %v10902_v2  ;;  %v10962_v2 = vld [vmem:[%s12115_s23 + $0x714] ss:$8 sps:$4 sm:$0xff]  }
0x1995   : > { %v6888_v13 = vpop.f32.mrb[64].mxu1  ;;  %8735 = vmatpush1.bf16.msra.mxu0 %v10900_v39  ;;  %v10960_v39 = vld [vmem:[%s12115_s23 + $0x710] ss:$8 sps:$4 sm:$0xff]  }
0x1996   : > { %v6889_v37 = vadd.f32 %v6888_v13, %v5252_v23  ;;  %v6890_v38 = vpop.f32.mrb[65].mxu1  ;;  %8736 = vmatprep.subr.bf16.mxu0 %v10905_v31  ;;  %v10963_v31 = vld [vmem:[%s12115_s23 + $0x720] ss:$8 sps:$4 sm:$0xff]   ;;  %v10966_v13 = vld [vmem:[%s12115_s23 + $0x730] ss:$8 sps:$4 sm:$0xff]  }
0x1997   : > { %v6891_v34 = vadd.f32 %v6890_v38, %v5256_v32  ;;  %v6892_v36 = vpop.f32.mrb[66].mxu1  ;;  %v10972_v38 = vld [vmem:[%s12115_s23 + $0x750] ss:$8 sps:$4 sm:$0xff]  }
0x1998   : > { %v6893_v4 = vadd.f32 %v6892_v36, %v5252_v23  ;;  %v6894_v26 = vpop.f32.mrb[67].mxu1  ;;  %v6911_v52 = vmax.f32 %v6889_v37, 0.0  ;;  %v10965_v23 = vld [vmem:[%s12115_s23 + $0x724] ss:$8 sps:$4 sm:$0xff]   ;;  %v10974_v37 = vld [vmem:[%s12115_s23 + $0x754] ss:$8 sps:$4 sm:$0xff]  }
0x1999   : > { %v6895_v41 = vadd.f32 %v6894_v26, %v5256_v32  ;;  %8737 = vmatpush1.bf16.msra.mxu0 %v10903_v25  ;;  %v6912_v53 = vmax.f32 %v6891_v34, 0.0  ;;  %v10968_v32 = vld [vmem:[%s12115_s23 + $0x734] ss:$8 sps:$4 sm:$0xff]   ;;  %v10969_v25 = vld [vmem:[%s12115_s23 + $0x740] ss:$8 sps:$4 sm:$0xff]  }
0x199a   : > { %v6927_v47 = vmax.f32 %v6893_v4, 0.0  ;;  %8738 = vmatprep.subr.bf16.mxu0 %v10908_v27  ;;  %v10977_v27 = vld [vmem:[%s12115_s23 + $0x764] ss:$8 sps:$4 sm:$0xff]   ;;  %v10975_v34 = vld [vmem:[%s12115_s23 + $0x760] ss:$8 sps:$4 sm:$0xff]  }
0x199b   : > { %v6928_v54 = vmax.f32 %v6895_v41, 0.0  ;;  %v10980_v36 = vld [vmem:[%s12115_s23 + $0x774] ss:$8 sps:$4 sm:$0xff]   ;;  %v10978_v4 = vld [vmem:[%s12115_s23 + $0x770] ss:$8 sps:$4 sm:$0xff]  }
0x199c   : > { %v13256_v49 = vpack.c.bf16 %v6927_v47, %v6911_v52  ;;  %v10983_v26 = vld [vmem:[%s12115_s23 + $0x784] ss:$8 sps:$4 sm:$0xff]   ;;  %v10981_v41 = vld [vmem:[%s12115_s23 + $0x780] ss:$8 sps:$4 sm:$0xff]   ;;  %v10984_v52 = vld [vmem:[%s12115_s23 + $0x790] ss:$8 sps:$4 sm:$0xff]  }
0x199d   : > { %v13258_v57 = vpack.c.bf16 %v6928_v54, %v6912_v53  ;;  %8739 = vmatpush1.bf16.msra.mxu0 %v10906_v46  ;;  %v10986_v46 = vld [vmem:[%s12115_s23 + $0x794] ss:$8 sps:$4 sm:$0xff]   ;;  %v10989_v47 = vld [vmem:[%s12115_s23 + $0x7a4] ss:$8 sps:$4 sm:$0xff]   ;;  %v10990_v54 = vld [vmem:[%s12115_s23 + $0x7b0] ss:$8 sps:$4 sm:$0xff]  }
0x199e   : > { %8751 = vmatprep.subr.bf16.mxu0 %v10911_v33  ;;  %v10987_v33 = vld [vmem:[%s12115_s23 + $0x7a0] ss:$8 sps:$4 sm:$0xff]   ;;  %v10992_v53 = vld [vmem:[%s12115_s23 + $0x7b4] ss:$8 sps:$4 sm:$0xff]  }
0x19a0   : > { %8741 = vmatmul.mubr.bf16.vlgmr.msra.gmra.mrb[48].mxu0 %v13215_v63  ;;  %v10923_v63 = vld [vmem:[%s12115_s23 + $0x644] ss:$8 sps:$4 sm:$0xff]  }
0x19a1   : > { %8752 = vmatpush1.bf16.msra.mxu0 %v10909_v62  ;;  %8783 = vmatprep.mubr.bf16.mxu0 %v13082_v60  ;;  %v10926_v60 = vld [vmem:[%s12115_s23 + $0x654] ss:$8 sps:$4 sm:$0xff]   ;;  %v10993_v62 = vld [vmem:[%s12115_s23 + $0x7c0] ss:$8 sps:$4 sm:$0xff]  }
0x19a2   : > { %8753 = vmatprep.subr.bf16.mxu0 %v10914_v28  ;;  %v10998_v28 = vld [vmem:[%s12115_s23 + $0x7d4] ss:$8 sps:$4 sm:$0xff]  }
0x19a5   : > { %8754 = vmatpush1.bf16.msra.mxu0 %v10912_v35  ;;  %v10996_v35 = vld [vmem:[%s12115_s23 + $0x7d0] ss:$8 sps:$4 sm:$0xff]  }
0x19a6   : > { %8755 = vmatprep.subr.bf16.mxu0 %v10917_v0  ;;  %v11001_v0 = vld [vmem:[%s12115_s23 + $0x7e4] ss:$8 sps:$4 sm:$0xff]  }
0x19a9   : > { %8756 = vmatpush1.bf16.msra.mxu0 %v10915_v24  ;;  %v10999_v24 = vld [vmem:[%s12115_s23 + $0x7e0] ss:$8 sps:$4 sm:$0xff]  }
0x19aa   : > { %8757 = vmatprep.subr.bf16.mxu0 %v10920_v5  ;;  %v11004_v5 = vld [vmem:[%s12115_s23 + $0x7f4] ss:$8 sps:$4 sm:$0xff]  }
0x19ad   : > { %8758 = vmatpush1.bf16.msra.mxu0 %v10918_v7  ;;  %v11002_v7 = vld [vmem:[%s12115_s23 + $0x7f0] ss:$8 sps:$4 sm:$0xff]  }
0x19ae   : > { %8759 = vmatprep.subr.bf16.mxu0 %v10923_v63  ;;  %v7201_v63 = vld [vmem:[%s745_s2] sm:$0x3] }
0x19b1   : > { %8760 = vmatpush1.bf16.msra.mxu0 %v10921_v9  ;;  %v7206_v9 = vrot.slane %v7201_v63, %v12268_v51 }
0x19b2   : > { %8761 = vmatprep.subr.bf16.mxu0 %v10926_v60 }
0x19b5   : > { %8762 = vmatpush1.bf16.msra.mxu0 %v10924_v3  ;;  %v7210_v3 = vrot.slane %v7201_v63, %v12441_v30 }
0x19b6   : > { %8763 = vmatprep.subr.bf16.mxu0 %v10929_v56 }
0x19b9   : > { %8764 = vmatpush1.bf16.msra.mxu0 %v10927_v10 }
0x19ba   : > { %8765 = vmatprep.subr.bf16.mxu0 %v10932_v45 }
0x19bd   : > { %8766 = vmatpush1.bf16.msra.mxu0 %v10930_v8 }
0x19be   : > { %8767 = vmatprep.subr.bf16.mxu0 %v10935_v55 }
0x19c1   : > { %8768 = vmatpush1.bf16.msra.mxu0 %v10933_v40 }
0x19c2   : > { %8769 = vmatprep.subr.bf16.mxu0 %v10938_v11 }
0x19c5   : > { %8770 = vmatpush1.bf16.msra.mxu0 %v10936_v59 }
0x19c6   : > { %8771 = vmatprep.subr.bf16.mxu0 %v10941_v12 }
0x19c9   : > { %8772 = vmatpush1.bf16.msra.mxu0 %v10939_v14 }
0x19ca   : > { %8773 = vmatprep.subr.bf16.mxu0 %v10944_v48 }
0x19cd   : > { %8774 = vmatpush1.bf16.msra.mxu0 %v10942_v15 }
0x19ce   : > { %8775 = vmatprep.subr.bf16.mxu0 %v10947_v29 }
0x19d1   : > { %8776 = vmatpush1.bf16.msra.mxu0 %v10945_v16 }
0x19d2   : > { %8777 = vmatprep.subr.bf16.mxu0 %v10950_v17 }
0x19d5   : > { %8778 = vmatpush1.bf16.msra.mxu0 %v10948_v58 }
0x19d6   : > { %8779 = vmatprep.subr.bf16.mxu0 %v10953_v44 }
0x19d9   : > { %8780 = vmatpush1.bf16.msra.mxu0 %v10951_v18 }
0x19da   : > { %8781 = vmatprep.subr.bf16.mxu0 %v10956_v21 }
0x19dd   : > { %8782 = vmatpush1.bf16.msra.mxu0 %v10954_v61 }
0x19de   : > { %8794 = vmatprep.subr.bf16.mxu0 %v10959_v19 }
0x19e0   : > { %8784 = vmatmul.mubr.bf16.vlgmr.msra.gmra.mrb[48].mxu0 %v13080_v22  ;;  %v10971_v22 = vld [vmem:[%s12115_s23 + $0x744] ss:$8 sps:$4 sm:$0xff]  }
0x19e1   : > { %8795 = vmatpush1.bf16.msra.mxu0 %v10957_v6  ;;  %8826 = vmatprep.mubr.bf16.mxu0 %v13258_v57  ;;  %v10995_v57 = vld [vmem:[%s12115_s23 + $0x7c4] ss:$8 sps:$4 sm:$0xff]  }
0x19e2   : > { %8796 = vmatprep.subr.bf16.mxu0 %v10962_v2 }
0x19e5   : > { %8797 = vmatpush1.bf16.msra.mxu0 %v10960_v39 }
0x19e6   : > { %8798 = vmatprep.subr.bf16.mxu0 %v10965_v23 }
0x19e9   : > { %8799 = vmatpush1.bf16.msra.mxu0 %v10963_v31 }
0x19ea   : > { %8800 = vmatprep.subr.bf16.mxu0 %v10968_v32 }
0x19ed   : > { %8801 = vmatpush1.bf16.msra.mxu0 %v10966_v13 }
0x19ee   : > { %8802 = vmatprep.subr.bf16.mxu0 %v10971_v22  ;;  %v8873_v22 = vld [vmem:[%s13459_s6] sm:$0x3] }
0x19f1   : > { %8803 = vmatpush1.bf16.msra.mxu0 %v10969_v25  ;;  %v8889_v25 = vld [vmem:[%s763_s20] sm:$0x3] }
0x19f2   : > { %8804 = vmatprep.subr.bf16.mxu0 %v10974_v37  ;;  %v8878_v37 = vrot.slane %v8873_v22, %v12268_v51 }
0x19f5   : > { %8805 = vmatpush1.bf16.msra.mxu0 %v10972_v38  ;;  %v8882_v38 = vrot.slane %v8873_v22, %v12441_v30 }
0x19f6   : > { %8806 = vmatprep.subr.bf16.mxu0 %v10977_v27 }
0x19f9   : > { %8807 = vmatpush1.bf16.msra.mxu0 %v10975_v34  ;;  %v8894_v34 = vrot.slane %v8889_v25, %v12268_v51 }
0x19fa   : > { %8808 = vmatprep.subr.bf16.mxu0 %v10980_v36  ;;  %v8898_v36 = vrot.slane %v8889_v25, %v12441_v30  ;;  %v11556_v30 = vmov 1983009808  }
0x19fd   : > { %8809 = vmatpush1.bf16.msra.mxu0 %v10978_v4 }
0x19fe   : > { %8810 = vmatprep.subr.bf16.mxu0 %v10983_v26 }
0x1a01   : > { %8811 = vmatpush1.bf16.msra.mxu0 %v10981_v41 }
0x1a02   : > { %8812 = vmatprep.subr.bf16.mxu0 %v10986_v46 }
0x1a05   : > { %8813 = vmatpush1.bf16.msra.mxu0 %v10984_v52 }
0x1a06   : > { %8814 = vmatprep.subr.bf16.mxu0 %v10989_v47 }
0x1a09   : > { %8815 = vmatpush1.bf16.msra.mxu0 %v10987_v33 }
0x1a0a   : > { %8816 = vmatprep.subr.bf16.mxu0 %v10992_v53 }
0x1a0d   : > { %8817 = vmatpush1.bf16.msra.mxu0 %v10990_v54 }
0x1a0e   : > { %8818 = vmatprep.subr.bf16.mxu0 %v10995_v57 }
0x1a11   : > { %8819 = vmatpush1.bf16.msra.mxu0 %v10993_v62 }
0x1a12   : > { %8820 = vmatprep.subr.bf16.mxu0 %v10998_v28 }
0x1a15   : > { %8821 = vmatpush1.bf16.msra.mxu0 %v10996_v35 }
0x1a16   : > { %8822 = vmatprep.subr.bf16.mxu0 %v11001_v0 }
0x1a19   : > { %8823 = vmatpush1.bf16.msra.mxu0 %v10999_v24 }
0x1a1a   : > { %8824 = vmatprep.subr.bf16.mxu0 %v11004_v5 }
0x1a1d   : > { %8825 = vmatpush1.bf16.msra.mxu0 %v11002_v7  ;;  %v8944_v7 = vunpack.c.l.s4 %v11556_v30 }
0x1a20   : > { %8827 = vmatmul.mubr.bf16.vlgmr.msra.gmra.mrb[48].mxu0 %v13256_v49 }
0x1af3   : > { %v8828_v60 = vpop.f32.mrb[48].mxu0 }
0x1af4   : > { %v8830_v56 = vpop.f32.mrb[49].mxu0  ;;  %v10249_v55 = vadd.f32 %v8828_v60, %v7206_v9 }
0x1af5   : > { %v8832_v10 = vpop.f32.mrb[50].mxu0  ;;  %v10250_v40 = vadd.f32 %v8830_v56, %v7210_v3 }
0x1af6   : > { %v10251_v45 = vadd.f32 %v8832_v10, %v7206_v9  ;;  %v8834_v8 = vpop.f32.mrb[51].mxu0  ;;  %v8837_v49 = vadd.f32 %v10249_v55, %v12784_v20  ;;  %v8945_v55 = vunpack.c.0.s8 %v8944_v7 }
0x1af7   : > { %v10252_v11 = vadd.f32 %v8834_v8, %v7210_v3  ;;  %v8838_v14 = vadd.f32 %v10250_v40, %v12786_v42 }
0x1af8   : > { %v8839_v59 = vadd.f32 %v10251_v45, %v12788_v50 }
0x1af9   : > { %v8840_v12 = vadd.f32 %v10252_v11, %v12790_v1  ;;  %v8841_v15 = vadd.f32 %v8838_v14, %v8837_v49 }
0x1afb   : > { %v8844_v48 = vadd.f32 %v8840_v12, %v8839_v59 }
0x1afd   : > { %8845 = vadd.xlane.f32.xlu0 %v8844_v48 }
0x1b01   : > { %8842 = vadd.xlane.f32.xlu0 %v8841_v15 }
0x1b8a   : > { %v8846_v29 = vpop.xlane.xlu0 %8845 }
0x1b8b   : > { %v8848_v16 = vmul.f32 0.00390625, %v8846_v29  ;;  %v8948_v29 = vsub.s32 %v8945_v55, %v12259_v43 }
0x1b8d   : > { %v8851_v17 = vsub.f32 %v8839_v59, %v8848_v16  ;;  %v8852_v58 = vsub.f32 %v8840_v12, %v8848_v16 }
0x1b8e   : > { %v8843_v44 = vpop.xlane.xlu0 %8842 }
0x1b8f   : > { %v8847_v18 = vmul.f32 0.00390625, %v8843_v44  ;;  %v8855_v21 = vmul.f32 %v8851_v17, %v8851_v17  ;;  %v8856_v61 = vmul.f32 %v8852_v58, %v8852_v58 }
0x1b91   : > { %v8849_v19 = vsub.f32 %v8837_v49, %v8847_v18  ;;  %v8850_v50 = vsub.f32 %v8838_v14, %v8847_v18  ;;  %v8860_v1 = vadd.f32 %v8856_v61, %v8855_v21 }
0x1b93   : > { %8861 = vadd.xlane.f32.xlu0 %v8860_v1  ;;  %v8853_v20 = vmul.f32 %v8849_v19, %v8849_v19  ;;  %v8854_v42 = vmul.f32 %v8850_v50, %v8850_v50 }
0x1b95   : > { %v8857_v6 = vadd.f32 %v8854_v42, %v8853_v20 }
0x1b97   : > { %8858 = vadd.xlane.f32.xlu0 %v8857_v6 }
0x1c20   : > { %v8862_v2 = vpop.xlane.xlu0 %8861 }
0x1c21   : > { %v8864_v39 = vmul.f32 0.00390625, %v8862_v2 }
0x1c23   : > { %v8866_v23 = vadd.f32 1e-05, %v8864_v39 }
0x1c24   : > { %v8859_v31 = vpop.xlane.xlu0 %8858 }
0x1c25   : > { %11073 = vrsqrt.f32 %v8866_v23  ;;  %v8863_v32 = vmul.f32 0.00390625, %v8859_v31 }
0x1c27   : > { %v8865_v13 = vadd.f32 1e-05, %v8863_v32 }
0x1c29   : > { %11075 = vrsqrt.f32 %v8865_v13 }
0x1c2f   : > { %v11074_v27 = vpop.eup %11073 }
0x1c30   : > { %v8871_v4 = vmul.f32 %v11074_v27, %v8851_v17  ;;  %v8872_v26 = vmul.f32 %v11074_v27, %v8852_v58 }
0x1c32   : > { %v8887_v41 = vmul.f32 %v8878_v37, %v8871_v4  ;;  %v8888_v46 = vmul.f32 %v8882_v38, %v8872_v26 }
0x1c33   : > { %v11076_v52 = vpop.eup %11075 }
0x1c34   : > { %v8903_v47 = vadd.f32 %v8894_v34, %v8887_v41  ;;  %v8904_v33 = vadd.f32 %v8898_v36, %v8888_v46  ;;  %v8869_v53 = vmul.f32 %v11076_v52, %v8849_v19  ;;  %v8870_v54 = vmul.f32 %v11076_v52, %v8850_v50 }
0x1c36   : > { %8907 = vst [vmem:[#allocation2 + $0x10] sm:$0xff] %v8903_v47  ;;  %8908 = vst [vmem:[#allocation2 + $0x18] sm:$0xff] %v8904_v33  ;;  %v8885_v57 = vmul.f32 %v8878_v37, %v8869_v53  ;;  %v8886_v62 = vmul.f32 %v8882_v38, %v8870_v54  ;;  %v8921_v28 = vrot.slane %v8903_v47, 4  ;;  %v8927_v35 = vrot.slane %v8904_v33, 4 }
0x1c38   : > { %v8901_v0 = vadd.f32 %v8894_v34, %v8885_v57  ;;  %v8902_v24 = vadd.f32 %v8898_v36, %v8886_v62  ;;  %v8922_v51 = vadd.f32 %v8921_v28, %v8903_v47  ;;  %v8928_v5 = vadd.f32 %v8927_v35, %v8904_v33 }
0x1c3a   : > { %8905 = vst [vmem:[#allocation2] sm:$0xff] %v8901_v0  ;;  %8906 = vst [vmem:[#allocation2 + $0x8] sm:$0xff] %v8902_v24  ;;  %v8909_v63 = vrot.slane %v8901_v0, 4  ;;  %v8915_v9 = vrot.slane %v8902_v24, 4  ;;  %v8923_v60 = vrot.slane %v8922_v51, 2  ;;  %v8929_v3 = vrot.slane %v8928_v5, 2 }
0x1c3c   : > { %v8910_v56 = vadd.f32 %v8909_v63, %v8901_v0  ;;  %v8916_v10 = vadd.f32 %v8915_v9, %v8902_v24  ;;  %v8924_v45 = vadd.f32 %v8923_v60, %v8922_v51  ;;  %v8930_v8 = vadd.f32 %v8929_v3, %v8928_v5 }
0x1c3e   : > { %v8911_v40 = vrot.slane %v8910_v56, 2  ;;  %v8917_v11 = vrot.slane %v8916_v10, 2  ;;  %v8925_v59 = vrot.slane %v8924_v45, 1  ;;  %v8931_v12 = vrot.slane %v8930_v8, 1 }
0x1c40   : > { %v8912_v49 = vadd.f32 %v8911_v40, %v8910_v56  ;;  %v8918_v14 = vadd.f32 %v8917_v11, %v8916_v10  ;;  %v8926_v48 = vadd.f32 %v8925_v59, %v8924_v45  ;;  %v8932_v15 = vadd.f32 %v8931_v12, %v8930_v8 }
0x1c42   : > { %v8913_v16 = vrot.slane %v8912_v49, 1  ;;  %v8919_v17 = vrot.slane %v8918_v14, 1  ;;  %v8936_v58 = vmul.f32 0.125, %v8926_v48  ;;  %v8937_v44 = vmul.f32 0.125, %v8932_v15 }
0x1c44   : > { %v8914_v18 = vadd.f32 %v8913_v16, %v8912_v49  ;;  %v8920_v21 = vadd.f32 %v8919_v17, %v8918_v14  ;;  %v8950_v61 = vcombine.low %v8936_v58, %v8937_v44 }
0x1c46   : > { %v8934_v19 = vmul.f32 0.125, %v8914_v18  ;;  %v8935_v50 = vmul.f32 0.125, %v8920_v21  ;;  %v8957_v1 = vrot.slane %v8950_v61, %v8948_v29 }
0x1c48   : > { %v8942_v20 = vcombine.low %v8934_v19, %v8935_v50  ;;  %v8962_v6 = vrot.slane %v8957_v1, 7 }
0x1c4a   : > { %v8949_v42 = vrot.slane %v8942_v20, %v8948_v29 }
0x1c4c   : > { %v8964_v43 = vsel %vm8963_vm3, %v8962_v6, %v8949_v42 }
0x1c4d   : > { %v8966_v2 = vsel %vm8965_vm4, %v8962_v6, %v8964_v43 }
0x1c4e   : > { %v8968_v39 = vsel %vm8967_vm5, %v8962_v6, %v8966_v2 }
0x1c4f   : > { %v8970_v23 = vsel %vm8969_vm6, %v8962_v6, %v8968_v39 }
0x1c50   : > { %8972 = vst [vmem:[#allocation23] sm:$0xf] %v8970_v23 }
0x1c51   : > { %11455 = shalt.err (!%p11452_p7)
}
0x1c52   : > { %s13461_s23 = sld [smem:[#allocation43_spill]] }
0x1c58   : > { %s11456_s2 = scalar_lea.hbm %s13461_s23, 64 }
0x1c59   : > { %p11457_p13 = scmp.ne.s32.totalorder %s13461_s23, %s11456_s2  ;;  %p11462_p1 = scmp.lt.u32.totalorder %s11456_s2, %s13461_s23 }
0x1c5b   : > { %p11458_p4 = pnand %p11457_p13, %p10381_p3 }
0x1c5d   : > { %p11459_p8 = pneg %p11458_p4 }
0x1c5f   : > { %p11464_p12 = pnand %p11462_p1, %p11459_p8 }
0x1c61   : > { %11467 = shalt.err (!%p11464_p12)
}
0x1c62   : > { %10340 = dma.vmem_to_hbm [thread:$0]  (%p10381_p3), %s8981_s3, 64, %s13461_s23, [#allocation5]  }
0x1c63   : > { %11513 = dma.done.wait (%p10381_p3), [#allocation5], 64  }
0x1c64   : > { %11515 = vsyncadd (%p10381_p3), [#allocation5], 4294967232 }
0x1c65 PF: > { %s13462_s28 = sld [smem:[#allocation34_spill]]  ;;  %s13463_s0 = sld [smem:[#allocation32_spill]] }
0x1c66   : > { %s13464_s27 = sld [smem:[#allocation35_spill]]  ;;  %s13465_s25 = smov %s11522_s26 }
0x1c6b   : > { %p42_p9 = scmp.ge.s32.totalorder %s13462_s28, 8   ;;  %s13466_s26 = smov %s13463_s0 }
0x1c6d   :  { %44 = sbr.rel (!%p42_p9) target bundleno = 24 (0x18), region = 246 }
0x1c74   :  { %8993 = vsyncpa [#allocation4], 1 }
0x1c75   :  { %8995 = vsyncpa [#allocation4 + $0x1], 1 }
0x1c76   :  { %8996 = vsyncpa [#allocation7], 1 }
0x1c77   :  { %8998 = vsyncpa [#allocation7 + $0x1], 1 }
0x1c78   :  { %8999 = vsyncpa [#allocation10], 1 }
0x1c79   :  { %9001 = vsyncpa [#allocation10 + $0x1], 1 }
0x1c7a   :  { %9002 = vsyncpa [#allocation13], 1 }
0x1c7b   :  { %9004 = vsyncpa [#allocation13 + $0x1], 1 }
0x1c7c   :  { %9005 = vsyncpa [#allocation16], 1 }
0x1c7d   :  { %9007 = vsyncpa [#allocation16 + $0x1], 1 }
0x1c7e   :  { %9008 = vsyncpa [#allocation19], 1 }
0x1c7f   :  { %9010 = vsyncpa [#allocation19 + $0x1], 1 }
0x1c80   :  { %9011 = vsyncpa [#allocation22], 1 }
0x1c81   :  { %9013 = vsyncpa [#allocation22 + $0x1], 1 }
0x1c82   :  { %9014 = vsyncpa [#allocation5], 1 }
0x1c83   :  { %9016 = vsyncpa [#allocation5 + $0x1], 1 }

</bundles_post_ra>
